<compile_context>
chip_gen: v7x
topology: tpu7x:2x2x1
jax: 0.10.0
libtpu: 0.0.40
codegen_flags: <defaults>
</compile_context>

<pallas_src>
import numpy as np
import jax
import jax.numpy as jnp
from jax.experimental import pallas as pl
from jax.experimental.pallas import tpu as pltpu

N, H, W = 2, 16, 16
D = H * W              # flattened pixels fed to the backbone
FEAT = 32              # stand-in for resnet18's 512-d embedding (small scale)
FEAT_P = 128           # FEAT zero-padded to a full 128-lane vreg
OUT = 128              # nn.Linear(2 * FEAT, 128)

_HIGH = jax.lax.Precision.HIGHEST


# ---------------------------------------------------------------------------
# Fused kernel: one call == both branches (x1 and x2) of the siamese pair.
# ---------------------------------------------------------------------------
def _fused_kernel(x_ref, kdft_ref, wb_ref, bb_ref, wcat_ref, bf_ref, o_ref):
    xo = x_ref[...]                                 # (2N, D): [x1 ; x2] flattened
    m = xo.shape[0]                                 # 2N
    d = xo.shape[1]                                 # D

    # fft_to_image: fftshifted 2-D DFT of every image as ONE lane-dense matmul
    # against the Kronecker DFT matrix [Kr | Ki]  ->  [re | im].
    ri = jnp.dot(xo, kdft_ref[...],
                 preferred_element_type=jnp.float32, precision=_HIGH)  # (2N, 2D)
    re = ri[:, :d]
    im = ri[:, d:]
    mag = jnp.sqrt(re * re + im * im)               # |fftshift(fft2(x))|
    xf = jnp.log(mag + 1.0)                         # == log1p(mag) here

    # Shared backbone on [originals ; fft images] in a single matmul + ReLU.
    # 2N + 2N = 8 rows == one full sublane tile.
    xcat = jnp.concatenate([xo, xf], axis=0)        # (4N, D)
    feat = jnp.maximum(
        jnp.dot(xcat, wb_ref[...],
                preferred_element_type=jnp.float32, precision=_HIGH)
        + bb_ref[...], 0.0)                         # (4N, FEAT_P)

    # fc(concat(feat_orig, feat_fft)) as a single matmul against [w1 ; w2].
    fcat = jnp.concatenate([feat[:m], feat[m:]], axis=1)    # (2N, 2*FEAT_P)
    o_ref[...] = (jnp.dot(fcat, wcat_ref[...],
                          preferred_element_type=jnp.float32, precision=_HIGH)
                  + bf_ref[...])                    # (2N, OUT), lane-dense


def fft_siamese_forward(x1, x2, kernel_params):
    kdft, wb_p, bb_p, wcat_p, bf = kernel_params
    n = x1.shape[0]
    # Stack the siamese pair along rows: rows [0, n) = x1, rows [n, 2n) = x2.
    x = jnp.concatenate([x1.reshape(n, D), x2.reshape(n, D)], axis=0)  # (2N, D)

    vmem = pl.BlockSpec(memory_space=pltpu.MemorySpace.VMEM)
    out = pl.pallas_call(
        _fused_kernel,
        out_shape=jax.ShapeDtypeStruct((2 * n, OUT), jnp.float32),
        in_specs=[vmem] * 6,
        out_specs=vmem,
    )(x, kdft, wb_p, bb_p, wcat_p, bf)
    return out[:n], out[n:]


# ---------------------------------------------------------------------------
# Parameter construction (done once) and the pure-JAX reference.
# ---------------------------------------------------------------------------
def make_shifted_dft(n):
    k = np.arange(n)
    f = np.exp(-2j * np.pi * np.outer(k, k) / n)    # f[u, m] = w^(um)
    return np.roll(f, n // 2, axis=0)               # fftshift over output freq


def build_params():
    key = jax.random.PRNGKey(0)
    k1, k2, k3, k4, k5 = jax.random.split(key, 5)
    wb = jax.random.normal(k1, (D, FEAT), jnp.float32) * 0.05
    bb = jax.random.normal(k2, (1, FEAT), jnp.float32) * 0.05
    w1 = jax.random.normal(k3, (FEAT, OUT), jnp.float32) * 0.05
    w2 = jax.random.normal(k4, (FEAT, OUT), jnp.float32) * 0.05
    bf = jax.random.normal(k5, (1, OUT), jnp.float32) * 0.05
    ref_params = (wb, bb, w1, w2, bf)

    # Kronecker form of the fftshifted 2-D DFT:
    #   vec_row(A @ X @ Bmat) = vec_row(X) @ kron(A.T, Bmat)
    a = make_shifted_dft(H)            # left (row) DFT, fftshifted
    bmat = make_shifted_dft(W).T       # right (col) DFT, fftshifted + transposed
    m = np.kron(a.T, bmat)             # (H*W, H*W) complex
    kdft = jnp.asarray(np.concatenate([m.real, m.imag], axis=1), jnp.float32)

    # Zero-pad FEAT -> FEAT_P so intermediates are lane-dense (exact: padded
    # bias cols are 0 so ReLU keeps them 0, and padded fc rows are 0).
    wb_p = jnp.zeros((D, FEAT_P), jnp.float32).at[:, :FEAT].set(wb)
    bb_p = jnp.zeros((1, FEAT_P), jnp.float32).at[:, :FEAT].set(bb)
    w1_p = jnp.zeros((FEAT_P, OUT), jnp.float32).at[:FEAT].set(w1)
    w2_p = jnp.zeros((FEAT_P, OUT), jnp.float32).at[:FEAT].set(w2)
    wcat_p = jnp.concatenate([w1_p, w2_p], axis=0)  # (2*FEAT_P, OUT)

    kernel_params = (kdft, wb_p, bb_p, wcat_p, bf)
    return ref_params, kernel_params


def reference_forward(x1, x2, ref_params):
    wb, bb, w1, w2, bf = ref_params
    w_cat = jnp.concatenate([w1, w2], axis=0)

    def fft_img(x):
        xf = jnp.fft.fftshift(jnp.fft.fft2(x), axes=(-2, -1))
        return jnp.log(jnp.abs(xf) + 1.0)

    def backbone(xflat):
        return jnp.maximum(jnp.dot(xflat, wb, precision=_HIGH) + bb, 0.0)

    def branch(x):
        fo = backbone(x.reshape(x.shape[0], -1))
        ff = backbone(fft_img(x).reshape(x.shape[0], -1))
        c = jnp.concatenate([fo, ff], axis=1)
        return jnp.dot(c, w_cat, precision=_HIGH) + bf

    return branch(x1), branch(x2)


if __name__ == "__main__":
    key = jax.random.PRNGKey(0)
    kx1, kx2 = jax.random.split(key, 2)
    x1 = jax.random.normal(kx1, (N, H, W), jnp.float32)
    x2 = jax.random.normal(kx2, (N, H, W), jnp.float32)

    ref_params, kernel_params = build_params()

    out1, out2 = fft_siamese_forward(x1, x2, kernel_params)
    jax.block_until_ready((out1, out2))

    ref1, ref2 = reference_forward(x1, x2, ref_params)
    np.testing.assert_allclose(np.asarray(out1), np.asarray(ref1),
                               rtol=2e-3, atol=2e-3)
    np.testing.assert_allclose(np.asarray(out2), np.asarray(ref2),
                               rtol=2e-3, atol=2e-3)
    assert out1.shape == (N, OUT) and out2.shape == (N, OUT)

    print("KERNEL_OK")
</pallas_src>

<mosaic_0001>
module attributes {stable_mosaic.version = 11 : i64} {
  func.func @_fused_kernel(%arg0: memref<4x256xf32, #tpu.memory_space<vmem>>, %arg1: memref<256x512xf32, #tpu.memory_space<vmem>>, %arg2: memref<256x128xf32, #tpu.memory_space<vmem>>, %arg3: memref<1x128xf32, #tpu.memory_space<vmem>>, %arg4: memref<256x128xf32, #tpu.memory_space<vmem>>, %arg5: memref<1x128xf32, #tpu.memory_space<vmem>>, %arg6: memref<4x128xf32, #tpu.memory_space<vmem>>) attributes {dimension_semantics = [], scalar_prefetch = 0 : i64, scratch_operands = 0 : i64, tpu.core_type = #tpu.core_type<tc>} {
    %c0 = arith.constant 0 : index
    %c0_0 = arith.constant 0 : index
    %0 = vector.load %arg0[%c0, %c0_0] : memref<4x256xf32, #tpu.memory_space<vmem>>, vector<4x256xf32>
    %c0_1 = arith.constant 0 : index
    %c0_2 = arith.constant 0 : index
    %1 = vector.load %arg1[%c0_1, %c0_2] : memref<256x512xf32, #tpu.memory_space<vmem>>, vector<256x512xf32>
    %cst = arith.constant dense<0.000000e+00> : vector<4x512xf32>
    %2 = tpu.matmul %0, %1, %cst {dimension_numbers = #tpu.dot_dimension_numbers<[1], [0], [0], [1], [0, 0, 1, 1], [], []>, precision = #tpu.contract_precision<fp32>} : vector<4x256xf32>, vector<256x512xf32>, vector<4x512xf32> -> vector<4x512xf32>
    %3 = vector.extract_strided_slice %2 {offsets = [0, 0], sizes = [4, 256], strides = [1, 1]} : vector<4x512xf32> to vector<4x256xf32>
    %4 = vector.extract_strided_slice %2 {offsets = [0, 256], sizes = [4, 256], strides = [1, 1]} : vector<4x512xf32> to vector<4x256xf32>
    %5 = arith.mulf %3, %3 : vector<4x256xf32>
    %6 = arith.mulf %4, %4 : vector<4x256xf32>
    %7 = arith.addf %5, %6 : vector<4x256xf32>
    %8 = math.sqrt %7 : vector<4x256xf32>
    %cst_3 = arith.constant 1.000000e+00 : f32
    %9 = vector.broadcast %cst_3 : f32 to vector<4x256xf32>
    %10 = arith.addf %8, %9 : vector<4x256xf32>
    %11 = math.log %10 : vector<4x256xf32>
    %12 = tpu.concatenate %0, %11 in 0 : vector<4x256xf32>, vector<4x256xf32> -> vector<8x256xf32>
    %c0_4 = arith.constant 0 : index
    %c0_5 = arith.constant 0 : index
    %13 = vector.load %arg2[%c0_4, %c0_5] : memref<256x128xf32, #tpu.memory_space<vmem>>, vector<256x128xf32>
    %cst_6 = arith.constant dense<0.000000e+00> : vector<8x128xf32>
    %14 = tpu.matmul %12, %13, %cst_6 {dimension_numbers = #tpu.dot_dimension_numbers<[1], [0], [0], [1], [0, 0, 1, 1], [], []>, precision = #tpu.contract_precision<fp32>} : vector<8x256xf32>, vector<256x128xf32>, vector<8x128xf32> -> vector<8x128xf32>
    %c0_7 = arith.constant 0 : index
    %c0_8 = arith.constant 0 : index
    %15 = vector.load %arg3[%c0_7, %c0_8] : memref<1x128xf32, #tpu.memory_space<vmem>>, vector<1x128xf32>
    %16 = vector.broadcast %15 : vector<1x128xf32> to vector<8x128xf32>
    %17 = arith.addf %14, %16 : vector<8x128xf32>
    %cst_9 = arith.constant 0.000000e+00 : f32
    %18 = vector.broadcast %cst_9 : f32 to vector<8x128xf32>
    %19 = arith.maximumf %17, %18 : vector<8x128xf32>
    %20 = vector.extract_strided_slice %19 {offsets = [0, 0], sizes = [4, 128], strides = [1, 1]} : vector<8x128xf32> to vector<4x128xf32>
    %21 = vector.extract_strided_slice %19 {offsets = [4, 0], sizes = [4, 128], strides = [1, 1]} : vector<8x128xf32> to vector<4x128xf32>
    %22 = tpu.concatenate %20, %21 in 1 : vector<4x128xf32>, vector<4x128xf32> -> vector<4x256xf32>
    %c0_10 = arith.constant 0 : index
    %c0_11 = arith.constant 0 : index
    %23 = vector.load %arg4[%c0_10, %c0_11] : memref<256x128xf32, #tpu.memory_space<vmem>>, vector<256x128xf32>
    %cst_12 = arith.constant dense<0.000000e+00> : vector<4x128xf32>
    %24 = tpu.matmul %22, %23, %cst_12 {dimension_numbers = #tpu.dot_dimension_numbers<[1], [0], [0], [1], [0, 0, 1, 1], [], []>, precision = #tpu.contract_precision<fp32>} : vector<4x256xf32>, vector<256x128xf32>, vector<4x128xf32> -> vector<4x128xf32>
    %c0_13 = arith.constant 0 : index
    %c0_14 = arith.constant 0 : index
    %25 = vector.load %arg5[%c0_13, %c0_14] : memref<1x128xf32, #tpu.memory_space<vmem>>, vector<1x128xf32>
    %26 = vector.broadcast %25 : vector<1x128xf32> to vector<4x128xf32>
    %27 = arith.addf %24, %26 : vector<4x128xf32>
    %c0_15 = arith.constant 0 : index
    %c0_16 = arith.constant 0 : index
    %28 = vector.load %arg6[%c0_15, %c0_16] : memref<4x128xf32, #tpu.memory_space<vmem>>, vector<4x128xf32>
    tpu.vector_store %arg6[%c0_15, %c0_16], %27 {strides = array<i32>} : memref<4x128xf32, #tpu.memory_space<vmem>>, vector<4x128xf32>,
    return
  }
}

</mosaic_0001>

<bundles_post_ra>
// kernel: tpu_custom_call.1
= control target key start
LH: loop header
LB: loop body
LE: loop exit
PB: predicated region body
PF: predicated region fallthrough
CT: control target
= control target key end

     0   :  { %11 = vsyncpa [#allocation3], 0  ;;  %s9212_s0 = inlined_call_operand.hbm [shape: f32[4,256], index: 0, kind: input, shape index: {}]   ;;  %s9213_s1 = inlined_call_operand.hbm [shape: f32[256,512], index: 1, kind: input, shape index: {}]   ;;  %s9214_s2 = inlined_call_operand.hbm [shape: f32[256,128], index: 2, kind: input, shape index: {}]   ;;  %s9215_s3 = inlined_call_operand.vmem [shape: f32[1,128], index: 3, kind: input, shape index: {}]   ;;  %s9216_s4 = inlined_call_operand.hbm [shape: f32[256,128], index: 4, kind: input, shape index: {}]   ;;  %s9217_s5 = inlined_call_operand.vmem [shape: f32[1,128], index: 5, kind: input, shape index: {}]   ;;  %s9218_s6 = inlined_call_operand.hbm [shape: f32[4,128], index: 6, kind: output, shape index: {}]  }
   0x1   :  { %12 = vsyncpa [#allocation6], 0 }
   0x2   :  { %13 = vsyncpa [#allocation9], 0 }
   0x3   :  { %14 = vsyncpa [#allocation4], 0  ;;  %s6367_s21 = smov [#allocation5]   ;;  %s6249_s25 = scalar_lea.hbm %s9213_s1, 16384 }
   0x4   :  { %s30_s22 = sshll.u32 %s6367_s21, 4  ;;  %p6250_p0 = scmp.ne.s32.totalorder %s9213_s1, %s6249_s25  ;;  %s31_s22 = int_to_ptr.vmem [resolvable:$true] %s30_s22 }
   0x5   :  { %p6253_p1 = scmp.lt.u32.totalorder %s6249_s25, %s9213_s1 }
   0x7   :  { %p6255_p2 = pnand %p6253_p1, %p6250_p0 }
   0x9   :  { %6258 = shalt.err (!%p6255_p2)
}
   0xa   :  { %s6259_s30 = scalar_lea.vmem %s31_s22, 16384  ;;  %p6264_p4 = scmp.lt.s32.totalorder %s31_s22, %s31_s22 }
   0xb   :  { %p6260_p3 = scmp.ne.s32.totalorder %s31_s22, %s6259_s30  ;;  %p6265_p5 = scmp.lt.s32.totalorder %s6259_s30, %s6259_s30 }
   0xd   :  { %p6266_p6 = por %p6265_p5, %p6264_p4 }
   0xf   :  { %p6267_p7 = pnand %p6266_p6, %p6260_p3 }
  0x11   :  { %6270 = shalt.err (!%p6267_p7)
}
  0x12   :  { %s6368_s7 = smov 512   ;;  %s6369_s8 = smov 32  }
  0x13   :  { %36 = dma.hbm_to_vmem [thread:$0]  %s9213_s1, 16384, %s31_s22, [#allocation6], %s6368_s7, %s6368_s7, %s6369_s8  }
  0x14   :  { %s6370_s11 = smov [#allocation2]   ;;  %s6371_s13 = smov [#allocation7]  }
  0x15   :  { %s21_s12 = sshll.u32 %s6370_s11, 4  ;;  %s42_s14 = sshll.u32 %s6371_s13, 4  ;;  %s22_s12 = int_to_ptr.vmem [resolvable:$true] %s21_s12  ;;  %s43_s14 = int_to_ptr.vmem [resolvable:$true] %s42_s14 }
  0x16   :  { %s6271_s17 = scalar_lea.hbm %s9212_s0, 128 }
  0x17   :  { %p6272_p8 = scmp.ne.s32.totalorder %s9212_s0, %s6271_s17  ;;  %p6275_p9 = scmp.lt.u32.totalorder %s6271_s17, %s9212_s0 }
  0x19   :  { %p6277_p10 = pnand %p6275_p9, %p6272_p8 }
  0x1b   :  { %6280 = shalt.err (!%p6277_p10)
}
  0x1c   :  { %s6281_s1 = scalar_lea.vmem %s22_s12, 128  ;;  %p6286_p12 = scmp.lt.s32.totalorder %s22_s12, %s22_s12 }
  0x1d   :  { %p6282_p11 = scmp.ne.s32.totalorder %s22_s12, %s6281_s1  ;;  %p6287_p13 = scmp.lt.s32.totalorder %s6281_s1, %s6281_s1 }
  0x1f   :  { %p6288_p0 = por %p6287_p13, %p6286_p12 }
  0x21   :  { %p6289_p1 = pnand %p6288_p0, %p6282_p11 }
  0x23   :  { %6292 = shalt.err (!%p6289_p1)
}
  0x24   :  { %24 = dma.hbm_to_vmem [thread:$0]  %s9212_s0, 128, %s22_s12, [#allocation3]  }
  0x25   :  { %s6293_s26 = scalar_lea.hbm %s9214_s2, 4096 }
  0x26   :  { %p6294_p2 = scmp.ne.s32.totalorder %s9214_s2, %s6293_s26  ;;  %p6297_p3 = scmp.lt.u32.totalorder %s6293_s26, %s9214_s2 }
  0x28   :  { %p6299_p4 = pnand %p6297_p3, %p6294_p2 }
  0x2a   :  { %6302 = shalt.err (!%p6299_p4)
}
  0x2b   :  { %s6303_s7 = scalar_lea.vmem %s43_s14, 4096  ;;  %p6308_p6 = scmp.lt.s32.totalorder %s43_s14, %s43_s14 }
  0x2c   :  { %p6304_p5 = scmp.ne.s32.totalorder %s43_s14, %s6303_s7  ;;  %p6309_p7 = scmp.lt.s32.totalorder %s6303_s7, %s6303_s7 }
  0x2e   :  { %p6310_p8 = por %p6309_p7, %p6308_p6 }
  0x30   :  { %p6311_p9 = pnand %p6310_p8, %p6304_p5 }
  0x32   :  { %6314 = shalt.err (!%p6311_p9)
}
  0x33   :  { %s6372_s0 = smov 128   ;;  %s6373_s8 = smov 8  }
  0x34   :  { %48 = dma.hbm_to_vmem [thread:$0]  %s9214_s2, 4096, %s43_s14, [#allocation6], %s6372_s0, %s6372_s0, %s6373_s8  }
  0x35   :  { %s6374_s11 = smov [#allocation8]   ;;  %s6315_s16 = scalar_lea.hbm %s9216_s4, 4096 }
  0x36   :  { %s56_s12 = sshll.u32 %s6374_s11, 4  ;;  %p6316_p10 = scmp.ne.s32.totalorder %s9216_s4, %s6315_s16  ;;  %s57_s12 = int_to_ptr.vmem [resolvable:$true] %s56_s12 }
  0x37   :  { %p6319_p11 = scmp.lt.u32.totalorder %s6315_s16, %s9216_s4 }
  0x39   :  { %p6321_p12 = pnand %p6319_p11, %p6316_p10 }
  0x3b   :  { %6324 = shalt.err (!%p6321_p12)
}
  0x3c   :  { %s6325_s21 = scalar_lea.vmem %s57_s12, 4096  ;;  %p6330_p0 = scmp.lt.s32.totalorder %s57_s12, %s57_s12 }
  0x3d   :  { %p6326_p13 = scmp.ne.s32.totalorder %s57_s12, %s6325_s21  ;;  %p6331_p1 = scmp.lt.s32.totalorder %s6325_s21, %s6325_s21 }
  0x3f   :  { %p6332_p2 = por %p6331_p1, %p6330_p0 }
  0x41   :  { %p6333_p3 = pnand %p6332_p2, %p6326_p13 }
  0x43   :  { %6336 = shalt.err (!%p6333_p3)
}
  0x44   :  { %62 = dma.hbm_to_vmem [thread:$0]  %s9216_s4, 4096, %s57_s12, [#allocation9], %s6372_s0, %s6372_s0, %s6373_s8  }
  0x45   :  { %6359 = dma.done.wait [#allocation3], 128  }
  0x46   :  { %6360 = vsyncadd [#allocation3], 4294967168 }
  0x47   :  { %6361 = dma.done.wait [#allocation6], 20480  }
  0x48   :  { %6362 = vsyncadd [#allocation6], 4294946816 }
  0x49   :  { %6363 = dma.done.wait [#allocation9], 4096  }
  0x4a   :  { %6364 = vsyncadd [#allocation9], 4294963200  ;;  %v79_v0 = vld [vmem:[#allocation5 + $0x8] sm:$0xff]  ;;  %v81_v2 = vld [vmem:[#allocation5 + $0x18] sm:$0xff]  ;;  %vm2809_vm4 = vcmask 1043456   ;;  %s6375_s23 = smov [#allocation10]  }
  0x4b   :  { %v83_v1 = vld [vmem:[#allocation5 + $0x28] sm:$0xff]  ;;  %v209_v3 = vand.u32 4294901760, %v79_v0  ;;  %v85_v5 = vld [vmem:[#allocation5 + $0x38] sm:$0xff]  ;;  %v1493_v6 = vand.u32 4294901760, %v81_v2  ;;  %v78_v7 = vld [vmem:[#allocation5] sm:$0xff] }
  0x4c   :  { %v213_v4 = vand.u32 4294901760, %v83_v1  ;;  %v82_v8 = vld [vmem:[#allocation5 + $0x20] sm:$0xff]  ;;  %v1497_v9 = vand.u32 4294901760, %v85_v5  ;;  %v211_v10 = vand.u32 4294901760, %v78_v7  ;;  %v80_v12 = vld [vmem:[#allocation5 + $0x10] sm:$0xff]  ;;  %v87_v14 = vld [vmem:[#allocation5 + $0x48] sm:$0xff] }
  0x4d   :  { %v215_v11 = vand.u32 4294901760, %v82_v8  ;;  %v84_v13 = vld [vmem:[#allocation5 + $0x30] sm:$0xff]  ;;  %v6461_v16 = vsub.f32 %v79_v0, %v209_v3  ;;  %v6465_v18 = vsub.f32 %v81_v2, %v1493_v6  ;;  %v91_v19 = vld [vmem:[#allocation5 + $0x68] sm:$0xff]  ;;  %v89_v20 = vld [vmem:[#allocation5 + $0x58] sm:$0xff]  ;;  %v1495_v28 = vand.u32 4294901760, %v80_v12 }
  0x4e   :  { %v6459_v15 = vpack.c.bf16 %v213_v4, %v209_v3  ;;  %v6463_v17 = vsub.f32 %v83_v1, %v213_v4  ;;  %v93_v21 = vld [vmem:[#allocation5 + $0x78] sm:$0xff]  ;;  %v6467_v22 = vpack.c.bf16 %v1497_v9, %v1493_v6  ;;  %v6469_v23 = vsub.f32 %v85_v5, %v1497_v9  ;;  %v86_v26 = vld [vmem:[#allocation5 + $0x40] sm:$0xff]  ;;  %v88_v36 = vld [vmem:[#allocation5 + $0x50] sm:$0xff] }
  0x4f   :  { %9807 = vst [vmem:[#allocation16_spill] sm:$0xff] %v6461_v16  ;;  %9809 = vst [vmem:[#allocation18_spill] sm:$0xff] %v6465_v18  ;;  %v6471_v24 = vpack.c.bf16 %v215_v11, %v211_v10  ;;  %v6473_v25 = vsub.f32 %v78_v7, %v211_v10  ;;  %v6476_v27 = vsub.f32 %v82_v8, %v215_v11  ;;  %v1499_v29 = vand.u32 4294901760, %v84_v13  ;;  %v90_v31 = vld [vmem:[#allocation5 + $0x60] sm:$0xff]  ;;  %v92_v37 = vld [vmem:[#allocation5 + $0x70] sm:$0xff] }
  0x50   :  { %9806 = vst [vmem:[#allocation15_spill] sm:$0xff] %v6459_v15  ;;  %9808 = vst [vmem:[#allocation17_spill] sm:$0xff] %v6463_v17  ;;  %5059 = vmatprep.subr.bf16.mxu0 %v6459_v15  ;;  %v217_v30 = vand.u32 4294901760, %v87_v14  ;;  %5443 = vmatprep.subr.bf16.mxu1 %v6467_v22  ;;  %v221_v32 = vand.u32 4294901760, %v91_v19  ;;  %v1501_v33 = vand.u32 4294901760, %v89_v20  ;;  %v1505_v34 = vand.u32 4294901760, %v93_v21 }
  0x51   :  { %9810 = vst [vmem:[#allocation19_spill] sm:$0xff] %v6467_v22  ;;  %9811 = vst [vmem:[#allocation20_spill] sm:$0xff] %v6469_v23  ;;  %5061 = vmatpush1.bf16.msra.mxu0 %v6471_v24  ;;  %v219_v35 = vand.u32 4294901760, %v86_v26  ;;  %v6480_v38 = vpack.c.bf16 %v1499_v29, %v1495_v28  ;;  %v6482_v39 = vsub.f32 %v80_v12, %v1495_v28  ;;  %v95_v42 = vld [vmem:[#allocation5 + $0x88] sm:$0xff]  ;;  %v97_v44 = vld [vmem:[#allocation5 + $0x98] sm:$0xff]  ;;  %v223_v51 = vand.u32 4294901760, %v90_v31 }
  0x52   :  { %9812 = vst [vmem:[#allocation21_spill] sm:$0xff] %v6471_v24  ;;  %9813 = vst [vmem:[#allocation22_spill] sm:$0xff] %v6473_v25  ;;  %v6484_v40 = vsub.f32 %v84_v13, %v1499_v29  ;;  %v6486_v41 = vsub.f32 %v87_v14, %v217_v30  ;;  %v99_v43 = vld [vmem:[#allocation5 + $0xa8] sm:$0xff]  ;;  %v6488_v45 = vpack.c.bf16 %v221_v32, %v217_v30  ;;  %v101_v49 = vld [vmem:[#allocation5 + $0xb8] sm:$0xff]  ;;  %v1503_v53 = vand.u32 4294901760, %v88_v36 }
  0x53   :  { %9814 = vst [vmem:[#allocation23_spill] sm:$0xff] %v6476_v27  ;;  %9815 = vst [vmem:[#allocation24_spill] sm:$0xff] %v6480_v38  ;;  %v6490_v46 = vsub.f32 %v91_v19, %v221_v32  ;;  %v6492_v47 = vpack.c.bf16 %v1505_v34, %v1501_v33  ;;  %v6494_v48 = vsub.f32 %v89_v20, %v1501_v33  ;;  %5445 = vmatpush1.bf16.msra.mxu1 %v6480_v38  ;;  %v94_v58 = vld [vmem:[#allocation5 + $0x80] sm:$0xff]  ;;  %v96_v0 = vld [vmem:[#allocation5 + $0x90] sm:$0xff] }
  0x54   :  { %9816 = vst [vmem:[#allocation25_spill] sm:$0xff] %v6482_v39  ;;  %9817 = vst [vmem:[#allocation26_spill] sm:$0xff] %v6484_v40  ;;  %v6497_v50 = vsub.f32 %v93_v21, %v1505_v34  ;;  %v6499_v52 = vsub.f32 %v86_v26, %v219_v35  ;;  %5063 = vmatprep.subr.bf16.mxu0 %v6488_v45  ;;  %v1507_v54 = vand.u32 4294901760, %v92_v37  ;;  %v225_v55 = vand.u32 4294901760, %v95_v42  ;;  %v98_v59 = vld [vmem:[#allocation5 + $0xa0] sm:$0xff]  ;;  %v100_v1 = vld [vmem:[#allocation5 + $0xb0] sm:$0xff] }
  0x55   :  { %9818 = vst [vmem:[#allocation27_spill] sm:$0xff] %v6486_v41  ;;  %9819 = vst [vmem:[#allocation28_spill] sm:$0xff] %v6488_v45  ;;  %5447 = vmatprep.subr.bf16.mxu1 %v6492_v47  ;;  %v229_v56 = vand.u32 4294901760, %v99_v43  ;;  %v1509_v57 = vand.u32 4294901760, %v97_v44  ;;  %v6503_v60 = vpack.c.bf16 %v223_v51, %v219_v35  ;;  %v6505_v61 = vsub.f32 %v90_v31, %v223_v51  ;;  %v103_v2 = vld [vmem:[#allocation5 + $0xc8] sm:$0xff]  ;;  %v105_v8 = vld [vmem:[#allocation5 + $0xd8] sm:$0xff] }
  0x56   :  { %9820 = vst [vmem:[#allocation29_spill] sm:$0xff] %v6490_v46  ;;  %9821 = vst [vmem:[#allocation30_spill] sm:$0xff] %v6492_v47  ;;  %v6507_v62 = vsub.f32 %v88_v36, %v1503_v53  ;;  %v1513_v63 = vand.u32 4294901760, %v101_v49  ;;  %v6509_v3 = vpack.c.bf16 %v1507_v54, %v1503_v53  ;;  %v6511_v4 = vsub.f32 %v92_v37, %v1507_v54  ;;  %v107_v7 = vld [vmem:[#allocation5 + $0xe8] sm:$0xff]  ;;  %v109_v9 = vld [vmem:[#allocation5 + $0xf8] sm:$0xff] }
  0x57   :  { %9822 = vst [vmem:[#allocation31_spill] sm:$0xff] %v6494_v48  ;;  %9823 = vst [vmem:[#allocation32_spill] sm:$0xff] %v6497_v50  ;;  %v6513_v5 = vpack.c.bf16 %v229_v56, %v225_v55  ;;  %v6515_v6 = vsub.f32 %v95_v42, %v225_v55  ;;  %5065 = vmatpush1.bf16.msra.mxu0 %v6503_v60  ;;  %v6518_v10 = vsub.f32 %v99_v43, %v229_v56  ;;  %v102_v31 = vld [vmem:[#allocation5 + $0xc0] sm:$0xff]  ;;  %v104_v37 = vld [vmem:[#allocation5 + $0xd0] sm:$0xff] }
  0x58   :  { %9824 = vst [vmem:[#allocation33_spill] sm:$0xff] %v6499_v52  ;;  %9825 = vst [vmem:[#allocation34_spill] sm:$0xff] %v6503_v60  ;;  %v6520_v11 = vpack.c.bf16 %v1513_v63, %v1509_v57  ;;  %v6522_v12 = vsub.f32 %v97_v44, %v1509_v57  ;;  %v6524_v13 = vsub.f32 %v101_v49, %v1513_v63  ;;  %5449 = vmatpush1.bf16.msra.mxu1 %v6509_v3  ;;  %v106_v36 = vld [vmem:[#allocation5 + $0xe0] sm:$0xff]  ;;  %v108_v42 = vld [vmem:[#allocation5 + $0xf0] sm:$0xff] }
  0x59   :  { %9826 = vst [vmem:[#allocation35_spill] sm:$0xff] %v6505_v61  ;;  %9827 = vst [vmem:[#allocation36_spill] sm:$0xff] %v6507_v62  ;;  %5067 = vmatprep.subr.bf16.mxu0 %v6513_v5  ;;  %v227_v14 = vand.u32 4294901760, %v94_v58  ;;  %v231_v19 = vand.u32 4294901760, %v98_v59  ;;  %v1511_v20 = vand.u32 4294901760, %v96_v0  ;;  %v1515_v21 = vand.u32 4294901760, %v100_v1 }
  0x5a   :  { %9828 = vst [vmem:[#allocation37_spill] sm:$0xff] %v6509_v3  ;;  %9829 = vst [vmem:[#allocation38_spill] sm:$0xff] %v6511_v4  ;;  %5451 = vmatprep.subr.bf16.mxu1 %v6520_v11  ;;  %v233_v26 = vand.u32 4294901760, %v103_v2  ;;  %v237_v28 = vand.u32 4294901760, %v107_v7  ;;  %v1517_v29 = vand.u32 4294901760, %v105_v8  ;;  %v1521_v30 = vand.u32 4294901760, %v109_v9 }
  0x5b   :  { %9830 = vst [vmem:[#allocation39_spill] sm:$0xff] %v6513_v5  ;;  %9831 = vst [vmem:[#allocation40_spill] sm:$0xff] %v6515_v6  ;;  %v6529_v32 = vpack.c.bf16 %v231_v19, %v227_v14  ;;  %v6531_v33 = vsub.f32 %v94_v58, %v227_v14  ;;  %v6533_v34 = vsub.f32 %v98_v59, %v231_v19  ;;  %v111_v53 = vld [vmem:[#allocation5 + $0x108] sm:$0xff]  ;;  %v113_v55 = vld [vmem:[#allocation5 + $0x118] sm:$0xff]  ;;  %v235_v59 = vand.u32 4294901760, %v102_v31 }
  0x5c   :  { %9832 = vst [vmem:[#allocation41_spill] sm:$0xff] %v6518_v10  ;;  %9833 = vst [vmem:[#allocation42_spill] sm:$0xff] %v6520_v11  ;;  %v6535_v35 = vpack.c.bf16 %v1515_v21, %v1511_v20  ;;  %v6537_v43 = vsub.f32 %v96_v0, %v1511_v20  ;;  %v6539_v44 = vsub.f32 %v100_v1, %v1515_v21  ;;  %v115_v54 = vld [vmem:[#allocation5 + $0x128] sm:$0xff]  ;;  %v239_v0 = vand.u32 4294901760, %v106_v36  ;;  %v117_v14 = vld [vmem:[#allocation5 + $0x138] sm:$0xff] }
  0x5d   :  { %9834 = vst [vmem:[#allocation43_spill] sm:$0xff] %v6522_v12  ;;  %9835 = vst [vmem:[#allocation44_spill] sm:$0xff] %v6524_v13  ;;  %v6541_v49 = vpack.c.bf16 %v237_v28, %v233_v26  ;;  %v6543_v51 = vsub.f32 %v103_v2, %v233_v26  ;;  %5069 = vmatpush1.bf16.msra.mxu0 %v6529_v32  ;;  %v6547_v56 = vsub.f32 %v107_v7, %v237_v28  ;;  %v110_v26 = vld [vmem:[#allocation5 + $0x100] sm:$0xff]  ;;  %v123_v11 = vld [vmem:[#allocation5 + $0x168] sm:$0xff] }
  0x5e   :  { %9836 = vst [vmem:[#allocation45_spill] sm:$0xff] %v6529_v32  ;;  %9837 = vst [vmem:[#allocation46_spill] sm:$0xff] %v6531_v33  ;;  %5453 = vmatpush1.bf16.msra.mxu1 %v6535_v35  ;;  %v6549_v57 = vpack.c.bf16 %v1521_v30, %v1517_v29  ;;  %v6551_v58 = vsub.f32 %v105_v8, %v1517_v29  ;;  %v6554_v63 = vsub.f32 %v109_v9, %v1521_v30  ;;  %v114_v28 = vld [vmem:[#allocation5 + $0x120] sm:$0xff]  ;;  %v112_v8 = vld [vmem:[#allocation5 + $0x110] sm:$0xff] }
  0x5f   :  { %9838 = vst [vmem:[#allocation47_spill] sm:$0xff] %v6533_v34  ;;  %9839 = vst [vmem:[#allocation48_spill] sm:$0xff] %v6535_v35  ;;  %5071 = vmatprep.subr.bf16.mxu0 %v6541_v49  ;;  %v1519_v1 = vand.u32 4294901760, %v104_v37  ;;  %v1523_v2 = vand.u32 4294901760, %v108_v42  ;;  %v6557_v19 = vsub.f32 %v102_v31, %v235_v59  ;;  %v241_v20 = vand.u32 4294901760, %v111_v53  ;;  %v119_v32 = vld [vmem:[#allocation5 + $0x148] sm:$0xff] }
  0x60   :  { %9840 = vst [vmem:[#allocation49_spill] sm:$0xff] %v6537_v43  ;;  %9841 = vst [vmem:[#allocation50_spill] sm:$0xff] %v6539_v44  ;;  %5455 = vmatprep.subr.bf16.mxu1 %v6549_v57  ;;  %v245_v7 = vand.u32 4294901760, %v115_v54  ;;  %v1525_v21 = vand.u32 4294901760, %v113_v55  ;;  %v6559_v29 = vpack.c.bf16 %v239_v0, %v235_v59  ;;  %v6561_v35 = vsub.f32 %v106_v36, %v239_v0  ;;  %v121_v47 = vld [vmem:[#allocation5 + $0x158] sm:$0xff]  ;;  %v120_v38 = vld [vmem:[#allocation5 + $0x150] sm:$0xff] }
  0x61   :  { %9842 = vst [vmem:[#allocation51_spill] sm:$0xff] %v6541_v49  ;;  %9843 = vst [vmem:[#allocation52_spill] sm:$0xff] %v6543_v51  ;;  %v6563_v9 = vpack.c.bf16 %v1523_v2, %v1519_v1  ;;  %v6565_v30 = vsub.f32 %v104_v37, %v1519_v1  ;;  %v116_v49 = vld [vmem:[#allocation5 + $0x130] sm:$0xff]  ;;  %v6571_v3 = vsub.f32 %v111_v53, %v241_v20  ;;  %v1529_v36 = vand.u32 4294901760, %v117_v14  ;;  %v125_v53 = vld [vmem:[#allocation5 + $0x178] sm:$0xff] }
  0x62   :  { %9844 = vst [vmem:[#allocation53_spill] sm:$0xff] %v6547_v56  ;;  %9845 = vst [vmem:[#allocation54_spill] sm:$0xff] %v6549_v57  ;;  %v6567_v57 = vsub.f32 %v108_v42, %v1523_v2  ;;  %v6569_v31 = vpack.c.bf16 %v245_v7, %v241_v20  ;;  %v6573_v5 = vsub.f32 %v115_v54, %v245_v7  ;;  %5073 = vmatpush1.bf16.msra.mxu0 %v6559_v29  ;;  %v124_v15 = vld [vmem:[#allocation5 + $0x170] sm:$0xff] }
  0x63   :  { %9846 = vst [vmem:[#allocation55_spill] sm:$0xff] %v6551_v58  ;;  %9847 = vst [vmem:[#allocation56_spill] sm:$0xff] %v6554_v63  ;;  %5457 = vmatpush1.bf16.msra.mxu1 %v6563_v9  ;;  %v6577_v59 = vsub.f32 %v113_v55, %v1525_v21  ;;  %v243_v37 = vand.u32 4294901760, %v110_v26  ;;  %v247_v0 = vand.u32 4294901760, %v114_v28  ;;  %v1527_v1 = vand.u32 4294901760, %v112_v8  ;;  %v118_v55 = vld [vmem:[#allocation5 + $0x140] sm:$0xff] }
  0x64   :  { %9848 = vst [vmem:[#allocation57_spill] sm:$0xff] %v6557_v19  ;;  %9849 = vst [vmem:[#allocation58_spill] sm:$0xff] %v6559_v29  ;;  %5075 = vmatprep.subr.bf16.mxu0 %v6569_v31  ;;  %v1531_v42 = vand.u32 4294901760, %v116_v49  ;;  %v249_v2 = vand.u32 4294901760, %v119_v32  ;;  %v253_v60 = vand.u32 4294901760, %v123_v11  ;;  %v6580_v20 = vpack.c.bf16 %v1529_v36, %v1525_v21  ;;  %v122_v29 = vld [vmem:[#allocation5 + $0x160] sm:$0xff] }
  0x65   :  { %9850 = vst [vmem:[#allocation59_spill] sm:$0xff] %v6561_v35  ;;  %9851 = vst [vmem:[#allocation60_spill] sm:$0xff] %v6563_v9  ;;  %v6582_v54 = vsub.f32 %v117_v14, %v1529_v36  ;;  %v6584_v7 = vpack.c.bf16 %v247_v0, %v243_v37  ;;  %v6586_v9 = vsub.f32 %v110_v26, %v243_v37  ;;  %v127_v21 = vld [vmem:[#allocation5 + $0x188] sm:$0xff]  ;;  %v251_v37 = vand.u32 4294901760, %v118_v55 }
  0x66   :  { %9852 = vst [vmem:[#allocation61_spill] sm:$0xff] %v6565_v30  ;;  %9853 = vst [vmem:[#allocation62_spill] sm:$0xff] %v6567_v57  ;;  %v6588_v45 = vsub.f32 %v114_v28, %v247_v0  ;;  %v6592_v24 = vsub.f32 %v112_v8, %v1527_v1  ;;  %v6594_v22 = vsub.f32 %v116_v49, %v1531_v42  ;;  %5459 = vmatprep.subr.bf16.mxu1 %v6580_v20 }
  0x67   :  { %9854 = vst [vmem:[#allocation63_spill] sm:$0xff] %v6569_v31  ;;  %9855 = vst [vmem:[#allocation64_spill] sm:$0xff] %v6571_v3  ;;  %v6590_v31 = vpack.c.bf16 %v1531_v42, %v1527_v1  ;;  %5077 = vmatpush1.bf16.msra.mxu0 %v6584_v7  ;;  %v6598_v14 = vpack.c.bf16 %v253_v60, %v249_v2  ;;  %v6600_v26 = vsub.f32 %v119_v32, %v249_v2 }
  0x68   :  { %9856 = vst [vmem:[#allocation65_spill] sm:$0xff] %v6573_v5  ;;  %9857 = vst [vmem:[#allocation66_spill] sm:$0xff] %v6577_v59  ;;  %v131_v59 = vld [vmem:[#allocation5 + $0x1a8] sm:$0xff]  ;;  %v6602_v36 = vsub.f32 %v123_v11, %v253_v60  ;;  %v1533_v28 = vand.u32 4294901760, %v121_v47  ;;  %v1537_v8 = vand.u32 4294901760, %v125_v53  ;;  %v255_v49 = vand.u32 4294901760, %v122_v29 }
  0x69   :  { %9858 = vst [vmem:[#allocation67_spill] sm:$0xff] %v6580_v20  ;;  %9859 = vst [vmem:[#allocation68_spill] sm:$0xff] %v6582_v54  ;;  %5461 = vmatpush1.bf16.msra.mxu1 %v6590_v31  ;;  %v1535_v0 = vand.u32 4294901760, %v120_v38  ;;  %5079 = vmatprep.subr.bf16.mxu0 %v6598_v14  ;;  %v1539_v42 = vand.u32 4294901760, %v124_v15  ;;  %v257_v20 = vand.u32 4294901760, %v127_v21  ;;  %v6614_v2 = vsub.f32 %v118_v55, %v251_v37  ;;  %v139_v54 = vld [vmem:[#allocation5 + $0x1e8] sm:$0xff] }
  0x6a   :  { %9860 = vst [vmem:[#allocation69_spill] sm:$0xff] %v6584_v7  ;;  %9861 = vst [vmem:[#allocation70_spill] sm:$0xff] %v6586_v9  ;;  %v6606_v1 = vsub.f32 %v121_v47, %v1533_v28  ;;  %v261_v7 = vand.u32 4294901760, %v131_v59  ;;  %v6608_v32 = vpack.c.bf16 %v1537_v8, %v1533_v28  ;;  %v6610_v60 = vsub.f32 %v125_v53, %v1537_v8  ;;  %v132_v9 = vld [vmem:[#allocation5 + $0x1b0] sm:$0xff]  ;;  %v135_v28 = vld [vmem:[#allocation5 + $0x1c8] sm:$0xff] }
  0x6b   :  { %9862 = vst [vmem:[#allocation71_spill] sm:$0xff] %v6588_v45  ;;  %9863 = vst [vmem:[#allocation72_spill] sm:$0xff] %v6590_v31  ;;  %v6612_v11 = vpack.c.bf16 %v255_v49, %v251_v37  ;;  %v126_v31 = vld [vmem:[#allocation5 + $0x180] sm:$0xff]  ;;  %v6616_v45 = vsub.f32 %v122_v29, %v255_v49  ;;  %v6618_v47 = vpack.c.bf16 %v1539_v42, %v1535_v0 }
  0x6c   :  { %9864 = vst [vmem:[#allocation73_spill] sm:$0xff] %v6592_v24  ;;  %9865 = vst [vmem:[#allocation74_spill] sm:$0xff] %v6594_v22  ;;  %v129_v22 = vld [vmem:[#allocation5 + $0x198] sm:$0xff]  ;;  %5463 = vmatprep.subr.bf16.mxu1 %v6608_v32  ;;  %v6626_v53 = vpack.c.bf16 %v261_v7, %v257_v20  ;;  %v6628_v55 = vsub.f32 %v127_v21, %v257_v20  ;;  %v6630_v8 = vsub.f32 %v131_v59, %v261_v7 }
  0x6d   :  { %9866 = vst [vmem:[#allocation75_spill] sm:$0xff] %v6598_v14  ;;  %9867 = vst [vmem:[#allocation76_spill] sm:$0xff] %v6600_v26  ;;  %v133_v24 = vld [vmem:[#allocation5 + $0x1b8] sm:$0xff]  ;;  %v128_v26 = vld [vmem:[#allocation5 + $0x190] sm:$0xff]  ;;  %v6620_v14 = vsub.f32 %v120_v38, %v1535_v0  ;;  %5081 = vmatpush1.bf16.msra.mxu0 %v6612_v11  ;;  %v1541_v29 = vand.u32 4294901760, %v129_v22  ;;  %5465 = vmatpush1.bf16.msra.mxu1 %v6618_v47  ;;  %v259_v37 = vand.u32 4294901760, %v126_v31 }
  0x6e   :  { %9868 = vst [vmem:[#allocation77_spill] sm:$0xff] %v6602_v36  ;;  %9869 = vst [vmem:[#allocation78_spill] sm:$0xff] %v6606_v1  ;;  %v130_v36 = vld [vmem:[#allocation5 + $0x1a0] sm:$0xff]  ;;  %v6622_v1 = vsub.f32 %v124_v15, %v1539_v42  ;;  %v1545_v38 = vand.u32 4294901760, %v133_v24  ;;  %v1543_v49 = vand.u32 4294901760, %v128_v26  ;;  %5083 = vmatprep.subr.bf16.mxu0 %v6626_v53  ;;  %v1547_v42 = vand.u32 4294901760, %v132_v9 }
  0x6f   :  { %9870 = vst [vmem:[#allocation79_spill] sm:$0xff] %v6608_v32  ;;  %9871 = vst [vmem:[#allocation80_spill] sm:$0xff] %v6610_v60  ;;  %v263_v15 = vand.u32 4294901760, %v130_v36  ;;  %v6634_v0 = vsub.f32 %v129_v22, %v1541_v29  ;;  %v265_v32 = vand.u32 4294901760, %v135_v28  ;;  %v6642_v21 = vsub.f32 %v126_v31, %v259_v37  ;;  %v147_v60 = vld [vmem:[#allocation5 + $0x228] sm:$0xff] }
  0x70   :  { %9872 = vst [vmem:[#allocation81_spill] sm:$0xff] %v6612_v11  ;;  %9873 = vst [vmem:[#allocation82_spill] sm:$0xff] %v6614_v2  ;;  %v269_v11 = vand.u32 4294901760, %v139_v54  ;;  %v6636_v20 = vpack.c.bf16 %v1545_v38, %v1541_v29  ;;  %v6638_v59 = vsub.f32 %v133_v24, %v1545_v38  ;;  %v6646_v22 = vpack.c.bf16 %v1547_v42, %v1543_v49  ;;  %v140_v2 = vld [vmem:[#allocation5 + $0x1f0] sm:$0xff]  ;;  %v143_v29 = vld [vmem:[#allocation5 + $0x208] sm:$0xff] }
  0x71   :  { %9874 = vst [vmem:[#allocation83_spill] sm:$0xff] %v6616_v45  ;;  %9875 = vst [vmem:[#allocation84_spill] sm:$0xff] %v6618_v47  ;;  %v6640_v7 = vpack.c.bf16 %v263_v15, %v259_v37  ;;  %v134_v47 = vld [vmem:[#allocation5 + $0x1c0] sm:$0xff]  ;;  %v6644_v45 = vsub.f32 %v130_v36, %v263_v15  ;;  %v6656_v31 = vsub.f32 %v135_v28, %v265_v32 }
  0x72   :  { %9876 = vst [vmem:[#allocation85_spill] sm:$0xff] %v6620_v14  ;;  %9877 = vst [vmem:[#allocation86_spill] sm:$0xff] %v6622_v1  ;;  %v137_v1 = vld [vmem:[#allocation5 + $0x1d8] sm:$0xff]  ;;  %5467 = vmatprep.subr.bf16.mxu1 %v6636_v20  ;;  %v6654_v24 = vpack.c.bf16 %v269_v11, %v265_v32  ;;  %v6658_v38 = vsub.f32 %v139_v54, %v269_v11  ;;  %v267_v37 = vand.u32 4294901760, %v134_v47 }
  0x73   :  { %9878 = vst [vmem:[#allocation87_spill] sm:$0xff] %v6626_v53  ;;  %9879 = vst [vmem:[#allocation88_spill] sm:$0xff] %v6628_v55  ;;  %v141_v14 = vld [vmem:[#allocation5 + $0x1f8] sm:$0xff]  ;;  %v136_v55 = vld [vmem:[#allocation5 + $0x1d0] sm:$0xff]  ;;  %v6648_v53 = vsub.f32 %v128_v26, %v1543_v49  ;;  %5085 = vmatpush1.bf16.msra.mxu0 %v6640_v7  ;;  %v1549_v36 = vand.u32 4294901760, %v137_v1  ;;  %5469 = vmatpush1.bf16.msra.mxu1 %v6646_v22 }
  0x74   :  { %9880 = vst [vmem:[#allocation89_spill] sm:$0xff] %v6630_v8  ;;  %9881 = vst [vmem:[#allocation90_spill] sm:$0xff] %v6634_v0  ;;  %v138_v8 = vld [vmem:[#allocation5 + $0x1e0] sm:$0xff]  ;;  %v6650_v0 = vsub.f32 %v132_v9, %v1547_v42  ;;  %v1553_v26 = vand.u32 4294901760, %v141_v14  ;;  %v1551_v15 = vand.u32 4294901760, %v136_v55  ;;  %5087 = vmatprep.subr.bf16.mxu0 %v6654_v24  ;;  %v1555_v42 = vand.u32 4294901760, %v140_v2 }
  0x75   :  { %9882 = vst [vmem:[#allocation91_spill] sm:$0xff] %v6636_v20  ;;  %9883 = vst [vmem:[#allocation92_spill] sm:$0xff] %v6638_v59  ;;  %v271_v9 = vand.u32 4294901760, %v138_v8  ;;  %v6662_v49 = vsub.f32 %v137_v1, %v1549_v36  ;;  %v273_v20 = vand.u32 4294901760, %v143_v29  ;;  %v6670_v28 = vsub.f32 %v134_v47, %v267_v37  ;;  %v155_v59 = vld [vmem:[#allocation5 + $0x268] sm:$0xff] }
  0x76   :  { %9884 = vst [vmem:[#allocation93_spill] sm:$0xff] %v6640_v7  ;;  %9885 = vst [vmem:[#allocation94_spill] sm:$0xff] %v6642_v21  ;;  %v277_v7 = vand.u32 4294901760, %v147_v60  ;;  %v6664_v32 = vpack.c.bf16 %v1553_v26, %v1549_v36  ;;  %v6666_v54 = vsub.f32 %v141_v14, %v1553_v26  ;;  %v6674_v1 = vpack.c.bf16 %v1555_v42, %v1551_v15  ;;  %v148_v21 = vld [vmem:[#allocation5 + $0x230] sm:$0xff]  ;;  %v151_v36 = vld [vmem:[#allocation5 + $0x248] sm:$0xff] }
  0x77   :  { %9886 = vst [vmem:[#allocation95_spill] sm:$0xff] %v6644_v45  ;;  %9887 = vst [vmem:[#allocation96_spill] sm:$0xff] %v6646_v22  ;;  %v6668_v11 = vpack.c.bf16 %v271_v9, %v267_v37  ;;  %v142_v22 = vld [vmem:[#allocation5 + $0x200] sm:$0xff]  ;;  %v6672_v45 = vsub.f32 %v138_v8, %v271_v9  ;;  %v6684_v47 = vsub.f32 %v143_v29, %v273_v20 }
  0x78   :  { %9888 = vst [vmem:[#allocation97_spill] sm:$0xff] %v6648_v53  ;;  %9889 = vst [vmem:[#allocation98_spill] sm:$0xff] %v6650_v0  ;;  %v145_v0 = vld [vmem:[#allocation5 + $0x218] sm:$0xff]  ;;  %5471 = vmatprep.subr.bf16.mxu1 %v6664_v32  ;;  %v6682_v14 = vpack.c.bf16 %v277_v7, %v273_v20  ;;  %v6686_v26 = vsub.f32 %v147_v60, %v277_v7  ;;  %v275_v37 = vand.u32 4294901760, %v142_v22 }
  0x79   :  { %9890 = vst [vmem:[#allocation99_spill] sm:$0xff] %v6654_v24  ;;  %9891 = vst [vmem:[#allocation100_spill] sm:$0xff] %v6656_v31  ;;  %v149_v53 = vld [vmem:[#allocation5 + $0x238] sm:$0xff]  ;;  %v144_v31 = vld [vmem:[#allocation5 + $0x210] sm:$0xff]  ;;  %v6676_v24 = vsub.f32 %v136_v55, %v1551_v15  ;;  %5089 = vmatpush1.bf16.msra.mxu0 %v6668_v11  ;;  %v1557_v8 = vand.u32 4294901760, %v145_v0  ;;  %5473 = vmatpush1.bf16.msra.mxu1 %v6674_v1 }
  0x7a   :  { %9892 = vst [vmem:[#allocation101_spill] sm:$0xff] %v6658_v38  ;;  %9893 = vst [vmem:[#allocation102_spill] sm:$0xff] %v6662_v49  ;;  %v146_v38 = vld [vmem:[#allocation5 + $0x220] sm:$0xff]  ;;  %v6678_v49 = vsub.f32 %v140_v2, %v1555_v42  ;;  %v1561_v55 = vand.u32 4294901760, %v149_v53  ;;  %v1559_v9 = vand.u32 4294901760, %v144_v31  ;;  %5091 = vmatprep.subr.bf16.mxu0 %v6682_v14  ;;  %v1563_v42 = vand.u32 4294901760, %v148_v21 }
  0x7b   :  { %9894 = vst [vmem:[#allocation103_spill] sm:$0xff] %v6664_v32  ;;  %9895 = vst [vmem:[#allocation104_spill] sm:$0xff] %v6666_v54  ;;  %v279_v2 = vand.u32 4294901760, %v146_v38  ;;  %v6690_v15 = vsub.f32 %v145_v0, %v1557_v8  ;;  %v281_v32 = vand.u32 4294901760, %v151_v36  ;;  %v6698_v29 = vsub.f32 %v142_v22, %v275_v37  ;;  %v163_v54 = vld [vmem:[#allocation5 + $0x2a8] sm:$0xff] }
  0x7c   :  { %9896 = vst [vmem:[#allocation105_spill] sm:$0xff] %v6668_v11  ;;  %9897 = vst [vmem:[#allocation106_spill] sm:$0xff] %v6670_v28  ;;  %v285_v11 = vand.u32 4294901760, %v155_v59  ;;  %v6692_v20 = vpack.c.bf16 %v1561_v55, %v1557_v8  ;;  %v6694_v60 = vsub.f32 %v149_v53, %v1561_v55  ;;  %v6702_v0 = vpack.c.bf16 %v1563_v42, %v1559_v9  ;;  %v156_v28 = vld [vmem:[#allocation5 + $0x270] sm:$0xff]  ;;  %v159_v8 = vld [vmem:[#allocation5 + $0x288] sm:$0xff] }
  0x7d   :  { %9898 = vst [vmem:[#allocation107_spill] sm:$0xff] %v6672_v45  ;;  %9899 = vst [vmem:[#allocation108_spill] sm:$0xff] %v6674_v1  ;;  %v6696_v7 = vpack.c.bf16 %v279_v2, %v275_v37  ;;  %v150_v1 = vld [vmem:[#allocation5 + $0x240] sm:$0xff]  ;;  %v6700_v45 = vsub.f32 %v146_v38, %v279_v2  ;;  %v6712_v22 = vsub.f32 %v151_v36, %v281_v32 }
  0x7e   :  { %9900 = vst [vmem:[#allocation109_spill] sm:$0xff] %v6676_v24  ;;  %9901 = vst [vmem:[#allocation110_spill] sm:$0xff] %v6678_v49  ;;  %v153_v49 = vld [vmem:[#allocation5 + $0x258] sm:$0xff]  ;;  %5475 = vmatprep.subr.bf16.mxu1 %v6692_v20  ;;  %v6710_v53 = vpack.c.bf16 %v285_v11, %v281_v32  ;;  %v6714_v55 = vsub.f32 %v155_v59, %v285_v11  ;;  %v283_v37 = vand.u32 4294901760, %v150_v1 }
  0x7f   :  { %9902 = vst [vmem:[#allocation111_spill] sm:$0xff] %v6682_v14  ;;  %9903 = vst [vmem:[#allocation112_spill] sm:$0xff] %v6684_v47  ;;  %v157_v24 = vld [vmem:[#allocation5 + $0x278] sm:$0xff]  ;;  %v152_v47 = vld [vmem:[#allocation5 + $0x250] sm:$0xff]  ;;  %v6704_v14 = vsub.f32 %v144_v31, %v1559_v9  ;;  %5093 = vmatpush1.bf16.msra.mxu0 %v6696_v7  ;;  %v1565_v38 = vand.u32 4294901760, %v153_v49  ;;  %5477 = vmatpush1.bf16.msra.mxu1 %v6702_v0 }
  0x80   :  { %9904 = vst [vmem:[#allocation113_spill] sm:$0xff] %v6686_v26  ;;  %9905 = vst [vmem:[#allocation114_spill] sm:$0xff] %v6690_v15  ;;  %v154_v26 = vld [vmem:[#allocation5 + $0x260] sm:$0xff]  ;;  %v6706_v15 = vsub.f32 %v148_v21, %v1563_v42  ;;  %v1569_v31 = vand.u32 4294901760, %v157_v24  ;;  %v1567_v2 = vand.u32 4294901760, %v152_v47  ;;  %5095 = vmatprep.subr.bf16.mxu0 %v6710_v53  ;;  %v1571_v42 = vand.u32 4294901760, %v156_v28 }
  0x81   :  { %9906 = vst [vmem:[#allocation115_spill] sm:$0xff] %v6692_v20  ;;  %9907 = vst [vmem:[#allocation116_spill] sm:$0xff] %v6694_v60  ;;  %v287_v21 = vand.u32 4294901760, %v154_v26  ;;  %v6718_v9 = vsub.f32 %v153_v49, %v1565_v38  ;;  %v289_v20 = vand.u32 4294901760, %v159_v8  ;;  %v6726_v36 = vsub.f32 %v150_v1, %v283_v37  ;;  %v171_v60 = vld [vmem:[#allocation5 + $0x2e8] sm:$0xff] }
  0x82   :  { %9908 = vst [vmem:[#allocation117_spill] sm:$0xff] %v6696_v7  ;;  %9909 = vst [vmem:[#allocation118_spill] sm:$0xff] %v6698_v29  ;;  %v293_v7 = vand.u32 4294901760, %v163_v54  ;;  %v6720_v32 = vpack.c.bf16 %v1569_v31, %v1565_v38  ;;  %v6722_v59 = vsub.f32 %v157_v24, %v1569_v31  ;;  %v6730_v49 = vpack.c.bf16 %v1571_v42, %v1567_v2  ;;  %v164_v29 = vld [vmem:[#allocation5 + $0x2b0] sm:$0xff]  ;;  %v167_v38 = vld [vmem:[#allocation5 + $0x2c8] sm:$0xff] }
  0x83   :  { %9910 = vst [vmem:[#allocation119_spill] sm:$0xff] %v6700_v45  ;;  %9911 = vst [vmem:[#allocation120_spill] sm:$0xff] %v6702_v0  ;;  %v6724_v11 = vpack.c.bf16 %v287_v21, %v283_v37  ;;  %v158_v0 = vld [vmem:[#allocation5 + $0x280] sm:$0xff]  ;;  %v6728_v45 = vsub.f32 %v154_v26, %v287_v21  ;;  %v6740_v1 = vsub.f32 %v159_v8, %v289_v20 }
  0x84   :  { %9912 = vst [vmem:[#allocation121_spill] sm:$0xff] %v6704_v14  ;;  %9913 = vst [vmem:[#allocation122_spill] sm:$0xff] %v6706_v15  ;;  %v161_v15 = vld [vmem:[#allocation5 + $0x298] sm:$0xff]  ;;  %5479 = vmatprep.subr.bf16.mxu1 %v6720_v32  ;;  %v6738_v24 = vpack.c.bf16 %v293_v7, %v289_v20  ;;  %v6742_v31 = vsub.f32 %v163_v54, %v293_v7  ;;  %v291_v37 = vand.u32 4294901760, %v158_v0 }
  0x85   :  { %9914 = vst [vmem:[#allocation123_spill] sm:$0xff] %v6710_v53  ;;  %9915 = vst [vmem:[#allocation124_spill] sm:$0xff] %v6712_v22  ;;  %v165_v14 = vld [vmem:[#allocation5 + $0x2b8] sm:$0xff]  ;;  %v160_v22 = vld [vmem:[#allocation5 + $0x290] sm:$0xff]  ;;  %v6732_v53 = vsub.f32 %v152_v47, %v1567_v2  ;;  %5097 = vmatpush1.bf16.msra.mxu0 %v6724_v11  ;;  %v1573_v26 = vand.u32 4294901760, %v161_v15  ;;  %5481 = vmatpush1.bf16.msra.mxu1 %v6730_v49 }
  0x86   :  { %9916 = vst [vmem:[#allocation125_spill] sm:$0xff] %v6714_v55  ;;  %9917 = vst [vmem:[#allocation126_spill] sm:$0xff] %v6718_v9  ;;  %v162_v55 = vld [vmem:[#allocation5 + $0x2a0] sm:$0xff]  ;;  %v6734_v9 = vsub.f32 %v156_v28, %v1571_v42  ;;  %v1577_v47 = vand.u32 4294901760, %v165_v14  ;;  %v1575_v21 = vand.u32 4294901760, %v160_v22  ;;  %5099 = vmatprep.subr.bf16.mxu0 %v6738_v24  ;;  %v1579_v42 = vand.u32 4294901760, %v164_v29 }
  0x87   :  { %9918 = vst [vmem:[#allocation127_spill] sm:$0xff] %v6720_v32  ;;  %9919 = vst [vmem:[#allocation128_spill] sm:$0xff] %v6722_v59  ;;  %v295_v28 = vand.u32 4294901760, %v162_v55  ;;  %v6746_v2 = vsub.f32 %v161_v15, %v1573_v26  ;;  %v297_v32 = vand.u32 4294901760, %v167_v38  ;;  %v6754_v8 = vsub.f32 %v158_v0, %v291_v37  ;;  %v179_v59 = vld [vmem:[#allocation5 + $0x328] sm:$0xff] }
  0x88   :  { %9920 = vst [vmem:[#allocation129_spill] sm:$0xff] %v6724_v11  ;;  %9921 = vst [vmem:[#allocation130_spill] sm:$0xff] %v6726_v36  ;;  %v301_v11 = vand.u32 4294901760, %v171_v60  ;;  %v6748_v20 = vpack.c.bf16 %v1577_v47, %v1573_v26  ;;  %v6750_v54 = vsub.f32 %v165_v14, %v1577_v47  ;;  %v6758_v15 = vpack.c.bf16 %v1579_v42, %v1575_v21  ;;  %v172_v36 = vld [vmem:[#allocation5 + $0x2f0] sm:$0xff]  ;;  %v175_v26 = vld [vmem:[#allocation5 + $0x308] sm:$0xff] }
  0x89   :  { %9922 = vst [vmem:[#allocation131_spill] sm:$0xff] %v6728_v45  ;;  %9923 = vst [vmem:[#allocation132_spill] sm:$0xff] %v6730_v49  ;;  %v6752_v7 = vpack.c.bf16 %v295_v28, %v291_v37  ;;  %v166_v49 = vld [vmem:[#allocation5 + $0x2c0] sm:$0xff]  ;;  %v6756_v45 = vsub.f32 %v162_v55, %v295_v28  ;;  %v6768_v0 = vsub.f32 %v167_v38, %v297_v32 }
  0x8a   :  { %9924 = vst [vmem:[#allocation133_spill] sm:$0xff] %v6732_v53  ;;  %9925 = vst [vmem:[#allocation134_spill] sm:$0xff] %v6734_v9  ;;  %v169_v9 = vld [vmem:[#allocation5 + $0x2d8] sm:$0xff]  ;;  %5483 = vmatprep.subr.bf16.mxu1 %v6748_v20  ;;  %v6766_v14 = vpack.c.bf16 %v301_v11, %v297_v32  ;;  %v6770_v47 = vsub.f32 %v171_v60, %v301_v11  ;;  %v299_v37 = vand.u32 4294901760, %v166_v49 }
  0x8b   :  { %9926 = vst [vmem:[#allocation135_spill] sm:$0xff] %v6738_v24  ;;  %9927 = vst [vmem:[#allocation136_spill] sm:$0xff] %v6740_v1  ;;  %v173_v53 = vld [vmem:[#allocation5 + $0x2f8] sm:$0xff]  ;;  %v168_v1 = vld [vmem:[#allocation5 + $0x2d0] sm:$0xff]  ;;  %v6760_v24 = vsub.f32 %v160_v22, %v1575_v21  ;;  %5101 = vmatpush1.bf16.msra.mxu0 %v6752_v7  ;;  %v1581_v55 = vand.u32 4294901760, %v169_v9  ;;  %5485 = vmatpush1.bf16.msra.mxu1 %v6758_v15 }
  0x8c   :  { %9928 = vst [vmem:[#allocation137_spill] sm:$0xff] %v6742_v31  ;;  %9929 = vst [vmem:[#allocation138_spill] sm:$0xff] %v6746_v2  ;;  %v170_v31 = vld [vmem:[#allocation5 + $0x2e0] sm:$0xff]  ;;  %v6762_v2 = vsub.f32 %v164_v29, %v1579_v42  ;;  %v1585_v22 = vand.u32 4294901760, %v173_v53  ;;  %v1583_v28 = vand.u32 4294901760, %v168_v1  ;;  %5103 = vmatprep.subr.bf16.mxu0 %v6766_v14  ;;  %v1587_v42 = vand.u32 4294901760, %v172_v36 }
  0x8d   :  { %9930 = vst [vmem:[#allocation139_spill] sm:$0xff] %v6748_v20  ;;  %9931 = vst [vmem:[#allocation140_spill] sm:$0xff] %v6750_v54  ;;  %v303_v29 = vand.u32 4294901760, %v170_v31  ;;  %v6774_v21 = vsub.f32 %v169_v9, %v1581_v55  ;;  %v305_v20 = vand.u32 4294901760, %v175_v26  ;;  %v6782_v38 = vsub.f32 %v166_v49, %v299_v37  ;;  %v187_v54 = vld [vmem:[#allocation5 + $0x368] sm:$0xff] }
  0x8e   :  { %9932 = vst [vmem:[#allocation141_spill] sm:$0xff] %v6752_v7  ;;  %9933 = vst [vmem:[#allocation142_spill] sm:$0xff] %v6754_v8  ;;  %v309_v7 = vand.u32 4294901760, %v179_v59  ;;  %v6776_v32 = vpack.c.bf16 %v1585_v22, %v1581_v55  ;;  %v6778_v60 = vsub.f32 %v173_v53, %v1585_v22  ;;  %v6786_v9 = vpack.c.bf16 %v1587_v42, %v1583_v28  ;;  %v180_v8 = vld [vmem:[#allocation5 + $0x330] sm:$0xff]  ;;  %v183_v55 = vld [vmem:[#allocation5 + $0x348] sm:$0xff] }
  0x8f   :  { %9934 = vst [vmem:[#allocation143_spill] sm:$0xff] %v6756_v45  ;;  %9935 = vst [vmem:[#allocation144_spill] sm:$0xff] %v6758_v15  ;;  %v6780_v11 = vpack.c.bf16 %v303_v29, %v299_v37  ;;  %v174_v15 = vld [vmem:[#allocation5 + $0x300] sm:$0xff]  ;;  %v6784_v45 = vsub.f32 %v170_v31, %v303_v29  ;;  %v6796_v49 = vsub.f32 %v175_v26, %v305_v20 }
  0x90   :  { %9936 = vst [vmem:[#allocation145_spill] sm:$0xff] %v6760_v24  ;;  %9937 = vst [vmem:[#allocation146_spill] sm:$0xff] %v6762_v2  ;;  %v177_v2 = vld [vmem:[#allocation5 + $0x318] sm:$0xff]  ;;  %5487 = vmatprep.subr.bf16.mxu1 %v6776_v32  ;;  %v6794_v53 = vpack.c.bf16 %v309_v7, %v305_v20  ;;  %v6798_v22 = vsub.f32 %v179_v59, %v309_v7  ;;  %v307_v37 = vand.u32 4294901760, %v174_v15 }
  0x91   :  { %9938 = vst [vmem:[#allocation147_spill] sm:$0xff] %v6766_v14  ;;  %9939 = vst [vmem:[#allocation148_spill] sm:$0xff] %v6768_v0  ;;  %v181_v24 = vld [vmem:[#allocation5 + $0x338] sm:$0xff]  ;;  %v176_v0 = vld [vmem:[#allocation5 + $0x310] sm:$0xff]  ;;  %v6788_v14 = vsub.f32 %v168_v1, %v1583_v28  ;;  %5105 = vmatpush1.bf16.msra.mxu0 %v6780_v11  ;;  %v1589_v31 = vand.u32 4294901760, %v177_v2  ;;  %5489 = vmatpush1.bf16.msra.mxu1 %v6786_v9 }
  0x92   :  { %9940 = vst [vmem:[#allocation149_spill] sm:$0xff] %v6770_v47  ;;  %9941 = vst [vmem:[#allocation150_spill] sm:$0xff] %v6774_v21  ;;  %v178_v47 = vld [vmem:[#allocation5 + $0x320] sm:$0xff]  ;;  %v6790_v21 = vsub.f32 %v172_v36, %v1587_v42  ;;  %v1593_v1 = vand.u32 4294901760, %v181_v24  ;;  %v1591_v29 = vand.u32 4294901760, %v176_v0  ;;  %5107 = vmatprep.subr.bf16.mxu0 %v6794_v53  ;;  %v1595_v42 = vand.u32 4294901760, %v180_v8 }
  0x93   :  { %9942 = vst [vmem:[#allocation151_spill] sm:$0xff] %v6776_v32  ;;  %9943 = vst [vmem:[#allocation152_spill] sm:$0xff] %v6778_v60  ;;  %v311_v36 = vand.u32 4294901760, %v178_v47  ;;  %v6802_v28 = vsub.f32 %v177_v2, %v1589_v31  ;;  %v313_v32 = vand.u32 4294901760, %v183_v55  ;;  %v6810_v26 = vsub.f32 %v174_v15, %v307_v37  ;;  %v195_v60 = vld [vmem:[#allocation5 + $0x3a8] sm:$0xff] }
  0x94   :  { %9944 = vst [vmem:[#allocation153_spill] sm:$0xff] %v6780_v11  ;;  %9945 = vst [vmem:[#allocation154_spill] sm:$0xff] %v6782_v38  ;;  %v317_v11 = vand.u32 4294901760, %v187_v54  ;;  %v6804_v20 = vpack.c.bf16 %v1593_v1, %v1589_v31  ;;  %v6806_v59 = vsub.f32 %v181_v24, %v1593_v1  ;;  %v6814_v2 = vpack.c.bf16 %v1595_v42, %v1591_v29  ;;  %v188_v38 = vld [vmem:[#allocation5 + $0x370] sm:$0xff]  ;;  %v191_v31 = vld [vmem:[#allocation5 + $0x388] sm:$0xff] }
  0x95   :  { %9946 = vst [vmem:[#allocation155_spill] sm:$0xff] %v6784_v45  ;;  %9947 = vst [vmem:[#allocation156_spill] sm:$0xff] %v6786_v9  ;;  %v6808_v7 = vpack.c.bf16 %v311_v36, %v307_v37  ;;  %v182_v9 = vld [vmem:[#allocation5 + $0x340] sm:$0xff]  ;;  %v6812_v45 = vsub.f32 %v178_v47, %v311_v36  ;;  %v6824_v15 = vsub.f32 %v183_v55, %v313_v32 }
  0x96   :  { %9948 = vst [vmem:[#allocation157_spill] sm:$0xff] %v6788_v14  ;;  %9949 = vst [vmem:[#allocation158_spill] sm:$0xff] %v6790_v21  ;;  %v185_v21 = vld [vmem:[#allocation5 + $0x358] sm:$0xff]  ;;  %5491 = vmatprep.subr.bf16.mxu1 %v6804_v20  ;;  %v6822_v24 = vpack.c.bf16 %v317_v11, %v313_v32  ;;  %v6826_v1 = vsub.f32 %v187_v54, %v317_v11  ;;  %v315_v37 = vand.u32 4294901760, %v182_v9 }
  0x97   :  { %9950 = vst [vmem:[#allocation159_spill] sm:$0xff] %v6794_v53  ;;  %9951 = vst [vmem:[#allocation160_spill] sm:$0xff] %v6796_v49  ;;  %v189_v14 = vld [vmem:[#allocation5 + $0x378] sm:$0xff]  ;;  %v184_v49 = vld [vmem:[#allocation5 + $0x350] sm:$0xff]  ;;  %v6816_v53 = vsub.f32 %v176_v0, %v1591_v29  ;;  %5109 = vmatpush1.bf16.msra.mxu0 %v6808_v7  ;;  %v1597_v47 = vand.u32 4294901760, %v185_v21  ;;  %5493 = vmatpush1.bf16.msra.mxu1 %v6814_v2 }
  0x98   :  { %9952 = vst [vmem:[#allocation161_spill] sm:$0xff] %v6798_v22  ;;  %9953 = vst [vmem:[#allocation162_spill] sm:$0xff] %v6802_v28  ;;  %v186_v22 = vld [vmem:[#allocation5 + $0x360] sm:$0xff]  ;;  %v6818_v28 = vsub.f32 %v180_v8, %v1595_v42  ;;  %v1601_v0 = vand.u32 4294901760, %v189_v14  ;;  %v1599_v36 = vand.u32 4294901760, %v184_v49  ;;  %5111 = vmatprep.subr.bf16.mxu0 %v6822_v24  ;;  %v1603_v42 = vand.u32 4294901760, %v188_v38 }
  0x99   :  { %9954 = vst [vmem:[#allocation163_spill] sm:$0xff] %v6804_v20  ;;  %9955 = vst [vmem:[#allocation164_spill] sm:$0xff] %v6806_v59  ;;  %v319_v8 = vand.u32 4294901760, %v186_v22  ;;  %v6830_v29 = vsub.f32 %v185_v21, %v1597_v47  ;;  %v321_v20 = vand.u32 4294901760, %v191_v31  ;;  %v6838_v55 = vsub.f32 %v182_v9, %v315_v37  ;;  %v203_v59 = vld [vmem:[#allocation5 + $0x3e8] sm:$0xff] }
  0x9a   :  { %9956 = vst [vmem:[#allocation165_spill] sm:$0xff] %v6808_v7  ;;  %9957 = vst [vmem:[#allocation166_spill] sm:$0xff] %v6810_v26  ;;  %v325_v7 = vand.u32 4294901760, %v195_v60  ;;  %v6832_v32 = vpack.c.bf16 %v1601_v0, %v1597_v47  ;;  %v6834_v54 = vsub.f32 %v189_v14, %v1601_v0  ;;  %v6842_v21 = vpack.c.bf16 %v1603_v42, %v1599_v36  ;;  %v196_v26 = vld [vmem:[#allocation5 + $0x3b0] sm:$0xff]  ;;  %v199_v47 = vld [vmem:[#allocation5 + $0x3c8] sm:$0xff] }
  0x9b   :  { %9958 = vst [vmem:[#allocation167_spill] sm:$0xff] %v6812_v45  ;;  %9959 = vst [vmem:[#allocation168_spill] sm:$0xff] %v6814_v2  ;;  %v6836_v11 = vpack.c.bf16 %v319_v8, %v315_v37  ;;  %v190_v2 = vld [vmem:[#allocation5 + $0x380] sm:$0xff]  ;;  %v6840_v45 = vsub.f32 %v186_v22, %v319_v8  ;;  %v6852_v9 = vsub.f32 %v191_v31, %v321_v20 }
  0x9c   :  { %9960 = vst [vmem:[#allocation169_spill] sm:$0xff] %v6816_v53  ;;  %9961 = vst [vmem:[#allocation170_spill] sm:$0xff] %v6818_v28  ;;  %v193_v28 = vld [vmem:[#allocation5 + $0x398] sm:$0xff]  ;;  %5495 = vmatprep.subr.bf16.mxu1 %v6832_v32  ;;  %v6850_v14 = vpack.c.bf16 %v325_v7, %v321_v20  ;;  %v6854_v0 = vsub.f32 %v195_v60, %v325_v7  ;;  %v323_v37 = vand.u32 4294901760, %v190_v2 }
  0x9d   :  { %9962 = vst [vmem:[#allocation171_spill] sm:$0xff] %v6822_v24  ;;  %9963 = vst [vmem:[#allocation172_spill] sm:$0xff] %v6824_v15  ;;  %v197_v53 = vld [vmem:[#allocation5 + $0x3b8] sm:$0xff]  ;;  %v192_v15 = vld [vmem:[#allocation5 + $0x390] sm:$0xff]  ;;  %v6844_v24 = vsub.f32 %v184_v49, %v1599_v36  ;;  %5113 = vmatpush1.bf16.msra.mxu0 %v6836_v11  ;;  %v1605_v22 = vand.u32 4294901760, %v193_v28  ;;  %5497 = vmatpush1.bf16.msra.mxu1 %v6842_v21 }
  0x9e   :  { %9964 = vst [vmem:[#allocation173_spill] sm:$0xff] %v6826_v1  ;;  %9965 = vst [vmem:[#allocation174_spill] sm:$0xff] %v6830_v29  ;;  %v194_v1 = vld [vmem:[#allocation5 + $0x3a0] sm:$0xff]  ;;  %v6846_v29 = vsub.f32 %v188_v38, %v1603_v42  ;;  %v1609_v49 = vand.u32 4294901760, %v197_v53  ;;  %v1607_v8 = vand.u32 4294901760, %v192_v15  ;;  %5115 = vmatprep.subr.bf16.mxu0 %v6850_v14  ;;  %v1611_v42 = vand.u32 4294901760, %v196_v26 }
  0x9f   :  { %9966 = vst [vmem:[#allocation175_spill] sm:$0xff] %v6832_v32  ;;  %9967 = vst [vmem:[#allocation176_spill] sm:$0xff] %v6834_v54  ;;  %v327_v38 = vand.u32 4294901760, %v194_v1  ;;  %v6858_v36 = vsub.f32 %v193_v28, %v1605_v22  ;;  %v329_v32 = vand.u32 4294901760, %v199_v47  ;;  %v6866_v31 = vsub.f32 %v190_v2, %v323_v37 }
  0xa0   :  { %9968 = vst [vmem:[#allocation177_spill] sm:$0xff] %v6836_v11  ;;  %9969 = vst [vmem:[#allocation178_spill] sm:$0xff] %v6838_v55  ;;  %v333_v11 = vand.u32 4294901760, %v203_v59  ;;  %v6860_v20 = vpack.c.bf16 %v1609_v49, %v1605_v22  ;;  %v6862_v60 = vsub.f32 %v197_v53, %v1609_v49  ;;  %v6870_v28 = vpack.c.bf16 %v1611_v42, %v1607_v8  ;;  %v204_v55 = vld [vmem:[#allocation5 + $0x3f0] sm:$0xff]  ;;  %v77_v22 = vld [vmem:[#allocation2] sm:$0xff] }
  0xa1   :  { %9970 = vst [vmem:[#allocation179_spill] sm:$0xff] %v6840_v45  ;;  %9971 = vst [vmem:[#allocation180_spill] sm:$0xff] %v6842_v21  ;;  %v6864_v7 = vpack.c.bf16 %v327_v38, %v323_v37  ;;  %v198_v21 = vld [vmem:[#allocation5 + $0x3c0] sm:$0xff]  ;;  %v6868_v45 = vsub.f32 %v194_v1, %v327_v38  ;;  %v6880_v2 = vsub.f32 %v199_v47, %v329_v32 }
  0xa2   :  { %9972 = vst [vmem:[#allocation181_spill] sm:$0xff] %v6844_v24  ;;  %9973 = vst [vmem:[#allocation182_spill] sm:$0xff] %v6846_v29  ;;  %v201_v29 = vld [vmem:[#allocation5 + $0x3d8] sm:$0xff]  ;;  %5499 = vmatprep.subr.bf16.mxu1 %v6860_v20  ;;  %v6878_v53 = vpack.c.bf16 %v333_v11, %v329_v32  ;;  %v6882_v49 = vsub.f32 %v203_v59, %v333_v11 }
  0xa3   :  { %9974 = vst [vmem:[#allocation183_spill] sm:$0xff] %v6850_v14  ;;  %9975 = vst [vmem:[#allocation184_spill] sm:$0xff] %v6852_v9  ;;  %v205_v24 = vld [vmem:[#allocation5 + $0x3f8] sm:$0xff]  ;;  %v200_v9 = vld [vmem:[#allocation5 + $0x3d0] sm:$0xff]  ;;  %v6872_v14 = vsub.f32 %v192_v15, %v1607_v8  ;;  %5117 = vmatpush1.bf16.msra.mxu0 %v6864_v7  ;;  %v1613_v1 = vand.u32 4294901760, %v201_v29  ;;  %5501 = vmatpush1.bf16.msra.mxu1 %v6870_v28  ;;  %v331_v15 = vand.u32 4294901760, %v198_v21 }
  0xa4   :  { %9976 = vst [vmem:[#allocation185_spill] sm:$0xff] %v6854_v0  ;;  %9977 = vst [vmem:[#allocation186_spill] sm:$0xff] %v6858_v36  ;;  %v202_v0 = vld [vmem:[#allocation5 + $0x3e0] sm:$0xff]  ;;  %v6874_v36 = vsub.f32 %v196_v26, %v1611_v42  ;;  %v1617_v37 = vand.u32 4294901760, %v205_v24  ;;  %v1615_v26 = vand.u32 4294901760, %v200_v9  ;;  %5119 = vmatprep.subr.bf16.mxu0 %v6878_v53  ;;  %v1619_v42 = vand.u32 4294901760, %v204_v55 }
  0xa5   :  { %9978 = vst [vmem:[#allocation187_spill] sm:$0xff] %v6860_v20  ;;  %9979 = vst [vmem:[#allocation188_spill] sm:$0xff] %v6862_v60  ;;  %v335_v38 = vand.u32 4294901760, %v202_v0  ;;  %v6886_v8 = vsub.f32 %v201_v29, %v1613_v1  ;;  %v6888_v20 = vcombine.high %v77_v22, %v77_v22  ;;  %v6898_v47 = vsub.f32 %v198_v21, %v331_v15 }
  0xa6   :  { %9980 = vst [vmem:[#allocation189_spill] sm:$0xff] %v6864_v7  ;;  %9981 = vst [vmem:[#allocation190_spill] sm:$0xff] %v6866_v31  ;;  %v6890_v7 = vand.u32 4294901760, %v77_v22  ;;  %v6892_v32 = vpack.c.bf16 %v1617_v37, %v1613_v1  ;;  %v6894_v59 = vsub.f32 %v205_v24, %v1617_v37  ;;  %v6906_v29 = vsub.f32 %v204_v55, %v1619_v42 }
  0xa7   :  { %9982 = vst [vmem:[#allocation191_spill] sm:$0xff] %v6868_v45  ;;  %9983 = vst [vmem:[#allocation192_spill] sm:$0xff] %v6870_v28  ;;  %v6896_v11 = vpack.c.bf16 %v335_v38, %v331_v15  ;;  %v6900_v28 = vsub.f32 %v202_v0, %v335_v38  ;;  %v6911_v1 = vand.u32 4294901760, %v6888_v20  ;;  %v9425_v24 = vand.u32 4294901760, %v6461_v16 }
  0xa8   :  { %9984 = vst [vmem:[#allocation193_spill] sm:$0xff] %v6872_v14  ;;  %9985 = vst [vmem:[#allocation194_spill] sm:$0xff] %v6874_v36  ;;  %5503 = vmatprep.subr.bf16.mxu1 %v6892_v32  ;;  %v9428_v21 = vand.u32 4294901760, %v6463_v17  ;;  %v9431_v0 = vand.u32 4294901760, %v6465_v18  ;;  %v6919_v55 = vsub.f32 %v77_v22, %v6890_v7 }
  0xa9   :  { %9986 = vst [vmem:[#allocation195_spill] sm:$0xff] %v6878_v53  ;;  %9987 = vst [vmem:[#allocation196_spill] sm:$0xff] %v6880_v2  ;;  %v6904_v53 = vsub.f32 %v200_v9, %v1615_v26  ;;  %5121 = vmatpush1.bf16.msra.mxu0 %v6896_v11  ;;  %v9436_v9 = vand.u32 4294901760, %v6469_v23  ;;  %v6925_v38 = vsub.f32 %v6888_v20, %v6911_v1 }
  0xaa   :  { %9988 = vst [vmem:[#allocation197_spill] sm:$0xff] %v6882_v49  ;;  %9989 = vst [vmem:[#allocation198_spill] sm:$0xff] %v6886_v8  ;;  %v6902_v49 = vpack.c.bf16 %v1619_v42, %v1615_v26  ;;  %v357_v26 = vsub.f32 %v6461_v16, %v9425_v24  ;;  %v369_v42 = vsub.f32 %v6463_v17, %v9428_v21  ;;  %v6940_v37 = vand.u32 4294901760, %v6919_v55 }
  0xab   :  { %9990 = vst [vmem:[#allocation199_spill] sm:$0xff] %v6888_v20  ;;  %9991 = vst [vmem:[#allocation200_spill] sm:$0xff] %v6890_v7  ;;  %v1641_v22 = vsub.f32 %v6465_v18, %v9431_v0  ;;  %v1653_v15 = vsub.f32 %v6469_v23, %v9436_v9  ;;  %v10004_v20 = vand.u32 4294901760, %v6473_v25  ;;  %v10005_v24 = vand.u32 4294901760, %v6476_v27 }
  0xac   :  { %9992 = vst [vmem:[#allocation201_spill] sm:$0xff] %v6892_v32  ;;  %9993 = vst [vmem:[#allocation202_spill] sm:$0xff] %v6894_v59  ;;  %5505 = vmatpush1.bf16.msra.mxu1 %v6902_v49  ;;  %v6949_v21 = vand.u32 4294901760, %v6925_v38  ;;  %v358_v32 = vand.u32 4294901760, %v357_v26  ;;  %v370_v0 = vand.u32 4294901760, %v369_v42  ;;  %v346_v9 = vsub.f32 %v6919_v55, %v6940_v37 }
  0xad   :  { %9994 = vst [vmem:[#allocation203_spill] sm:$0xff] %v6896_v11  ;;  %9995 = vst [vmem:[#allocation204_spill] sm:$0xff] %v6898_v47  ;;  %v375_v11 = vsub.f32 %v6476_v27, %v10005_v24  ;;  %v1642_v7 = vand.u32 4294901760, %v1641_v22  ;;  %v1654_v18 = vand.u32 4294901760, %v1653_v15  ;;  %v9450_v24 = vand.u32 4294901760, %v6484_v40 }
  0xae   :  { %9996 = vst [vmem:[#allocation205_spill] sm:$0xff] %v6900_v28  ;;  %9997 = vst [vmem:[#allocation206_spill] sm:$0xff] %v6902_v49  ;;  %v363_v49 = vsub.f32 %v6473_v25, %v10004_v20  ;;  %v340_v16 = vsub.f32 %v6925_v38, %v6949_v21  ;;  %v5122_v20 = vpack.c.bf16 %v370_v0, %v358_v32  ;;  %v9451_v25 = vand.u32 4294901760, %v6482_v39 }
  0xaf   :  { %9998 = vst [vmem:[#allocation207_spill] sm:$0xff] %v6904_v53  ;;  %9999 = vst [vmem:[#allocation208_spill] sm:$0xff] %v6906_v29  ;;  %v376_v17 = vand.u32 4294901760, %v375_v11  ;;  %v5506_v27 = vpack.c.bf16 %v1654_v18, %v1642_v7  ;;  %v347_v29 = vand.u32 4294901760, %v346_v9  ;;  %v9475_v26 = vand.u32 4294901760, %v6486_v41 }
  0xb0   :  { %10000 = vst [vmem:[#allocation209_spill] sm:$0xff] %v6911_v1  ;;  %10001 = vst [vmem:[#allocation210_spill] sm:$0xff] %v6919_v55  ;;  %v364_v23 = vand.u32 4294901760, %v363_v49  ;;  %v341_v42 = vand.u32 4294901760, %v340_v16  ;;  %5123 = vmatprep.subr.bf16.mxu0 %v5122_v20  ;;  %v1647_v49 = vsub.f32 %v6482_v39, %v9451_v25  ;;  %v1659_v11 = vsub.f32 %v6484_v40, %v9450_v24 }
  0xb1   :  { %10002 = vst [vmem:[#allocation211_spill] sm:$0xff] %v6925_v38  ;;  %10003 = vst [vmem:[#allocation212_spill] sm:$0xff] %v6940_v37  ;;  %v9468_v32 = vand.u32 4294901760, %v6490_v46  ;;  %5507 = vmatprep.subr.bf16.mxu1 %v5506_v27  ;;  %v381_v18 = vsub.f32 %v6486_v41, %v9475_v26  ;;  %v9452_v16 = vand.u32 4294901760, %v6497_v50  ;;  %v9454_v27 = vand.u32 4294901760, %v6505_v61 }
  0xb2   :  { %10006 = vst [vmem:[#allocation213_spill] sm:$0xff] %v6949_v21  ;;  %v5124_v53 = vpack.c.bf16 %v376_v17, %v364_v23  ;;  %v9449_v17 = vand.u32 4294901760, %v6494_v48  ;;  %v9453_v23 = vand.u32 4294901760, %v6499_v52  ;;  %342 = vmatprep.mubr.f32.mxu0 %v341_v42  ;;  %1626 = vmatprep.mubr.f32.mxu1 %v341_v42  ;;  %v1648_v7 = vand.u32 4294901760, %v1647_v49 }
  0xb3   :  { %v1660_v0 = vand.u32 4294901760, %v1659_v11  ;;  %v393_v9 = vsub.f32 %v6490_v46, %v9468_v32  ;;  %348 = vmatmul.mubr.f32.vlgmr.msra.gmra.mrb[0].mxu0 %v347_v29  ;;  %1632 = vmatmul.mubr.f32.vlgmr.msra.gmra.mrb[0].mxu1 %v347_v29  ;;  %v382_v15 = vand.u32 4294901760, %v381_v18  ;;  %v1677_v20 = vsub.f32 %v6497_v50, %v9452_v16 }
  0xb4   :  { %v1665_v22 = vsub.f32 %v6494_v48, %v9449_v17  ;;  %v387_v42 = vsub.f32 %v6499_v52, %v9453_v23  ;;  %5125 = vmatpush1.bf16.msra.mxu0 %v5124_v53  ;;  %v399_v29 = vsub.f32 %v6505_v61, %v9454_v27  ;;  %v9456_v18 = vand.u32 4294901760, %v6507_v62  ;;  %739 = vmatprep.mubr.f32.mxu0 %v6911_v1 }
  0xb5   :  { %v5508_v49 = vpack.c.bf16 %v1660_v0, %v1648_v7  ;;  %v394_v11 = vand.u32 4294901760, %v393_v9  ;;  %v1678_v24 = vand.u32 4294901760, %v1677_v20  ;;  %v9455_v16 = vand.u32 4294901760, %v6511_v4  ;;  %2023 = vmatprep.mubr.f32.mxu1 %v6911_v1 }
  0xb6   :  { %v1666_v17 = vand.u32 4294901760, %v1665_v22  ;;  %v388_v25 = vand.u32 4294901760, %v387_v42  ;;  %v400_v53 = vand.u32 4294901760, %v399_v29  ;;  %v1671_v7 = vsub.f32 %v6507_v62, %v9456_v18 }
  0xb7   :  { %5509 = vmatpush1.bf16.msra.mxu1 %v5508_v49  ;;  %v5126_v23 = vpack.c.bf16 %v394_v11, %v382_v15  ;;  %v9460_v0 = vand.u32 4294901760, %v6515_v6  ;;  %v1683_v22 = vsub.f32 %v6511_v4, %v9455_v16  ;;  %v9457_v20 = vand.u32 4294901760, %v6518_v10 }
  0xb8   :  { %v5510_v9 = vpack.c.bf16 %v1678_v24, %v1666_v17  ;;  %v9458_v42 = vand.u32 4294901760, %v6522_v12  ;;  %v5128_v27 = vpack.c.bf16 %v400_v53, %v388_v25  ;;  %v1672_v49 = vand.u32 4294901760, %v1671_v7 }
  0xb9   :  { %5127 = vmatprep.subr.bf16.mxu0 %v5126_v23  ;;  %v405_v15 = vsub.f32 %v6515_v6, %v9460_v0  ;;  %v9459_v11 = vand.u32 4294901760, %v6524_v13  ;;  %v1684_v29 = vand.u32 4294901760, %v1683_v22  ;;  %v417_v24 = vsub.f32 %v6518_v10, %v9457_v20 }
  0xba   :  { %5511 = vmatprep.subr.bf16.mxu1 %v5510_v9  ;;  %v1689_v17 = vsub.f32 %v6522_v12, %v9458_v42  ;;  %v9461_v23 = vand.u32 4294901760, %v6531_v33  ;;  %5129 = vmatpush1.bf16.msra.mxu0 %v5128_v27  ;;  %v9462_v7 = vand.u32 4294901760, %v6533_v34  ;;  %v9463_v9 = vand.u32 4294901760, %v6537_v43 }
  0xbb   :  { %v406_v25 = vand.u32 4294901760, %v405_v15  ;;  %v1701_v53 = vsub.f32 %v6524_v13, %v9459_v11  ;;  %v5512_v22 = vpack.c.bf16 %v1684_v29, %v1672_v49  ;;  %v418_v16 = vand.u32 4294901760, %v417_v24 }
  0xbc   :  { %v1690_v18 = vand.u32 4294901760, %v1689_v17  ;;  %v411_v20 = vsub.f32 %v6531_v33, %v9461_v23  ;;  %v423_v27 = vsub.f32 %v6533_v34, %v9462_v7  ;;  %v1695_v15 = vsub.f32 %v6537_v43, %v9463_v9 }
  0xbd   :  { %v1702_v42 = vand.u32 4294901760, %v1701_v53  ;;  %v9464_v11 = vand.u32 4294901760, %v6539_v44  ;;  %5513 = vmatpush1.bf16.msra.mxu1 %v5512_v22  ;;  %v5130_v0 = vpack.c.bf16 %v418_v16, %v406_v25  ;;  %v9466_v29 = vand.u32 4294901760, %v6543_v51 }
  0xbe   :  { %v412_v49 = vand.u32 4294901760, %v411_v20  ;;  %v9465_v24 = vand.u32 4294901760, %v6547_v56  ;;  %v424_v23 = vand.u32 4294901760, %v423_v27  ;;  %v1696_v53 = vand.u32 4294901760, %v1695_v15 }
  0xbf   :  { %v5514_v17 = vpack.c.bf16 %v1702_v42, %v1690_v18  ;;  %v1707_v7 = vsub.f32 %v6539_v44, %v9464_v11  ;;  %5131 = vmatprep.subr.bf16.mxu0 %v5130_v0  ;;  %v429_v9 = vsub.f32 %v6543_v51, %v9466_v29  ;;  %v9467_v20 = vand.u32 4294901760, %v6551_v58 }
  0xc0   :  { %v441_v16 = vsub.f32 %v6547_v56, %v9465_v24  ;;  %v9469_v25 = vand.u32 4294901760, %v6554_v63  ;;  %v5132_v18 = vpack.c.bf16 %v424_v23, %v412_v49  ;;  %v9472_v22 = vand.u32 4294901760, %v6557_v19 }
  0xc1   :  { %5515 = vmatprep.subr.bf16.mxu1 %v5514_v17  ;;  %v1708_v42 = vand.u32 4294901760, %v1707_v7  ;;  %v9470_v27 = vand.u32 4294901760, %v6561_v35  ;;  %v430_v0 = vand.u32 4294901760, %v429_v9  ;;  %v1713_v11 = vsub.f32 %v6551_v58, %v9467_v20 }
  0xc2   :  { %v442_v15 = vand.u32 4294901760, %v441_v16  ;;  %v1725_v24 = vsub.f32 %v6554_v63, %v9469_v25  ;;  %5133 = vmatpush1.bf16.msra.mxu0 %v5132_v18  ;;  %v435_v23 = vsub.f32 %v6557_v19, %v9472_v22  ;;  %v9471_v9 = vand.u32 4294901760, %v6565_v30 }
  0xc3   :  { %v5516_v29 = vpack.c.bf16 %v1708_v42, %v1696_v53  ;;  %v447_v7 = vsub.f32 %v6561_v35, %v9470_v27  ;;  %v1714_v17 = vand.u32 4294901760, %v1713_v11  ;;  %v9473_v20 = vand.u32 4294901760, %v6567_v57 }
  0xc4   :  { %v5134_v49 = vpack.c.bf16 %v442_v15, %v430_v0  ;;  %v1726_v16 = vand.u32 4294901760, %v1725_v24  ;;  %v436_v32 = vand.u32 4294901760, %v435_v23  ;;  %v1719_v53 = vsub.f32 %v6565_v30, %v9471_v9  ;;  %v10007_v24 = vld [vmem:[#allocation66_spill] sm:$0xff]  ;;  %v10050_v30 = vld [vmem:[#allocation131_spill] sm:$0xff] }
  0xc5   :  { %5517 = vmatpush1.bf16.msra.mxu1 %v5516_v29  ;;  %v448_v25 = vand.u32 4294901760, %v447_v7  ;;  %v9474_v18 = vand.u32 4294901760, %v6571_v3  ;;  %v1731_v27 = vsub.f32 %v6567_v57, %v9473_v20  ;;  %v9480_v11 = vand.u32 4294901760, %v6573_v5  ;;  %v10008_v7 = vld [vmem:[#allocation68_spill] sm:$0xff] }
  0xc6   :  { %5135 = vmatprep.subr.bf16.mxu0 %v5134_v49  ;;  %v5518_v42 = vpack.c.bf16 %v1726_v16, %v1714_v17  ;;  %v9481_v0 = vand.u32 4294901760, %v10007_v24  ;;  %v1720_v29 = vand.u32 4294901760, %v1719_v53  ;;  %v9482_v9 = vand.u32 4294901760, %v10008_v7  ;;  %v10009_v16 = vld [vmem:[#allocation70_spill] sm:$0xff]  ;;  %v10010_v53 = vld [vmem:[#allocation71_spill] sm:$0xff] }
  0xc7   :  { %v5136_v15 = vpack.c.bf16 %v448_v25, %v436_v32  ;;  %v453_v23 = vsub.f32 %v6571_v3, %v9474_v18  ;;  %v1732_v22 = vand.u32 4294901760, %v1731_v27  ;;  %v465_v49 = vsub.f32 %v6573_v5, %v9480_v11 }
  0xc8   :  { %5519 = vmatprep.subr.bf16.mxu1 %v5518_v42  ;;  %v1737_v17 = vsub.f32 %v10007_v24, %v9481_v0  ;;  %v9489_v20 = vand.u32 4294901760, %v10009_v16  ;;  %v1749_v25 = vsub.f32 %v10008_v7, %v9482_v9  ;;  %v9490_v18 = vand.u32 4294901760, %v10010_v53  ;;  %v10011_v42 = vld [vmem:[#allocation73_spill] sm:$0xff]  ;;  %v10012_v9 = vld [vmem:[#allocation74_spill] sm:$0xff] }
  0xc9   :  { %5137 = vmatpush1.bf16.msra.mxu0 %v5136_v15  ;;  %v454_v32 = vand.u32 4294901760, %v453_v23  ;;  %v9491_v27 = vand.u32 4294901760, %v10011_v42  ;;  %v5520_v26 = vpack.c.bf16 %v1732_v22, %v1720_v29  ;;  %v466_v1 = vand.u32 4294901760, %v465_v49  ;;  %v10013_v29 = vld [vmem:[#allocation76_spill] sm:$0xff] }
  0xca   :  { %v1738_v37 = vand.u32 4294901760, %v1737_v17  ;;  %v459_v11 = vsub.f32 %v10009_v16, %v9489_v20  ;;  %v1750_v0 = vand.u32 4294901760, %v1749_v25  ;;  %v471_v15 = vsub.f32 %v10010_v53, %v9490_v18  ;;  %v10014_v17 = vld [vmem:[#allocation77_spill] sm:$0xff]  ;;  %v10018_v53 = vld [vmem:[#allocation83_spill] sm:$0xff] }
  0xcb   :  { %v1743_v23 = vsub.f32 %v10011_v42, %v9491_v27  ;;  %v9494_v21 = vand.u32 4294901760, %v10012_v9  ;;  %5521 = vmatpush1.bf16.msra.mxu1 %v5520_v26  ;;  %v5138_v55 = vpack.c.bf16 %v466_v1, %v454_v32  ;;  %v9496_v49 = vand.u32 4294901760, %v10013_v29  ;;  %v10015_v26 = vld [vmem:[#allocation78_spill] sm:$0xff]  ;;  %v10016_v32 = vld [vmem:[#allocation80_spill] sm:$0xff] }
  0xcc   :  { %v460_v22 = vand.u32 4294901760, %v459_v11  ;;  %v9497_v7 = vand.u32 4294901760, %v10014_v17  ;;  %v5522_v24 = vpack.c.bf16 %v1750_v0, %v1738_v37  ;;  %v472_v20 = vand.u32 4294901760, %v471_v15  ;;  %v10017_v15 = vld [vmem:[#allocation82_spill] sm:$0xff] }
  0xcd   :  { %v1744_v25 = vand.u32 4294901760, %v1743_v23  ;;  %v1755_v18 = vsub.f32 %v10012_v9, %v9494_v21  ;;  %5139 = vmatprep.subr.bf16.mxu0 %v5138_v55  ;;  %v477_v27 = vsub.f32 %v10013_v29, %v9496_v49  ;;  %v9500_v11 = vand.u32 4294901760, %v10015_v26 }
  0xce   :  { %v489_v1 = vsub.f32 %v10014_v17, %v9497_v7  ;;  %v9503_v42 = vand.u32 4294901760, %v10016_v32  ;;  %5523 = vmatprep.subr.bf16.mxu1 %v5522_v24  ;;  %v5140_v37 = vpack.c.bf16 %v472_v20, %v460_v22  ;;  %v9504_v23 = vand.u32 4294901760, %v10017_v15  ;;  %v10019_v24 = vld [vmem:[#allocation85_spill] sm:$0xff] }
  0xcf   :  { %v1756_v0 = vand.u32 4294901760, %v1755_v18  ;;  %v9505_v21 = vand.u32 4294901760, %v10018_v53  ;;  %v478_v55 = vand.u32 4294901760, %v477_v27  ;;  %v1761_v49 = vsub.f32 %v10015_v26, %v9500_v11  ;;  %v10020_v11 = vld [vmem:[#allocation86_spill] sm:$0xff] }
  0xd0   :  { %v490_v9 = vand.u32 4294901760, %v489_v1  ;;  %v1773_v7 = vsub.f32 %v10016_v32, %v9503_v42  ;;  %5141 = vmatpush1.bf16.msra.mxu0 %v5140_v37  ;;  %v483_v20 = vsub.f32 %v10017_v15, %v9504_v23  ;;  %v9507_v27 = vand.u32 4294901760, %v10019_v24  ;;  %v10021_v37 = vld [vmem:[#allocation88_spill] sm:$0xff] }
  0xd1   :  { %v5524_v17 = vpack.c.bf16 %v1756_v0, %v1744_v25  ;;  %v495_v18 = vsub.f32 %v10018_v53, %v9505_v21  ;;  %v1762_v1 = vand.u32 4294901760, %v1761_v49  ;;  %v9509_v26 = vand.u32 4294901760, %v10020_v11 }
  0xd2   :  { %v5142_v22 = vpack.c.bf16 %v490_v9, %v478_v55  ;;  %v1774_v29 = vand.u32 4294901760, %v1773_v7  ;;  %v484_v16 = vand.u32 4294901760, %v483_v20  ;;  %v1767_v25 = vsub.f32 %v10019_v24, %v9507_v27  ;;  %v10022_v9 = vld [vmem:[#allocation89_spill] sm:$0xff]  ;;  %v10023_v7 = vld [vmem:[#allocation90_spill] sm:$0xff] }
  0xd3   :  { %5525 = vmatpush1.bf16.msra.mxu1 %v5524_v17  ;;  %v496_v42 = vand.u32 4294901760, %v495_v18  ;;  %v9510_v0 = vand.u32 4294901760, %v10021_v37  ;;  %v1779_v21 = vsub.f32 %v10020_v11, %v9509_v26  ;;  %v9514_v49 = vand.u32 4294901760, %v10022_v9  ;;  %v10024_v18 = vld [vmem:[#allocation92_spill] sm:$0xff] }
  0xd4   :  { %5143 = vmatprep.subr.bf16.mxu0 %v5142_v22  ;;  %v5526_v23 = vpack.c.bf16 %v1774_v29, %v1762_v1  ;;  %v9515_v55 = vand.u32 4294901760, %v10023_v7  ;;  %v1768_v17 = vand.u32 4294901760, %v1767_v25  ;;  %v9516_v27 = vand.u32 4294901760, %v10024_v18  ;;  %v10025_v1 = vld [vmem:[#allocation94_spill] sm:$0xff]  ;;  %v10026_v25 = vld [vmem:[#allocation95_spill] sm:$0xff] }
  0xd5   :  { %v5144_v53 = vpack.c.bf16 %v496_v42, %v484_v16  ;;  %v501_v20 = vsub.f32 %v10021_v37, %v9510_v0  ;;  %v1780_v24 = vand.u32 4294901760, %v1779_v21  ;;  %v513_v29 = vsub.f32 %v10022_v9, %v9514_v49 }
  0xd6   :  { %5527 = vmatprep.subr.bf16.mxu1 %v5526_v23  ;;  %v1785_v22 = vsub.f32 %v10023_v7, %v9515_v55  ;;  %v9521_v26 = vand.u32 4294901760, %v10025_v1  ;;  %v1797_v42 = vsub.f32 %v10024_v18, %v9516_v27  ;;  %v9522_v0 = vand.u32 4294901760, %v10026_v25  ;;  %v10027_v23 = vld [vmem:[#allocation97_spill] sm:$0xff]  ;;  %v10028_v27 = vld [vmem:[#allocation98_spill] sm:$0xff] }
  0xd7   :  { %5145 = vmatpush1.bf16.msra.mxu0 %v5144_v53  ;;  %v502_v16 = vand.u32 4294901760, %v501_v20  ;;  %v9523_v21 = vand.u32 4294901760, %v10027_v23  ;;  %v5528_v11 = vpack.c.bf16 %v1780_v24, %v1768_v17  ;;  %v514_v37 = vand.u32 4294901760, %v513_v29  ;;  %v10029_v17 = vld [vmem:[#allocation100_spill] sm:$0xff] }
  0xd8   :  { %v1786_v15 = vand.u32 4294901760, %v1785_v22  ;;  %v507_v49 = vsub.f32 %v10025_v1, %v9521_v26  ;;  %v1798_v55 = vand.u32 4294901760, %v1797_v42  ;;  %v519_v53 = vsub.f32 %v10026_v25, %v9522_v0  ;;  %v10030_v22 = vld [vmem:[#allocation101_spill] sm:$0xff]  ;;  %v10034_v25 = vld [vmem:[#allocation107_spill] sm:$0xff] }
  0xd9   :  { %v1791_v20 = vsub.f32 %v10027_v23, %v9523_v21  ;;  %v9526_v18 = vand.u32 4294901760, %v10028_v27  ;;  %5529 = vmatpush1.bf16.msra.mxu1 %v5528_v11  ;;  %v5146_v7 = vpack.c.bf16 %v514_v37, %v502_v16  ;;  %v9528_v29 = vand.u32 4294901760, %v10029_v17  ;;  %v10031_v37 = vld [vmem:[#allocation102_spill] sm:$0xff]  ;;  %v10032_v16 = vld [vmem:[#allocation104_spill] sm:$0xff] }
  0xda   :  { %v508_v24 = vand.u32 4294901760, %v507_v49  ;;  %v9529_v9 = vand.u32 4294901760, %v10030_v22  ;;  %v5530_v32 = vpack.c.bf16 %v1798_v55, %v1786_v15  ;;  %v520_v26 = vand.u32 4294901760, %v519_v53  ;;  %v10033_v53 = vld [vmem:[#allocation106_spill] sm:$0xff] }
  0xdb   :  { %v1792_v42 = vand.u32 4294901760, %v1791_v20  ;;  %v1803_v0 = vsub.f32 %v10028_v27, %v9526_v18  ;;  %5147 = vmatprep.subr.bf16.mxu0 %v5146_v7  ;;  %v525_v21 = vsub.f32 %v10029_v17, %v9528_v29  ;;  %v9532_v49 = vand.u32 4294901760, %v10031_v37 }
  0xdc   :  { %v537_v11 = vsub.f32 %v10030_v22, %v9529_v9  ;;  %v9535_v23 = vand.u32 4294901760, %v10032_v16  ;;  %5531 = vmatprep.subr.bf16.mxu1 %v5530_v32  ;;  %v5148_v15 = vpack.c.bf16 %v520_v26, %v508_v24  ;;  %v9536_v20 = vand.u32 4294901760, %v10033_v53 }
  0xdd   :  { %v1804_v55 = vand.u32 4294901760, %v1803_v0  ;;  %v9537_v18 = vand.u32 4294901760, %v10034_v25  ;;  %v526_v7 = vand.u32 4294901760, %v525_v21  ;;  %v1809_v29 = vsub.f32 %v10031_v37, %v9532_v49  ;;  %v10035_v0 = vld [vmem:[#allocation109_spill] sm:$0xff]  ;;  %v10036_v49 = vld [vmem:[#allocation110_spill] sm:$0xff] }
  0xde   :  { %v538_v27 = vand.u32 4294901760, %v537_v11  ;;  %v1821_v9 = vsub.f32 %v10032_v16, %v9535_v23  ;;  %5149 = vmatpush1.bf16.msra.mxu0 %v5148_v15  ;;  %v531_v26 = vsub.f32 %v10033_v53, %v9536_v20  ;;  %v9539_v21 = vand.u32 4294901760, %v10035_v0  ;;  %v10037_v15 = vld [vmem:[#allocation112_spill] sm:$0xff] }
  0xdf   :  { %v5532_v22 = vpack.c.bf16 %v1804_v55, %v1792_v42  ;;  %v543_v32 = vsub.f32 %v10034_v25, %v9537_v18  ;;  %v1810_v11 = vand.u32 4294901760, %v1809_v29  ;;  %v9541_v37 = vand.u32 4294901760, %v10036_v49 }
  0xe0   :  { %v5150_v24 = vpack.c.bf16 %v538_v27, %v526_v7  ;;  %v1822_v17 = vand.u32 4294901760, %v1821_v9  ;;  %v532_v1 = vand.u32 4294901760, %v531_v26  ;;  %v1815_v42 = vsub.f32 %v10035_v0, %v9539_v21  ;;  %v10038_v27 = vld [vmem:[#allocation113_spill] sm:$0xff]  ;;  %v10039_v9 = vld [vmem:[#allocation114_spill] sm:$0xff] }
  0xe1   :  { %5533 = vmatpush1.bf16.msra.mxu1 %v5532_v22  ;;  %v544_v23 = vand.u32 4294901760, %v543_v32  ;;  %v9542_v55 = vand.u32 4294901760, %v10037_v15  ;;  %v1827_v18 = vsub.f32 %v10036_v49, %v9541_v37  ;;  %v9546_v29 = vand.u32 4294901760, %v10038_v27  ;;  %v10040_v32 = vld [vmem:[#allocation116_spill] sm:$0xff] }
  0xe2   :  { %5151 = vmatprep.subr.bf16.mxu0 %v5150_v24  ;;  %v5534_v20 = vpack.c.bf16 %v1822_v17, %v1810_v11  ;;  %v9547_v7 = vand.u32 4294901760, %v10039_v9  ;;  %v1816_v22 = vand.u32 4294901760, %v1815_v42  ;;  %v9548_v21 = vand.u32 4294901760, %v10040_v32  ;;  %v10041_v11 = vld [vmem:[#allocation118_spill] sm:$0xff]  ;;  %v10042_v42 = vld [vmem:[#allocation119_spill] sm:$0xff] }
  0xe3   :  { %v5152_v25 = vpack.c.bf16 %v544_v23, %v532_v1  ;;  %v549_v26 = vsub.f32 %v10037_v15, %v9542_v55  ;;  %v1828_v0 = vand.u32 4294901760, %v1827_v18  ;;  %v561_v17 = vsub.f32 %v10038_v27, %v9546_v29 }
  0xe4   :  { %5535 = vmatprep.subr.bf16.mxu1 %v5534_v20  ;;  %v1833_v24 = vsub.f32 %v10039_v9, %v9547_v7  ;;  %v9553_v37 = vand.u32 4294901760, %v10041_v11  ;;  %v1845_v23 = vsub.f32 %v10040_v32, %v9548_v21  ;;  %v9554_v55 = vand.u32 4294901760, %v10042_v42  ;;  %v10043_v20 = vld [vmem:[#allocation121_spill] sm:$0xff]  ;;  %v10044_v21 = vld [vmem:[#allocation122_spill] sm:$0xff] }
  0xe5   :  { %5153 = vmatpush1.bf16.msra.mxu0 %v5152_v25  ;;  %v550_v1 = vand.u32 4294901760, %v549_v26  ;;  %v9555_v18 = vand.u32 4294901760, %v10043_v20  ;;  %v5536_v49 = vpack.c.bf16 %v1828_v0, %v1816_v22  ;;  %v562_v15 = vand.u32 4294901760, %v561_v17  ;;  %v10045_v22 = vld [vmem:[#allocation124_spill] sm:$0xff] }
  0xe6   :  { %v1834_v53 = vand.u32 4294901760, %v1833_v24  ;;  %v555_v29 = vsub.f32 %v10041_v11, %v9553_v37  ;;  %v1846_v7 = vand.u32 4294901760, %v1845_v23  ;;  %v567_v25 = vsub.f32 %v10042_v42, %v9554_v55  ;;  %v10046_v24 = vld [vmem:[#allocation125_spill] sm:$0xff] }
  0xe7   :  { %v1839_v26 = vsub.f32 %v10043_v20, %v9555_v18  ;;  %v9560_v32 = vand.u32 4294901760, %v10044_v21  ;;  %5537 = vmatpush1.bf16.msra.mxu1 %v5536_v49  ;;  %v5154_v9 = vpack.c.bf16 %v562_v15, %v550_v1  ;;  %v9563_v17 = vand.u32 4294901760, %v10045_v22  ;;  %v10047_v15 = vld [vmem:[#allocation126_spill] sm:$0xff]  ;;  %v10048_v1 = vld [vmem:[#allocation128_spill] sm:$0xff] }
  0xe8   :  { %v556_v0 = vand.u32 4294901760, %v555_v29  ;;  %v9564_v27 = vand.u32 4294901760, %v10046_v24  ;;  %v5538_v16 = vpack.c.bf16 %v1846_v7, %v1834_v53  ;;  %v568_v37 = vand.u32 4294901760, %v567_v25  ;;  %v10049_v25 = vld [vmem:[#allocation130_spill] sm:$0xff] }
  0xe9   :  { %v1840_v23 = vand.u32 4294901760, %v1839_v26  ;;  %v1851_v55 = vsub.f32 %v10044_v21, %v9560_v32  ;;  %5155 = vmatprep.subr.bf16.mxu0 %v5154_v9  ;;  %v573_v18 = vsub.f32 %v10045_v22, %v9563_v17  ;;  %v9567_v29 = vand.u32 4294901760, %v10047_v15 }
  0xea   :  { %v585_v49 = vsub.f32 %v10046_v24, %v9564_v27  ;;  %v9570_v57 = vand.u32 4294901760, %v10048_v1  ;;  %5539 = vmatprep.subr.bf16.mxu1 %v5538_v16  ;;  %v5156_v53 = vpack.c.bf16 %v568_v37, %v556_v0  ;;  %v9571_v26 = vand.u32 4294901760, %v10049_v25 }
  0xeb   :  { %v1852_v7 = vand.u32 4294901760, %v1851_v55  ;;  %v9572_v32 = vand.u32 4294901760, %v10050_v30  ;;  %v574_v9 = vand.u32 4294901760, %v573_v18  ;;  %v1857_v17 = vsub.f32 %v10047_v15, %v9567_v29  ;;  %v10051_v55 = vld [vmem:[#allocation133_spill] sm:$0xff]  ;;  %v10052_v29 = vld [vmem:[#allocation134_spill] sm:$0xff] }
  0xec   :  { %v586_v38 = vand.u32 4294901760, %v585_v49  ;;  %v1869_v27 = vsub.f32 %v10048_v1, %v9570_v57  ;;  %5157 = vmatpush1.bf16.msra.mxu0 %v5156_v53  ;;  %v579_v37 = vsub.f32 %v10049_v25, %v9571_v26  ;;  %v9574_v18 = vand.u32 4294901760, %v10051_v55  ;;  %v10053_v53 = vld [vmem:[#allocation136_spill] sm:$0xff] }
  0xed   :  { %v5540_v24 = vpack.c.bf16 %v1852_v7, %v1840_v23  ;;  %v591_v16 = vsub.f32 %v10050_v30, %v9572_v32  ;;  %v1858_v49 = vand.u32 4294901760, %v1857_v17  ;;  %v9576_v15 = vand.u32 4294901760, %v10052_v29 }
  0xee   :  { %v5158_v0 = vpack.c.bf16 %v586_v38, %v574_v9  ;;  %v1870_v22 = vand.u32 4294901760, %v1869_v27  ;;  %v580_v21 = vand.u32 4294901760, %v579_v37  ;;  %v1863_v23 = vsub.f32 %v10051_v55, %v9574_v18  ;;  %v10054_v38 = vld [vmem:[#allocation137_spill] sm:$0xff]  ;;  %v10055_v27 = vld [vmem:[#allocation138_spill] sm:$0xff] }
  0xef   :  { %5541 = vmatpush1.bf16.msra.mxu1 %v5540_v24  ;;  %v592_v57 = vand.u32 4294901760, %v591_v16  ;;  %v9577_v7 = vand.u32 4294901760, %v10053_v53  ;;  %v1875_v32 = vsub.f32 %v10052_v29, %v9576_v15  ;;  %v9581_v17 = vand.u32 4294901760, %v10054_v38  ;;  %v10056_v16 = vld [vmem:[#allocation140_spill] sm:$0xff] }
  0xf0   :  { %5159 = vmatprep.subr.bf16.mxu0 %v5158_v0  ;;  %v5542_v26 = vpack.c.bf16 %v1870_v22, %v1858_v49  ;;  %v9582_v9 = vand.u32 4294901760, %v10055_v27  ;;  %v1864_v24 = vand.u32 4294901760, %v1863_v23  ;;  %v9583_v18 = vand.u32 4294901760, %v10056_v16  ;;  %v10057_v49 = vld [vmem:[#allocation142_spill] sm:$0xff]  ;;  %v10058_v23 = vld [vmem:[#allocation143_spill] sm:$0xff] }
  0xf1   :  { %v5160_v30 = vpack.c.bf16 %v592_v57, %v580_v21  ;;  %v597_v37 = vsub.f32 %v10053_v53, %v9577_v7  ;;  %v1876_v55 = vand.u32 4294901760, %v1875_v32  ;;  %v609_v22 = vsub.f32 %v10054_v38, %v9581_v17 }
  0xf2   :  { %5543 = vmatprep.subr.bf16.mxu1 %v5542_v26  ;;  %v1881_v0 = vsub.f32 %v10055_v27, %v9582_v9  ;;  %v9588_v15 = vand.u32 4294901760, %v10057_v49  ;;  %v1893_v21 = vsub.f32 %v10056_v16, %v9583_v18  ;;  %v9589_v7 = vand.u32 4294901760, %v10058_v23  ;;  %v10059_v26 = vld [vmem:[#allocation145_spill] sm:$0xff]  ;;  %v10060_v18 = vld [vmem:[#allocation146_spill] sm:$0xff] }
  0xf3   :  { %5161 = vmatpush1.bf16.msra.mxu0 %v5160_v30  ;;  %v598_v57 = vand.u32 4294901760, %v597_v37  ;;  %v9590_v32 = vand.u32 4294901760, %v10059_v26  ;;  %v5544_v53 = vpack.c.bf16 %v1876_v55, %v1864_v24  ;;  %v610_v29 = vand.u32 4294901760, %v609_v22  ;;  %v10061_v24 = vld [vmem:[#allocation148_spill] sm:$0xff] }
  0xf4   :  { %v1882_v25 = vand.u32 4294901760, %v1881_v0  ;;  %v603_v17 = vsub.f32 %v10057_v49, %v9588_v15  ;;  %v1894_v9 = vand.u32 4294901760, %v1893_v21  ;;  %v615_v30 = vsub.f32 %v10058_v23, %v9589_v7  ;;  %v10062_v0 = vld [vmem:[#allocation149_spill] sm:$0xff]  ;;  %v10066_v23 = vld [vmem:[#allocation155_spill] sm:$0xff] }
  0xf5   :  { %v1887_v37 = vsub.f32 %v10059_v26, %v9590_v32  ;;  %v9593_v16 = vand.u32 4294901760, %v10060_v18  ;;  %5545 = vmatpush1.bf16.msra.mxu1 %v5544_v53  ;;  %v5162_v27 = vpack.c.bf16 %v610_v29, %v598_v57  ;;  %v9595_v22 = vand.u32 4294901760, %v10061_v24  ;;  %v10063_v53 = vld [vmem:[#allocation150_spill] sm:$0xff]  ;;  %v10064_v57 = vld [vmem:[#allocation152_spill] sm:$0xff] }
  0xf6   :  { %v604_v55 = vand.u32 4294901760, %v603_v17  ;;  %v9596_v38 = vand.u32 4294901760, %v10062_v0  ;;  %v5546_v1 = vpack.c.bf16 %v1894_v9, %v1882_v25  ;;  %v616_v15 = vand.u32 4294901760, %v615_v30  ;;  %v10065_v30 = vld [vmem:[#allocation154_spill] sm:$0xff] }
  0xf7   :  { %v1888_v21 = vand.u32 4294901760, %v1887_v37  ;;  %v1899_v7 = vsub.f32 %v10060_v18, %v9593_v16  ;;  %5163 = vmatprep.subr.bf16.mxu0 %v5162_v27  ;;  %v621_v32 = vsub.f32 %v10061_v24, %v9595_v22  ;;  %v9599_v17 = vand.u32 4294901760, %v10063_v53 }
  0xf8   :  { %v633_v29 = vsub.f32 %v10062_v0, %v9596_v38  ;;  %v9602_v26 = vand.u32 4294901760, %v10064_v57  ;;  %5547 = vmatprep.subr.bf16.mxu1 %v5546_v1  ;;  %v5164_v25 = vpack.c.bf16 %v616_v15, %v604_v55  ;;  %v9603_v37 = vand.u32 4294901760, %v10065_v30 }
  0xf9   :  { %v1900_v9 = vand.u32 4294901760, %v1899_v7  ;;  %v9604_v16 = vand.u32 4294901760, %v10066_v23  ;;  %v622_v27 = vand.u32 4294901760, %v621_v32  ;;  %v1905_v22 = vsub.f32 %v10063_v53, %v9599_v17  ;;  %v10067_v7 = vld [vmem:[#allocation157_spill] sm:$0xff]  ;;  %v10068_v17 = vld [vmem:[#allocation158_spill] sm:$0xff] }
  0xfa   :  { %v634_v18 = vand.u32 4294901760, %v633_v29  ;;  %v1917_v38 = vsub.f32 %v10064_v57, %v9602_v26  ;;  %5165 = vmatpush1.bf16.msra.mxu0 %v5164_v25  ;;  %v627_v15 = vsub.f32 %v10065_v30, %v9603_v37  ;;  %v9606_v32 = vand.u32 4294901760, %v10067_v7  ;;  %v10069_v25 = vld [vmem:[#allocation160_spill] sm:$0xff] }
  0xfb   :  { %v5548_v0 = vpack.c.bf16 %v1900_v9, %v1888_v21  ;;  %v639_v1 = vsub.f32 %v10066_v23, %v9604_v16  ;;  %v1906_v29 = vand.u32 4294901760, %v1905_v22  ;;  %v9608_v53 = vand.u32 4294901760, %v10068_v17 }
  0xfc   :  { %v5166_v55 = vpack.c.bf16 %v634_v18, %v622_v27  ;;  %v1918_v24 = vand.u32 4294901760, %v1917_v38  ;;  %v628_v49 = vand.u32 4294901760, %v627_v15  ;;  %v1911_v21 = vsub.f32 %v10067_v7, %v9606_v32  ;;  %v10070_v18 = vld [vmem:[#allocation161_spill] sm:$0xff]  ;;  %v10071_v38 = vld [vmem:[#allocation162_spill] sm:$0xff] }
  0xfd   :  { %5549 = vmatpush1.bf16.msra.mxu1 %v5548_v0  ;;  %v640_v26 = vand.u32 4294901760, %v639_v1  ;;  %v9609_v9 = vand.u32 4294901760, %v10069_v25  ;;  %v1923_v16 = vsub.f32 %v10068_v17, %v9608_v53  ;;  %v9613_v22 = vand.u32 4294901760, %v10070_v18  ;;  %v10072_v1 = vld [vmem:[#allocation164_spill] sm:$0xff] }
  0xfe   :  { %5167 = vmatprep.subr.bf16.mxu0 %v5166_v55  ;;  %v5550_v37 = vpack.c.bf16 %v1918_v24, %v1906_v29  ;;  %v9614_v27 = vand.u32 4294901760, %v10071_v38  ;;  %v1912_v0 = vand.u32 4294901760, %v1911_v21  ;;  %v9615_v32 = vand.u32 4294901760, %v10072_v1  ;;  %v10073_v29 = vld [vmem:[#allocation166_spill] sm:$0xff]  ;;  %v10074_v21 = vld [vmem:[#allocation167_spill] sm:$0xff] }
  0xff   :  { %v5168_v23 = vpack.c.bf16 %v640_v26, %v628_v49  ;;  %v645_v15 = vsub.f32 %v10069_v25, %v9609_v9  ;;  %v1924_v7 = vand.u32 4294901760, %v1923_v16  ;;  %v657_v24 = vsub.f32 %v10070_v18, %v9613_v22 }
 0x100   :  { %5551 = vmatprep.subr.bf16.mxu1 %v5550_v37  ;;  %v1929_v55 = vsub.f32 %v10071_v38, %v9614_v27  ;;  %v9620_v53 = vand.u32 4294901760, %v10073_v29  ;;  %v1941_v26 = vsub.f32 %v10072_v1, %v9615_v32  ;;  %v9621_v9 = vand.u32 4294901760, %v10074_v21  ;;  %v10075_v37 = vld [vmem:[#allocation169_spill] sm:$0xff]  ;;  %v10076_v32 = vld [vmem:[#allocation170_spill] sm:$0xff] }
 0x101   :  { %5169 = vmatpush1.bf16.msra.mxu0 %v5168_v23  ;;  %v646_v49 = vand.u32 4294901760, %v645_v15  ;;  %v9622_v16 = vand.u32 4294901760, %v10075_v37  ;;  %v5552_v25 = vpack.c.bf16 %v1924_v7, %v1912_v0  ;;  %v658_v17 = vand.u32 4294901760, %v657_v24  ;;  %v10077_v0 = vld [vmem:[#allocation172_spill] sm:$0xff] }
 0x102   :  { %v1930_v30 = vand.u32 4294901760, %v1929_v55  ;;  %v651_v22 = vsub.f32 %v10073_v29, %v9620_v53  ;;  %v1942_v27 = vand.u32 4294901760, %v1941_v26  ;;  %v663_v23 = vsub.f32 %v10074_v21, %v9621_v9  ;;  %v10078_v55 = vld [vmem:[#allocation173_spill] sm:$0xff] }
 0x103   :  { %v1935_v15 = vsub.f32 %v10075_v37, %v9622_v16  ;;  %v9624_v1 = vand.u32 4294901760, %v10076_v32  ;;  %5553 = vmatpush1.bf16.msra.mxu1 %v5552_v25  ;;  %v5170_v38 = vpack.c.bf16 %v658_v17, %v646_v49  ;;  %v9626_v24 = vand.u32 4294901760, %v10077_v0  ;;  %v10079_v25 = vld [vmem:[#allocation174_spill] sm:$0xff]  ;;  %v10081_v37 = vld [vmem:[#allocation179_spill] sm:$0xff] }
 0x104   :  { %v652_v7 = vand.u32 4294901760, %v651_v22  ;;  %v9627_v18 = vand.u32 4294901760, %v10078_v55  ;;  %v5554_v57 = vpack.c.bf16 %v1942_v27, %v1930_v30  ;;  %v664_v53 = vand.u32 4294901760, %v663_v23  ;;  %v10080_v23 = vld [vmem:[#allocation178_spill] sm:$0xff] }
 0x105   :  { %v1936_v26 = vand.u32 4294901760, %v1935_v15  ;;  %v1947_v9 = vsub.f32 %v10076_v32, %v9624_v1  ;;  %5171 = vmatprep.subr.bf16.mxu0 %v5170_v38  ;;  %v669_v16 = vsub.f32 %v10077_v0, %v9626_v24  ;;  %v9630_v22 = vand.u32 4294901760, %v10079_v25 }
 0x106   :  { %v681_v17 = vsub.f32 %v10078_v55, %v9627_v18  ;;  %v9633_v49 = vand.u32 4294901760, %v6834_v54  ;;  %5555 = vmatprep.subr.bf16.mxu1 %v5554_v57  ;;  %v5172_v30 = vpack.c.bf16 %v664_v53, %v652_v7  ;;  %v9634_v15 = vand.u32 4294901760, %v10080_v23 }
 0x107   :  { %v1948_v27 = vand.u32 4294901760, %v1947_v9  ;;  %v9635_v1 = vand.u32 4294901760, %v10081_v37  ;;  %v670_v38 = vand.u32 4294901760, %v669_v16  ;;  %v1953_v24 = vsub.f32 %v10079_v25, %v9630_v22  ;;  %v10082_v9 = vld [vmem:[#allocation181_spill] sm:$0xff]  ;;  %v10083_v22 = vld [vmem:[#allocation182_spill] sm:$0xff] }
 0x108   :  { %v682_v32 = vand.u32 4294901760, %v681_v17  ;;  %v1965_v18 = vsub.f32 %v6834_v54, %v9633_v49  ;;  %5173 = vmatpush1.bf16.msra.mxu0 %v5172_v30  ;;  %v675_v53 = vsub.f32 %v10080_v23, %v9634_v15  ;;  %v9637_v16 = vand.u32 4294901760, %v10082_v9  ;;  %v10084_v30 = vld [vmem:[#allocation184_spill] sm:$0xff] }
 0x109   :  { %v5556_v55 = vpack.c.bf16 %v1948_v27, %v1936_v26  ;;  %v687_v57 = vsub.f32 %v10081_v37, %v9635_v1  ;;  %v1954_v17 = vand.u32 4294901760, %v1953_v24  ;;  %v9638_v25 = vand.u32 4294901760, %v10083_v22 }
 0x10a   :  { %v5174_v7 = vpack.c.bf16 %v682_v32, %v670_v38  ;;  %v1966_v0 = vand.u32 4294901760, %v1965_v18  ;;  %v676_v21 = vand.u32 4294901760, %v675_v53  ;;  %v1959_v26 = vsub.f32 %v10082_v9, %v9637_v16  ;;  %v10085_v32 = vld [vmem:[#allocation185_spill] sm:$0xff]  ;;  %v10086_v18 = vld [vmem:[#allocation186_spill] sm:$0xff] }
 0x10b   :  { %5557 = vmatpush1.bf16.msra.mxu1 %v5556_v55  ;;  %v688_v49 = vand.u32 4294901760, %v687_v57  ;;  %v9639_v27 = vand.u32 4294901760, %v10084_v30  ;;  %v1971_v1 = vsub.f32 %v10083_v22, %v9638_v25  ;;  %v9640_v24 = vand.u32 4294901760, %v10085_v32  ;;  %v10148_v9 = vld [vmem:[#allocation77_spill] sm:$0xff] }
 0x10c   :  { %5175 = vmatprep.subr.bf16.mxu0 %v5174_v7  ;;  %v5558_v15 = vpack.c.bf16 %v1966_v0, %v1954_v17  ;;  %v9641_v38 = vand.u32 4294901760, %v10086_v18  ;;  %v1960_v55 = vand.u32 4294901760, %v1959_v26  ;;  %v9642_v57 = vand.u32 4294901760, %v6862_v60 }
 0x10d   :  { %v5176_v37 = vpack.c.bf16 %v688_v49, %v676_v21  ;;  %v693_v53 = vsub.f32 %v10084_v30, %v9639_v27  ;;  %v1972_v16 = vand.u32 4294901760, %v1971_v1  ;;  %v705_v0 = vsub.f32 %v10085_v32, %v9640_v24 }
 0x10e   :  { %5559 = vmatprep.subr.bf16.mxu1 %v5558_v15  ;;  %v1977_v7 = vsub.f32 %v10086_v18, %v9641_v38  ;;  %v9646_v17 = vand.u32 4294901760, %v6866_v31  ;;  %v1989_v49 = vsub.f32 %v6862_v60, %v9642_v57  ;;  %v9647_v26 = vand.u32 4294901760, %v6868_v45 }
 0x10f   :  { %5177 = vmatpush1.bf16.msra.mxu0 %v5176_v37  ;;  %v694_v21 = vand.u32 4294901760, %v693_v53  ;;  %v9648_v1 = vand.u32 4294901760, %v6872_v14  ;;  %v5560_v15 = vpack.c.bf16 %v1972_v16, %v1960_v55  ;;  %v706_v25 = vand.u32 4294901760, %v705_v0  ;;  %v10087_v0 = vld [vmem:[#allocation197_spill] sm:$0xff] }
 0x110   :  { %v1978_v27 = vand.u32 4294901760, %v1977_v7  ;;  %v699_v24 = vsub.f32 %v6866_v31, %v9646_v17  ;;  %v1990_v38 = vand.u32 4294901760, %v1989_v49  ;;  %v711_v37 = vsub.f32 %v6868_v45, %v9647_v26 }
 0x111   :  { %v1983_v53 = vsub.f32 %v6872_v14, %v9648_v1  ;;  %v9649_v57 = vand.u32 4294901760, %v6874_v36  ;;  %5561 = vmatpush1.bf16.msra.mxu1 %v5560_v15  ;;  %v5178_v60 = vpack.c.bf16 %v706_v25, %v694_v21  ;;  %v9651_v55 = vand.u32 4294901760, %v6880_v2  ;;  %v10144_v14 = vld [vmem:[#allocation68_spill] sm:$0xff] }
 0x112   :  { %v700_v16 = vand.u32 4294901760, %v699_v24  ;;  %v9650_v7 = vand.u32 4294901760, %v10087_v0  ;;  %v5562_v18 = vpack.c.bf16 %v1990_v38, %v1978_v27  ;;  %v712_v17 = vand.u32 4294901760, %v711_v37 }
 0x113   :  { %v1984_v49 = vand.u32 4294901760, %v1983_v53  ;;  %v1995_v26 = vsub.f32 %v6874_v36, %v9649_v57  ;;  %5179 = vmatprep.subr.bf16.mxu0 %v5178_v60  ;;  %v717_v1 = vsub.f32 %v6880_v2, %v9651_v55  ;;  %v9653_v24 = vand.u32 4294901760, %v6886_v8  ;;  %v10145_v36 = vld [vmem:[#allocation70_spill] sm:$0xff] }
 0x114   :  { %v729_v25 = vsub.f32 %v10087_v0, %v9650_v7  ;;  %v9658_v21 = vand.u32 4294901760, %v6894_v59  ;;  %5563 = vmatprep.subr.bf16.mxu1 %v5562_v18  ;;  %v5180_v27 = vpack.c.bf16 %v712_v17, %v700_v16  ;;  %v9660_v15 = vand.u32 4294901760, %v6898_v47 }
 0x115   :  { %v1996_v38 = vand.u32 4294901760, %v1995_v26  ;;  %v9659_v37 = vand.u32 4294901760, %v6900_v28  ;;  %v718_v60 = vand.u32 4294901760, %v717_v1  ;;  %v2001_v57 = vsub.f32 %v6886_v8, %v9653_v24  ;;  %v10088_v26 = vld [vmem:[#allocation207_spill] sm:$0xff]  ;;  %v10089_v24 = vld [vmem:[#allocation208_spill] sm:$0xff] }
 0x116   :  { %v730_v53 = vand.u32 4294901760, %v729_v25  ;;  %v2013_v7 = vsub.f32 %v6894_v59, %v9658_v21  ;;  %5181 = vmatpush1.bf16.msra.mxu0 %v5180_v27  ;;  %v723_v18 = vsub.f32 %v6898_v47, %v9660_v15  ;;  %v9665_v1 = vand.u32 4294901760, %v10088_v26  ;;  %v10091_v15 = vld [vmem:[#allocation17_spill] sm:$0xff]  ;;  %v10095_v47 = vld [vmem:[#allocation23_spill] sm:$0xff] }
 0x117   :  { %v5564_v55 = vpack.c.bf16 %v1996_v38, %v1984_v49  ;;  %v735_v17 = vsub.f32 %v6900_v28, %v9659_v37  ;;  %v2002_v25 = vand.u32 4294901760, %v2001_v57  ;;  %v9666_v8 = vand.u32 4294901760, %v10089_v24  ;;  %v10090_v37 = vld [vmem:[#allocation16_spill] sm:$0xff]  ;;  %v10094_v28 = vld [vmem:[#allocation22_spill] sm:$0xff] }
 0x118   :  { %v5182_v16 = vpack.c.bf16 %v730_v53, %v718_v60  ;;  %v2014_v0 = vand.u32 4294901760, %v2013_v7  ;;  %v724_v2 = vand.u32 4294901760, %v723_v18  ;;  %v2007_v49 = vsub.f32 %v10088_v26, %v9665_v1  ;;  %v10093_v18 = vld [vmem:[#allocation20_spill] sm:$0xff] }
 0x119   :  { %5565 = vmatpush1.bf16.msra.mxu1 %v5564_v55  ;;  %v736_v21 = vand.u32 4294901760, %v735_v17  ;;  %v2019_v38 = vsub.f32 %v10089_v24, %v9666_v8  ;;  %v5186_v60 = vpack.c.bf16 %v10091_v15, %v10090_v37  ;;  %v10092_v55 = vld [vmem:[#allocation18_spill] sm:$0xff]  ;;  %v5188_v1 = vpack.c.bf16 %v10095_v47, %v10094_v28  ;;  %v10128_v15 = vld [vmem:[#allocation169_spill] sm:$0xff]  ;;  %v10135_v37 = vld [vmem:[#allocation188_spill] sm:$0xff] }
 0x11a   :  { %5183 = vmatprep.subr.bf16.mxu0 %v5182_v16  ;;  %v5566_v27 = vpack.c.bf16 %v2014_v0, %v2002_v25  ;;  %v2008_v7 = vand.u32 4294901760, %v2007_v49  ;;  %v5570_v17 = vpack.c.bf16 %v10093_v18, %v10092_v55  ;;  %v5190_v0 = vpack.c.bf16 %v6490_v46, %v6486_v41  ;;  %v10096_v25 = vld [vmem:[#allocation200_spill] sm:$0xff]  ;;  %v10097_v8 = vld [vmem:[#allocation122_spill] sm:$0xff]  ;;  %v10122_v41 = vld [vmem:[#allocation211_spill] sm:$0xff] }
 0x11b   :  { %v5184_v57 = vpack.c.bf16 %v736_v21, %v724_v2  ;;  %v2020_v53 = vand.u32 4294901760, %v2019_v38  ;;  %v5572_v2 = vpack.c.bf16 %v6484_v40, %v6482_v39  ;;  %v5574_v21 = vpack.c.bf16 %v6497_v50, %v6494_v48  ;;  %v10117_v50 = vld [vmem:[#allocation152_spill] sm:$0xff]  ;;  %v10125_v28 = vld [vmem:[#allocation162_spill] sm:$0xff]  ;;  %v10137_v39 = vld [vmem:[#allocation197_spill] sm:$0xff] }
 0x11c   :  { %5567 = vmatprep.subr.bf16.mxu1 %v5566_v27  ;;  %v5192_v49 = vpack.c.bf16 %v6505_v61, %v6499_v52  ;;  %v5576_v27 = vpack.c.bf16 %v6511_v4, %v6507_v62  ;;  %v5194_v38 = vpack.c.bf16 %v6518_v10, %v6515_v6  ;;  %v10110_v62 = vld [vmem:[#allocation142_spill] sm:$0xff]  ;;  %v10115_v61 = vld [vmem:[#allocation149_spill] sm:$0xff]  ;;  %v10123_v4 = vld [vmem:[#allocation160_spill] sm:$0xff] }
 0x11d   :  { %5185 = vmatpush1.bf16.msra.mxu0 %v5184_v57  ;;  %v5568_v16 = vpack.c.bf16 %v2020_v53, %v2008_v7  ;;  %v5196_v57 = vpack.c.bf16 %v6533_v34, %v6531_v33  ;;  %v5198_v7 = vpack.c.bf16 %v6547_v56, %v6543_v51  ;;  %v5582_v53 = vpack.c.bf16 %v6554_v63, %v6551_v58  ;;  %v10100_v56 = vld [vmem:[#allocation126_spill] sm:$0xff]  ;;  %v10101_v63 = vld [vmem:[#allocation128_spill] sm:$0xff]  ;;  %v10111_v34 = vld [vmem:[#allocation143_spill] sm:$0xff] }
 0x11e   :  { %5187 = vmatprep.subr.bf16.mxu0 %v5186_v60  ;;  %v5578_v60 = vpack.c.bf16 %v6524_v13, %v6522_v12  ;;  %v10102_v51 = vld [vmem:[#allocation130_spill] sm:$0xff]  ;;  %v10114_v58 = vld [vmem:[#allocation148_spill] sm:$0xff]  ;;  %v10127_v52 = vld [vmem:[#allocation167_spill] sm:$0xff] }
 0x11f   :  { %5569 = vmatpush1.bf16.msra.mxu1 %v5568_v16  ;;  %v5202_v16 = vpack.c.bf16 %v6573_v5, %v6571_v3  ;;  %v10105_v33 = vld [vmem:[#allocation134_spill] sm:$0xff]  ;;  %v10106_v3 = vld [vmem:[#allocation136_spill] sm:$0xff]  ;;  %v10131_v5 = vld [vmem:[#allocation173_spill] sm:$0xff] }
 0x120   :  { %741 = vmatmul.mubr.f32.vlgmr.msra.gmra.mrb[0].mxu0 %v10096_v25  ;;  %5571 = vmatprep.subr.bf16.mxu1 %v5570_v17  ;;  %v5200_v17 = vpack.c.bf16 %v6561_v35, %v6557_v19  ;;  %v10103_v35 = vld [vmem:[#allocation131_spill] sm:$0xff]  ;;  %v10104_v19 = vld [vmem:[#allocation133_spill] sm:$0xff]  ;;  %v10108_v12 = vld [vmem:[#allocation138_spill] sm:$0xff] }
 0x121   :  { %5189 = vmatpush1.bf16.msra.mxu0 %v5188_v1  ;;  %v5580_v1 = vpack.c.bf16 %v6539_v44, %v6537_v43  ;;  %v10098_v44 = vld [vmem:[#allocation124_spill] sm:$0xff]  ;;  %v10099_v43 = vld [vmem:[#allocation125_spill] sm:$0xff]  ;;  %v10113_v10 = vld [vmem:[#allocation146_spill] sm:$0xff]  ;;  %941 = vmatprep.mubr.f32.mxu0 %v10122_v41 }
 0x122   :  { %5191 = vmatprep.subr.bf16.mxu0 %v5190_v0  ;;  %2025 = vmatmul.mubr.f32.vlgmr.msra.gmra.mrb[0].mxu1 %v10096_v25  ;;  %v10107_v0 = vld [vmem:[#allocation137_spill] sm:$0xff]  ;;  %v10109_v25 = vld [vmem:[#allocation140_spill] sm:$0xff]  ;;  %v10129_v48 = vld [vmem:[#allocation170_spill] sm:$0xff] }
 0x123   :  { %5573 = vmatpush1.bf16.msra.mxu1 %v5572_v2  ;;  %v10116_v2 = vld [vmem:[#allocation150_spill] sm:$0xff]  ;;  %v10126_v6 = vld [vmem:[#allocation164_spill] sm:$0xff]  ;;  %v10133_v13 = vld [vmem:[#allocation179_spill] sm:$0xff]  ;;  %2225 = vmatprep.mubr.f32.mxu1 %v10122_v41 }
 0x124   :  { %5575 = vmatprep.subr.bf16.mxu1 %v5574_v21  ;;  %v10124_v21 = vld [vmem:[#allocation161_spill] sm:$0xff]  ;;  %v10130_v40 = vld [vmem:[#allocation172_spill] sm:$0xff]  ;;  %v10143_v46 = vld [vmem:[#allocation66_spill] sm:$0xff] }
 0x125   :  { %5193 = vmatpush1.bf16.msra.mxu0 %v5192_v49  ;;  %v10112_v49 = vld [vmem:[#allocation145_spill] sm:$0xff]  ;;  %v5586_v54 = vpack.c.bf16 %v10144_v14, %v10143_v46  ;;  %v10147_v47 = vld [vmem:[#allocation76_spill] sm:$0xff] }
 0x126   :  { %5195 = vmatprep.subr.bf16.mxu0 %v5194_v38  ;;  %v10119_v38 = vld [vmem:[#allocation155_spill] sm:$0xff]  ;;  %v10141_v55 = vld [vmem:[#allocation61_spill] sm:$0xff]  ;;  %v5206_v23 = vpack.c.bf16 %v10148_v9, %v10147_v47  ;;  %v10155_v14 = vld [vmem:[#allocation88_spill] sm:$0xff] }
 0x127   :  { %5577 = vmatpush1.bf16.msra.mxu1 %v5576_v27  ;;  %v10146_v27 = vld [vmem:[#allocation71_spill] sm:$0xff]  ;;  %v10149_v41 = vld [vmem:[#allocation73_spill] sm:$0xff] }
 0x128   :  { %5579 = vmatprep.subr.bf16.mxu1 %v5578_v60  ;;  %v10142_v60 = vld [vmem:[#allocation62_spill] sm:$0xff]  ;;  %v10156_v46 = vld [vmem:[#allocation89_spill] sm:$0xff] }
 0x129   :  { %5197 = vmatpush1.bf16.msra.mxu0 %v5196_v57  ;;  %v5584_v29 = vpack.c.bf16 %v10142_v60, %v10141_v55  ;;  %v10151_v60 = vld [vmem:[#allocation78_spill] sm:$0xff]  ;;  %v10152_v57 = vld [vmem:[#allocation80_spill] sm:$0xff]  ;;  %v10154_v55 = vld [vmem:[#allocation83_spill] sm:$0xff] }
 0x12a   :  { %5199 = vmatprep.subr.bf16.mxu0 %v5198_v7  ;;  %v5204_v7 = vpack.c.bf16 %v10146_v27, %v10145_v36  ;;  %v5210_v27 = vpack.c.bf16 %v10156_v46, %v10155_v14  ;;  %v10158_v36 = vld [vmem:[#allocation86_spill] sm:$0xff] }
 0x12b   :  { %5581 = vmatpush1.bf16.msra.mxu1 %v5580_v1  ;;  %v10150_v1 = vld [vmem:[#allocation74_spill] sm:$0xff] }
 0x12c   :  { %5583 = vmatprep.subr.bf16.mxu1 %v5582_v53  ;;  %v5588_v18 = vpack.c.bf16 %v10150_v1, %v10149_v41  ;;  %v5590_v53 = vpack.c.bf16 %v10152_v57, %v10151_v60  ;;  %v10160_v1 = vld [vmem:[#allocation92_spill] sm:$0xff]  ;;  %v10162_v41 = vld [vmem:[#allocation95_spill] sm:$0xff]  ;;  %v10164_v60 = vld [vmem:[#allocation101_spill] sm:$0xff] }
 0x12d   :  { %5201 = vmatpush1.bf16.msra.mxu0 %v5200_v17  ;;  %v10153_v17 = vld [vmem:[#allocation82_spill] sm:$0xff]  ;;  %v10163_v57 = vld [vmem:[#allocation100_spill] sm:$0xff] }
 0x12e   :  { %5203 = vmatprep.subr.bf16.mxu0 %v5202_v16  ;;  %v5208_v26 = vpack.c.bf16 %v10154_v55, %v10153_v17  ;;  %v10157_v16 = vld [vmem:[#allocation85_spill] sm:$0xff]  ;;  %v5214_v55 = vpack.c.bf16 %v10164_v60, %v10163_v57  ;;  %v10166_v17 = vld [vmem:[#allocation98_spill] sm:$0xff] }
 0x12f   :  { %5585 = vmatpush1.bf16.msra.mxu1 %v5584_v29  ;;  %v5592_v9 = vpack.c.bf16 %v10158_v36, %v10157_v16  ;;  %v10159_v29 = vld [vmem:[#allocation90_spill] sm:$0xff]  ;;  %v10168_v36 = vld [vmem:[#allocation104_spill] sm:$0xff]  ;;  %v10170_v16 = vld [vmem:[#allocation107_spill] sm:$0xff] }
 0x130   :  { %5587 = vmatprep.subr.bf16.mxu1 %v5586_v54  ;;  %v5594_v54 = vpack.c.bf16 %v10160_v1, %v10159_v29  ;;  %v10171_v1 = vld [vmem:[#allocation112_spill] sm:$0xff]  ;;  %v10172_v29 = vld [vmem:[#allocation113_spill] sm:$0xff] }
 0x131   :  { %5205 = vmatpush1.bf16.msra.mxu0 %v5204_v7  ;;  %v10161_v7 = vld [vmem:[#allocation94_spill] sm:$0xff] }
 0x132   :  { %5207 = vmatprep.subr.bf16.mxu0 %v5206_v23  ;;  %v5212_v47 = vpack.c.bf16 %v10162_v41, %v10161_v7  ;;  %v10165_v23 = vld [vmem:[#allocation97_spill] sm:$0xff]  ;;  %v5218_v41 = vpack.c.bf16 %v10172_v29, %v10171_v1  ;;  %v10174_v7 = vld [vmem:[#allocation110_spill] sm:$0xff] }
 0x133   :  { %5589 = vmatpush1.bf16.msra.mxu1 %v5588_v18  ;;  %v5596_v46 = vpack.c.bf16 %v10166_v17, %v10165_v23  ;;  %v10167_v18 = vld [vmem:[#allocation102_spill] sm:$0xff]  ;;  %v10176_v17 = vld [vmem:[#allocation116_spill] sm:$0xff] }
 0x134   :  { %5591 = vmatprep.subr.bf16.mxu1 %v5590_v53  ;;  %v5598_v53 = vpack.c.bf16 %v10168_v36, %v10167_v18 }
 0x135   :  { %5209 = vmatpush1.bf16.msra.mxu0 %v5208_v26  ;;  %v10169_v26 = vld [vmem:[#allocation106_spill] sm:$0xff] }
 0x136   :  { %5211 = vmatprep.subr.bf16.mxu0 %v5210_v27  ;;  %v5216_v14 = vpack.c.bf16 %v10170_v16, %v10169_v26  ;;  %v10173_v27 = vld [vmem:[#allocation109_spill] sm:$0xff] }
 0x137   :  { %5593 = vmatpush1.bf16.msra.mxu1 %v5592_v9  ;;  %v5600_v60 = vpack.c.bf16 %v10174_v7, %v10173_v27  ;;  %v10175_v9 = vld [vmem:[#allocation114_spill] sm:$0xff] }
 0x138   :  { %5595 = vmatprep.subr.bf16.mxu1 %v5594_v54  ;;  %v5602_v54 = vpack.c.bf16 %v10176_v17, %v10175_v9 }
 0x139   :  { %5213 = vmatpush1.bf16.msra.mxu0 %v5212_v47  ;;  %v10177_v47 = vpack.c.bf16 %v10042_v42, %v10041_v11 }
 0x13a   :  { %5215 = vmatprep.subr.bf16.mxu0 %v5214_v55  ;;  %v10178_v55 = vpack.c.bf16 %v10099_v43, %v10098_v44 }
 0x13b   :  { %5597 = vmatpush1.bf16.msra.mxu1 %v5596_v46  ;;  %v10179_v46 = vpack.c.bf16 %v10097_v8, %v10043_v20 }
 0x13c   :  { %5599 = vmatprep.subr.bf16.mxu1 %v5598_v53  ;;  %v10183_v53 = vpack.c.bf16 %v10105_v33, %v10104_v19 }
 0x13d   :  { %5217 = vmatpush1.bf16.msra.mxu0 %v5216_v14  ;;  %v10180_v14 = vpack.c.bf16 %v10101_v63, %v10100_v56 }
 0x13e   :  { %5219 = vmatprep.subr.bf16.mxu0 %v5218_v41  ;;  %v10182_v41 = vpack.c.bf16 %v10107_v0, %v10106_v3 }
 0x13f   :  { %5601 = vmatpush1.bf16.msra.mxu1 %v5600_v60  ;;  %v10181_v60 = vpack.c.bf16 %v10103_v35, %v10102_v51 }
 0x140   :  { %5603 = vmatprep.subr.bf16.mxu1 %v5602_v54  ;;  %v10184_v54 = vpack.c.bf16 %v10109_v25, %v10108_v12 }
 0x141   :  { %5221 = vmatpush1.bf16.msra.mxu0 %v10177_v47  ;;  %v10185_v47 = vpack.c.bf16 %v10111_v34, %v10110_v62 }
 0x142   :  { %5223 = vmatprep.subr.bf16.mxu0 %v10178_v55  ;;  %v10186_v55 = vpack.c.bf16 %v10115_v61, %v10114_v58 }
 0x143   :  { %5605 = vmatpush1.bf16.msra.mxu1 %v10179_v46  ;;  %v10187_v46 = vpack.c.bf16 %v10113_v10, %v10112_v49 }
 0x144   :  { %5607 = vmatprep.subr.bf16.mxu1 %v10180_v14  ;;  %v10188_v14 = vpack.c.bf16 %v10117_v50, %v10116_v2 }
 0x145   :  { %5225 = vmatpush1.bf16.msra.mxu0 %v10181_v60  ;;  %v10189_v60 = vld [vmem:[#allocation154_spill] sm:$0xff] }
 0x146   :  { %5227 = vmatprep.subr.bf16.mxu0 %v10182_v41  ;;  %v10190_v41 = vpack.c.bf16 %v10119_v38, %v10189_v60 }
 0x147   :  { %5609 = vmatpush1.bf16.msra.mxu1 %v10183_v53  ;;  %v10191_v53 = vpack.c.bf16 %v10124_v21, %v10123_v4  ;;  %v10201_v21 = vld [vmem:[#allocation174_spill] sm:$0xff] }
 0x148   :  { %5611 = vmatprep.subr.bf16.mxu1 %v10184_v54  ;;  %v10192_v54 = vld [vmem:[#allocation158_spill] sm:$0xff] }
 0x149   :  { %5229 = vmatpush1.bf16.msra.mxu0 %v10185_v47  ;;  %v10193_v47 = vld [vmem:[#allocation157_spill] sm:$0xff] }
 0x14a   :  { %5231 = vmatprep.subr.bf16.mxu0 %v10186_v55  ;;  %v10194_v61 = vpack.c.bf16 %v10192_v54, %v10193_v47  ;;  %v10195_v55 = vpack.c.bf16 %v10126_v6, %v10125_v28 }
 0x14b   :  { %5613 = vmatpush1.bf16.msra.mxu1 %v10187_v46  ;;  %v10196_v46 = vld [vmem:[#allocation166_spill] sm:$0xff] }
 0x14c   :  { %5615 = vmatprep.subr.bf16.mxu1 %v10188_v14  ;;  %v10197_v50 = vpack.c.bf16 %v10127_v52, %v10196_v46  ;;  %v10198_v14 = vpack.c.bf16 %v10131_v5, %v10130_v40 }
 0x14d   :  { %5233 = vmatpush1.bf16.msra.mxu0 %v10190_v41  ;;  %v10199_v41 = vpack.c.bf16 %v10129_v48, %v10128_v15  ;;  %v10320_v15 = vld [vmem:[#allocation41_spill] sm:$0xff] }
 0x14e   :  { %5235 = vmatprep.subr.bf16.mxu0 %v10191_v53  ;;  %v10200_v53 = vld [vmem:[#allocation176_spill] sm:$0xff] }
 0x14f   :  { %5617 = vmatpush1.bf16.msra.mxu1 %v10194_v61  ;;  %v10202_v54 = vpack.c.bf16 %v10200_v53, %v10201_v21  ;;  %v10203_v61 = vld [vmem:[#allocation178_spill] sm:$0xff] }
 0x150   :  { %5619 = vmatprep.subr.bf16.mxu1 %v10195_v55  ;;  %v10204_v6 = vpack.c.bf16 %v10133_v13, %v10203_v61  ;;  %v10205_v55 = vpack.c.bf16 %v10085_v32, %v10084_v30  ;;  %v10214_v61 = vld [vmem:[#allocation193_spill] sm:$0xff]  ;;  %v10304_v30 = vld [vmem:[#allocation206_spill] sm:$0xff] }
 0x151   :  { %5237 = vmatpush1.bf16.msra.mxu0 %v10197_v50  ;;  %v10206_v50 = vld [vmem:[#allocation181_spill] sm:$0xff]  ;;  %v10308_v53 = vld [vmem:[#allocation26_spill] sm:$0xff] }
 0x152   :  { %5239 = vmatprep.subr.bf16.mxu0 %v10198_v14  ;;  %v10207_v5 = vpack.c.bf16 %v10083_v22, %v10206_v50  ;;  %v10208_v14 = vld [vmem:[#allocation186_spill] sm:$0xff]  ;;  %v10219_v50 = vld [vmem:[#allocation204_spill] sm:$0xff] }
 0x153   :  { %5621 = vmatpush1.bf16.msra.mxu1 %v10199_v41  ;;  %v10209_v48 = vpack.c.bf16 %v10135_v37, %v10208_v14  ;;  %v10210_v41 = vpack.c.bf16 %v6868_v45, %v6866_v31  ;;  %v10298_v31 = vld [vmem:[#allocation23_spill] sm:$0xff] }
 0x154   :  { %5623 = vmatprep.subr.bf16.mxu1 %v10202_v54  ;;  %v10211_v54 = vld [vmem:[#allocation196_spill] sm:$0xff] }
 0x155   :  { %5241 = vmatpush1.bf16.msra.mxu0 %v10204_v6  ;;  %v10212_v13 = vpack.c.bf16 %v10137_v39, %v10211_v54  ;;  %v10213_v6 = vld [vmem:[#allocation194_spill] sm:$0xff] }
 0x156   :  { %5243 = vmatprep.subr.bf16.mxu0 %v10205_v55  ;;  %v10215_v32 = vpack.c.bf16 %v10213_v6, %v10214_v61  ;;  %v10216_v55 = vld [vmem:[#allocation198_spill] sm:$0xff]  ;;  %v10226_v6 = vld [vmem:[#allocation21_spill] sm:$0xff] }
 0x157   :  { %5625 = vmatpush1.bf16.msra.mxu1 %v10207_v5  ;;  %v10217_v22 = vpack.c.bf16 %v6894_v59, %v10216_v55  ;;  %v10218_v5 = vld [vmem:[#allocation205_spill] sm:$0xff]  ;;  %v10224_v39 = vld [vmem:[#allocation210_spill] sm:$0xff] }
 0x158   :  { %5627 = vmatprep.subr.bf16.mxu1 %v10209_v48  ;;  %v10220_v37 = vpack.c.bf16 %v10218_v5, %v10219_v50  ;;  %v10221_v48 = vld [vmem:[#allocation15_spill] sm:$0xff]  ;;  %v10228_v59 = vld [vmem:[#allocation213_spill] sm:$0xff]  ;;  %v10296_v54 = vld [vmem:[#allocation22_spill] sm:$0xff] }
 0x159   :  { %5245 = vmatpush1.bf16.msra.mxu0 %v10210_v41  ;;  %v10222_v41 = vld [vmem:[#allocation207_spill] sm:$0xff]  ;;  %v10287_v5 = vld [vmem:[#allocation17_spill] sm:$0xff] }
 0x15a   :  { %5247 = vmatprep.subr.bf16.mxu0 %v10212_v13  ;;  %v10223_v45 = vpack.c.bf16 %v10089_v24, %v10222_v41  ;;  %v10225_v13 = vld [vmem:[#allocation19_spill] sm:$0xff]  ;;  %v10233_v24 = vld [vmem:[#allocation37_spill] sm:$0xff]  ;;  %v10237_v41 = vld [vmem:[#allocation48_spill] sm:$0xff] }
 0x15b   :  { %5629 = vmatpush1.bf16.msra.mxu1 %v10215_v32  ;;  %v10227_v32 = vld [vmem:[#allocation28_spill] sm:$0xff] }
 0x15c   :  { %5631 = vmatprep.subr.bf16.mxu1 %v10217_v22  ;;  %v10229_v22 = vld [vmem:[#allocation24_spill] sm:$0xff] }
 0x15d   :  { %5249 = vmatpush1.bf16.msra.mxu0 %v10220_v37  ;;  %v10230_v37 = vld [vmem:[#allocation30_spill] sm:$0xff] }
 0x15e   :  { %5251 = vmatprep.subr.bf16.mxu0 %v10221_v48  ;;  %v10231_v48 = vld [vmem:[#allocation34_spill] sm:$0xff] }
 0x15f   :  { %5633 = vmatpush1.bf16.msra.mxu1 %v10223_v45  ;;  %v10232_v45 = vld [vmem:[#allocation39_spill] sm:$0xff] }
 0x160   :  { %944 = vmatmul.mubr.f32.vlgmr.msra.gmra.mrb[0].mxu0 %v10224_v39  ;;  %5635 = vmatprep.subr.bf16.mxu1 %v10225_v13  ;;  %v10234_v13 = vld [vmem:[#allocation42_spill] sm:$0xff] }
 0x161   :  { %5253 = vmatpush1.bf16.msra.mxu0 %v10226_v6  ;;  %1081 = vmatprep.mubr.f32.mxu0 %v10228_v59  ;;  %v10235_v6 = vld [vmem:[#allocation45_spill] sm:$0xff] }
 0x162   :  { %5255 = vmatprep.subr.bf16.mxu0 %v10227_v32  ;;  %2228 = vmatmul.mubr.f32.vlgmr.msra.gmra.mrb[0].mxu1 %v10224_v39  ;;  %v10236_v32 = vld [vmem:[#allocation51_spill] sm:$0xff]  ;;  %v10238_v39 = vld [vmem:[#allocation54_spill] sm:$0xff] }
 0x163   :  { %5637 = vmatpush1.bf16.msra.mxu1 %v10229_v22  ;;  %2365 = vmatprep.mubr.f32.mxu1 %v10228_v59  ;;  %v10239_v22 = vld [vmem:[#allocation58_spill] sm:$0xff]  ;;  %v10240_v59 = vld [vmem:[#allocation63_spill] sm:$0xff] }
 0x164   :  { %5639 = vmatprep.subr.bf16.mxu1 %v10230_v37  ;;  %v10241_v37 = vld [vmem:[#allocation60_spill] sm:$0xff] }
 0x165   :  { %5257 = vmatpush1.bf16.msra.mxu0 %v10231_v48  ;;  %v10242_v48 = vld [vmem:[#allocation67_spill] sm:$0xff] }
 0x166   :  { %5259 = vmatprep.subr.bf16.mxu0 %v10232_v45  ;;  %v10243_v45 = vld [vmem:[#allocation69_spill] sm:$0xff] }
 0x167   :  { %5641 = vmatpush1.bf16.msra.mxu1 %v10233_v24  ;;  %v10244_v24 = vld [vmem:[#allocation75_spill] sm:$0xff] }
 0x168   :  { %5643 = vmatprep.subr.bf16.mxu1 %v10234_v13  ;;  %v10245_v13 = vld [vmem:[#allocation72_spill] sm:$0xff] }
 0x169   :  { %5261 = vmatpush1.bf16.msra.mxu0 %v10235_v6  ;;  %v10246_v6 = vld [vmem:[#allocation79_spill] sm:$0xff] }
 0x16a   :  { %5263 = vmatprep.subr.bf16.mxu0 %v10236_v32  ;;  %v10247_v32 = vld [vmem:[#allocation81_spill] sm:$0xff] }
 0x16b   :  { %5645 = vmatpush1.bf16.msra.mxu1 %v10237_v41  ;;  %v10248_v41 = vld [vmem:[#allocation87_spill] sm:$0xff] }
 0x16c   :  { %5647 = vmatprep.subr.bf16.mxu1 %v10238_v39  ;;  %v10249_v39 = vld [vmem:[#allocation84_spill] sm:$0xff] }
 0x16d   :  { %5265 = vmatpush1.bf16.msra.mxu0 %v10239_v22  ;;  %v10250_v22 = vld [vmem:[#allocation91_spill] sm:$0xff] }
 0x16e   :  { %5267 = vmatprep.subr.bf16.mxu0 %v10240_v59  ;;  %v10251_v59 = vld [vmem:[#allocation93_spill] sm:$0xff] }
 0x16f   :  { %5649 = vmatpush1.bf16.msra.mxu1 %v10241_v37  ;;  %v10252_v37 = vld [vmem:[#allocation99_spill] sm:$0xff] }
 0x170   :  { %5651 = vmatprep.subr.bf16.mxu1 %v10242_v48  ;;  %v10253_v48 = vld [vmem:[#allocation96_spill] sm:$0xff] }
 0x171   :  { %5269 = vmatpush1.bf16.msra.mxu0 %v10243_v45  ;;  %v10254_v45 = vld [vmem:[#allocation103_spill] sm:$0xff] }
 0x172   :  { %5271 = vmatprep.subr.bf16.mxu0 %v10244_v24  ;;  %v10255_v24 = vld [vmem:[#allocation105_spill] sm:$0xff] }
 0x173   :  { %5653 = vmatpush1.bf16.msra.mxu1 %v10245_v13  ;;  %v10256_v13 = vld [vmem:[#allocation111_spill] sm:$0xff] }
 0x174   :  { %5655 = vmatprep.subr.bf16.mxu1 %v10246_v6  ;;  %v10257_v6 = vld [vmem:[#allocation108_spill] sm:$0xff] }
 0x175   :  { %5273 = vmatpush1.bf16.msra.mxu0 %v10247_v32  ;;  %v10258_v32 = vld [vmem:[#allocation115_spill] sm:$0xff] }
 0x176   :  { %5275 = vmatprep.subr.bf16.mxu0 %v10248_v41  ;;  %v10259_v41 = vld [vmem:[#allocation117_spill] sm:$0xff] }
 0x177   :  { %5657 = vmatpush1.bf16.msra.mxu1 %v10249_v39  ;;  %v10260_v39 = vld [vmem:[#allocation123_spill] sm:$0xff] }
 0x178   :  { %5659 = vmatprep.subr.bf16.mxu1 %v10250_v22  ;;  %v10261_v22 = vld [vmem:[#allocation120_spill] sm:$0xff] }
 0x179   :  { %5277 = vmatpush1.bf16.msra.mxu0 %v10251_v59  ;;  %v10262_v59 = vld [vmem:[#allocation127_spill] sm:$0xff] }
 0x17a   :  { %5279 = vmatprep.subr.bf16.mxu0 %v10252_v37  ;;  %v10263_v37 = vld [vmem:[#allocation129_spill] sm:$0xff] }
 0x17b   :  { %5661 = vmatpush1.bf16.msra.mxu1 %v10253_v48  ;;  %v10264_v48 = vld [vmem:[#allocation135_spill] sm:$0xff] }
 0x17c   :  { %5663 = vmatprep.subr.bf16.mxu1 %v10254_v45  ;;  %v10265_v45 = vld [vmem:[#allocation132_spill] sm:$0xff] }
 0x17d   :  { %5281 = vmatpush1.bf16.msra.mxu0 %v10255_v24  ;;  %v10266_v24 = vld [vmem:[#allocation139_spill] sm:$0xff] }
 0x17e   :  { %5283 = vmatprep.subr.bf16.mxu0 %v10256_v13  ;;  %v10267_v13 = vld [vmem:[#allocation141_spill] sm:$0xff] }
 0x17f   :  { %5665 = vmatpush1.bf16.msra.mxu1 %v10257_v6  ;;  %v10268_v6 = vld [vmem:[#allocation147_spill] sm:$0xff] }
 0x180   :  { %5667 = vmatprep.subr.bf16.mxu1 %v10258_v32  ;;  %v10269_v32 = vld [vmem:[#allocation144_spill] sm:$0xff] }
 0x181   :  { %5285 = vmatpush1.bf16.msra.mxu0 %v10259_v41  ;;  %v10270_v41 = vld [vmem:[#allocation151_spill] sm:$0xff] }
 0x182   :  { %5287 = vmatprep.subr.bf16.mxu0 %v10260_v39  ;;  %v10271_v39 = vld [vmem:[#allocation153_spill] sm:$0xff] }
 0x183   :  { %5669 = vmatpush1.bf16.msra.mxu1 %v10261_v22  ;;  %v10272_v22 = vld [vmem:[#allocation159_spill] sm:$0xff] }
 0x184   :  { %5671 = vmatprep.subr.bf16.mxu1 %v10262_v59  ;;  %v10273_v59 = vld [vmem:[#allocation156_spill] sm:$0xff] }
 0x185   :  { %5289 = vmatpush1.bf16.msra.mxu0 %v10263_v37  ;;  %v10274_v37 = vld [vmem:[#allocation163_spill] sm:$0xff] }
 0x186   :  { %5291 = vmatprep.subr.bf16.mxu0 %v10264_v48  ;;  %v10275_v48 = vld [vmem:[#allocation165_spill] sm:$0xff] }
 0x187   :  { %5673 = vmatpush1.bf16.msra.mxu1 %v10265_v45  ;;  %v10276_v45 = vld [vmem:[#allocation171_spill] sm:$0xff] }
 0x188   :  { %5675 = vmatprep.subr.bf16.mxu1 %v10266_v24  ;;  %v10277_v24 = vld [vmem:[#allocation168_spill] sm:$0xff] }
 0x189   :  { %5293 = vmatpush1.bf16.msra.mxu0 %v10267_v13  ;;  %v10278_v13 = vld [vmem:[#allocation175_spill] sm:$0xff] }
 0x18a   :  { %5295 = vmatprep.subr.bf16.mxu0 %v10268_v6  ;;  %v10279_v6 = vld [vmem:[#allocation177_spill] sm:$0xff] }
 0x18b   :  { %5677 = vmatpush1.bf16.msra.mxu1 %v10269_v32  ;;  %v10280_v32 = vld [vmem:[#allocation183_spill] sm:$0xff] }
 0x18c   :  { %5679 = vmatprep.subr.bf16.mxu1 %v10270_v41  ;;  %v10281_v41 = vld [vmem:[#allocation180_spill] sm:$0xff] }
 0x18d   :  { %5297 = vmatpush1.bf16.msra.mxu0 %v10271_v39  ;;  %v10282_v39 = vld [vmem:[#allocation187_spill] sm:$0xff] }
 0x18e   :  { %5299 = vmatprep.subr.bf16.mxu0 %v10272_v22  ;;  %v10283_v22 = vld [vmem:[#allocation189_spill] sm:$0xff] }
 0x18f   :  { %5681 = vmatpush1.bf16.msra.mxu1 %v10273_v59  ;;  %v10284_v59 = vld [vmem:[#allocation195_spill] sm:$0xff] }
 0x190   :  { %5683 = vmatprep.subr.bf16.mxu1 %v10274_v37  ;;  %v10285_v37 = vld [vmem:[#allocation16_spill] sm:$0xff] }
 0x191   :  { %5301 = vmatpush1.bf16.msra.mxu0 %v10275_v48  ;;  %v10286_v48 = vand.u32 4294901760, %v10285_v37  ;;  %v10300_v37 = vld [vmem:[#allocation27_spill] sm:$0xff] }
 0x192   :  { %5303 = vmatprep.subr.bf16.mxu0 %v10276_v45  ;;  %v10288_v45 = vand.u32 4294901760, %v10287_v5  ;;  %v10301_v5 = vand.u32 4294901760, %v10300_v37 }
 0x193   :  { %5685 = vmatpush1.bf16.msra.mxu1 %v10277_v24  ;;  %v10289_v24 = vld [vmem:[#allocation192_spill] sm:$0xff] }
 0x194   :  { %5687 = vmatprep.subr.bf16.mxu1 %v10278_v13  ;;  %v5314_v50 = vpack.c.bf16 %v10288_v45, %v10286_v48  ;;  %v10290_v13 = vld [vmem:[#allocation201_spill] sm:$0xff] }
 0x195   :  { %5305 = vmatpush1.bf16.msra.mxu0 %v10279_v6  ;;  %v10291_v6 = vld [vmem:[#allocation203_spill] sm:$0xff]  ;;  %v10302_v48 = vld [vmem:[#allocation29_spill] sm:$0xff] }
 0x196   :  { %5307 = vmatprep.subr.bf16.mxu0 %v10280_v32  ;;  %v10292_v32 = vld [vmem:[#allocation18_spill] sm:$0xff]  ;;  %v10303_v45 = vand.u32 4294901760, %v10302_v48  ;;  %v10316_v48 = vld [vmem:[#allocation35_spill] sm:$0xff] }
 0x197   :  { %5689 = vmatpush1.bf16.msra.mxu1 %v10281_v41  ;;  %v10293_v55 = vand.u32 4294901760, %v10292_v32  ;;  %v10294_v41 = vld [vmem:[#allocation20_spill] sm:$0xff] }
 0x198   :  { %5691 = vmatprep.subr.bf16.mxu1 %v10282_v39  ;;  %v10295_v61 = vand.u32 4294901760, %v10294_v41  ;;  %v10309_v41 = vand.u32 4294901760, %v10308_v53  ;;  %v10322_v53 = vld [vmem:[#allocation209_spill] sm:$0xff] }
 0x199   :  { %5309 = vmatpush1.bf16.msra.mxu0 %v10283_v22  ;;  %v10297_v22 = vand.u32 4294901760, %v10296_v54  ;;  %v10310_v54 = vld [vmem:[#allocation31_spill] sm:$0xff] }
 0x19a   :  { %5311 = vmatprep.subr.bf16.mxu0 %v10284_v59  ;;  %v5698_v39 = vpack.c.bf16 %v10295_v61, %v10293_v55  ;;  %v10299_v59 = vand.u32 4294901760, %v10298_v31  ;;  %v10311_v31 = vand.u32 4294901760, %v10310_v54  ;;  %v10312_v55 = vld [vmem:[#allocation32_spill] sm:$0xff] }
 0x19b   :  { %5693 = vmatpush1.bf16.msra.mxu1 %v10289_v24  ;;  %v5318_v24 = vpack.c.bf16 %v10303_v45, %v10301_v5  ;;  %v10317_v5 = vand.u32 4294901760, %v10316_v48 }
 0x19c   :  { %5695 = vmatprep.subr.bf16.mxu1 %v10290_v13  ;;  %v5316_v14 = vpack.c.bf16 %v10299_v59, %v10297_v22  ;;  %v10305_v13 = vld [vmem:[#allocation212_spill] sm:$0xff]  ;;  %v10314_v59 = vld [vmem:[#allocation33_spill] sm:$0xff] }
 0x19d   :  { %5313 = vmatpush1.bf16.msra.mxu0 %v10291_v6  ;;  %v10306_v6 = vld [vmem:[#allocation25_spill] sm:$0xff]  ;;  %v10315_v37 = vand.u32 4294901760, %v10314_v59  ;;  %v10333_v59 = vld [vmem:[#allocation47_spill] sm:$0xff] }
 0x19e   :  { %5315 = vmatprep.subr.bf16.mxu0 %v5314_v50  ;;  %v10307_v32 = vand.u32 4294901760, %v10306_v6  ;;  %v10313_v50 = vand.u32 4294901760, %v10312_v55  ;;  %v10321_v6 = vand.u32 4294901760, %v10320_v15 }
 0x19f   :  { %5697 = vmatpush1.bf16.msra.mxu1 %v10304_v30  ;;  %v5320_v45 = vpack.c.bf16 %v10317_v5, %v10315_v37  ;;  %v10318_v30 = vld [vmem:[#allocation40_spill] sm:$0xff]  ;;  %v10334_v37 = vand.u32 4294901760, %v10333_v59  ;;  %v10337_v5 = vld [vmem:[#allocation53_spill] sm:$0xff]  ;;  %v10349_v59 = vld [vmem:[#allocation59_spill] sm:$0xff] }
 0x1a0   :  { %1085 = vmatmul.mubr.f32.vlgmr.msra.gmra.mrb[0].mxu0 %v10305_v13  ;;  %v5700_v61 = vpack.c.bf16 %v10309_v41, %v10307_v32  ;;  %5699 = vmatprep.subr.bf16.mxu1 %v5698_v39  ;;  %v5702_v22 = vpack.c.bf16 %v10313_v50, %v10311_v31  ;;  %v10319_v21 = vand.u32 4294901760, %v10318_v30  ;;  %v10325_v32 = vld [vmem:[#allocation38_spill] sm:$0xff]  ;;  %v10329_v30 = vld [vmem:[#allocation44_spill] sm:$0xff] }
 0x1a1   :  { %5317 = vmatpush1.bf16.msra.mxu0 %v5316_v14  ;;  %1348 = vmatprep.mubr.f32.mxu0 %v10322_v53  ;;  %v10323_v14 = vld [vmem:[#allocation36_spill] sm:$0xff]  ;;  %v10326_v41 = vand.u32 4294901760, %v10325_v32  ;;  %v10330_v55 = vand.u32 4294901760, %v10329_v30 }
 0x1a2   :  { %5319 = vmatprep.subr.bf16.mxu0 %v5318_v24  ;;  %v5322_v40 = vpack.c.bf16 %v10321_v6, %v10319_v21  ;;  %2369 = vmatmul.mubr.f32.vlgmr.msra.gmra.mrb[0].mxu1 %v10305_v13  ;;  %v10324_v39 = vand.u32 4294901760, %v10323_v14  ;;  %v10327_v24 = vld [vmem:[#allocation43_spill] sm:$0xff]  ;;  %v10331_v21 = vld [vmem:[#allocation46_spill] sm:$0xff]  ;;  %v10338_v6 = vand.u32 4294901760, %v10337_v5  ;;  %v10345_v30 = vld [vmem:[#allocation56_spill] sm:$0xff] }
 0x1a3   :  { %5701 = vmatpush1.bf16.msra.mxu1 %v5700_v61  ;;  %2632 = vmatprep.mubr.f32.mxu1 %v10322_v53  ;;  %v10328_v31 = vand.u32 4294901760, %v10327_v24  ;;  %v10332_v50 = vand.u32 4294901760, %v10331_v21  ;;  %v10335_v61 = vld [vmem:[#allocation52_spill] sm:$0xff]  ;;  %v10343_v24 = vld [vmem:[#allocation55_spill] sm:$0xff]  ;;  %v10353_v5 = vld [vmem:[#allocation65_spill] sm:$0xff] }
 0x1a4   :  { %v5704_v54 = vpack.c.bf16 %v10326_v41, %v10324_v39  ;;  %5703 = vmatprep.subr.bf16.mxu1 %v5702_v22  ;;  %v10336_v48 = vand.u32 4294901760, %v10335_v61  ;;  %v10339_v39 = vld [vmem:[#allocation49_spill] sm:$0xff] }
 0x1a5   :  { %5321 = vmatpush1.bf16.msra.mxu0 %v5320_v45  ;;  %v5706_v15 = vpack.c.bf16 %v10330_v55, %v10328_v31  ;;  %v5324_v13 = vpack.c.bf16 %v10334_v37, %v10332_v50  ;;  %v10340_v22 = vand.u32 4294901760, %v10339_v39  ;;  %v10341_v45 = vld [vmem:[#allocation50_spill] sm:$0xff]  ;;  %v10344_v31 = vand.u32 4294901760, %v10343_v24  ;;  %v10347_v50 = vld [vmem:[#allocation57_spill] sm:$0xff] }
 0x1a6   :  { %5323 = vmatprep.subr.bf16.mxu0 %v5322_v40  ;;  %v5326_v14 = vpack.c.bf16 %v10338_v6, %v10336_v48  ;;  %v10342_v32 = vand.u32 4294901760, %v10341_v45  ;;  %v10346_v55 = vand.u32 4294901760, %v10345_v30  ;;  %v10348_v40 = vand.u32 4294901760, %v10347_v50  ;;  %v10351_v48 = vld [vmem:[#allocation64_spill] sm:$0xff]  ;;  %v10359_v24 = vld [vmem:[#allocation66_spill] sm:$0xff] }
 0x1a7   :  { %5705 = vmatpush1.bf16.msra.mxu1 %v5704_v54  ;;  %v10350_v37 = vand.u32 4294901760, %v10349_v59  ;;  %v10352_v54 = vand.u32 4294901760, %v10351_v48  ;;  %v10354_v6 = vand.u32 4294901760, %v10353_v5  ;;  %v10361_v30 = vld [vmem:[#allocation68_spill] sm:$0xff]  ;;  %v10365_v59 = vld [vmem:[#allocation71_spill] sm:$0xff]  ;;  %v10369_v5 = vld [vmem:[#allocation77_spill] sm:$0xff] }
 0x1a8   :  { %v5708_v41 = vpack.c.bf16 %v10342_v32, %v10340_v22  ;;  %5707 = vmatprep.subr.bf16.mxu1 %v5706_v15  ;;  %v5710_v21 = vpack.c.bf16 %v10346_v55, %v10344_v31  ;;  %v10355_v22 = vld [vmem:[#allocation61_spill] sm:$0xff]  ;;  %v10360_v31 = vand.u32 4294901760, %v10359_v24  ;;  %v10362_v55 = vand.u32 4294901760, %v10361_v30  ;;  %v10375_v24 = vld [vmem:[#allocation78_spill] sm:$0xff]  ;;  %v10377_v30 = vld [vmem:[#allocation80_spill] sm:$0xff] }
 0x1a9   :  { %5325 = vmatpush1.bf16.msra.mxu0 %v5324_v13  ;;  %v5328_v61 = vpack.c.bf16 %v10350_v37, %v10348_v40  ;;  %v5330_v39 = vpack.c.bf16 %v10354_v6, %v10352_v54  ;;  %v10356_v15 = vand.u32 4294901760, %v10355_v22  ;;  %v10357_v13 = vld [vmem:[#allocation62_spill] sm:$0xff]  ;;  %v10366_v37 = vand.u32 4294901760, %v10365_v59  ;;  %v10367_v54 = vld [vmem:[#allocation76_spill] sm:$0xff]  ;;  %v10381_v59 = vld [vmem:[#allocation83_spill] sm:$0xff] }
 0x1aa   :  { %5327 = vmatprep.subr.bf16.mxu0 %v5326_v14  ;;  %v10358_v45 = vand.u32 4294901760, %v10357_v13  ;;  %v5714_v50 = vpack.c.bf16 %v10362_v55, %v10360_v31  ;;  %v10363_v40 = vld [vmem:[#allocation70_spill] sm:$0xff]  ;;  %v10370_v6 = vand.u32 4294901760, %v10369_v5  ;;  %v10376_v31 = vand.u32 4294901760, %v10375_v24  ;;  %v10385_v5 = vld [vmem:[#allocation89_spill] sm:$0xff] }
 0x1ab   :  { %5709 = vmatpush1.bf16.msra.mxu1 %v5708_v41  ;;  %v10364_v14 = vand.u32 4294901760, %v10363_v40  ;;  %v10368_v41 = vand.u32 4294901760, %v10367_v54  ;;  %v10378_v55 = vand.u32 4294901760, %v10377_v30  ;;  %v10391_v24 = vld [vmem:[#allocation90_spill] sm:$0xff]  ;;  %v10393_v30 = vld [vmem:[#allocation92_spill] sm:$0xff] }
 0x1ac   :  { %v5712_v32 = vpack.c.bf16 %v10358_v45, %v10356_v15  ;;  %5711 = vmatprep.subr.bf16.mxu1 %v5710_v21  ;;  %v10371_v15 = vld [vmem:[#allocation73_spill] sm:$0xff] }
 0x1ad   :  { %5329 = vmatpush1.bf16.msra.mxu0 %v5328_v61  ;;  %v5332_v48 = vpack.c.bf16 %v10366_v37, %v10364_v14  ;;  %v5334_v22 = vpack.c.bf16 %v10370_v6, %v10368_v41  ;;  %v10372_v21 = vand.u32 4294901760, %v10371_v15  ;;  %v10373_v61 = vld [vmem:[#allocation74_spill] sm:$0xff]  ;;  %v5718_v40 = vpack.c.bf16 %v10378_v55, %v10376_v31  ;;  %v10383_v41 = vld [vmem:[#allocation88_spill] sm:$0xff] }
 0x1ae   :  { %5331 = vmatprep.subr.bf16.mxu0 %v5330_v39  ;;  %v10374_v13 = vand.u32 4294901760, %v10373_v61  ;;  %v10379_v14 = vld [vmem:[#allocation82_spill] sm:$0xff]  ;;  %v10382_v37 = vand.u32 4294901760, %v10381_v59  ;;  %v10386_v6 = vand.u32 4294901760, %v10385_v5  ;;  %v10392_v31 = vand.u32 4294901760, %v10391_v24  ;;  %v10397_v59 = vld [vmem:[#allocation95_spill] sm:$0xff] }
 0x1af   :  { %5713 = vmatpush1.bf16.msra.mxu1 %v5712_v32  ;;  %v10380_v39 = vand.u32 4294901760, %v10379_v14  ;;  %v10384_v32 = vand.u32 4294901760, %v10383_v41  ;;  %v10394_v55 = vand.u32 4294901760, %v10393_v30 }
 0x1b0   :  { %v5716_v45 = vpack.c.bf16 %v10374_v13, %v10372_v21  ;;  %5715 = vmatprep.subr.bf16.mxu1 %v5714_v50  ;;  %v10387_v21 = vld [vmem:[#allocation85_spill] sm:$0xff] }
 0x1b1   :  { %5333 = vmatpush1.bf16.msra.mxu0 %v5332_v48  ;;  %v5336_v54 = vpack.c.bf16 %v10382_v37, %v10380_v39  ;;  %v5338_v15 = vpack.c.bf16 %v10386_v6, %v10384_v32  ;;  %v10388_v50 = vand.u32 4294901760, %v10387_v21  ;;  %v10389_v48 = vld [vmem:[#allocation86_spill] sm:$0xff]  ;;  %v5722_v14 = vpack.c.bf16 %v10394_v55, %v10392_v31  ;;  %v10400_v32 = vld [vmem:[#allocation101_spill] sm:$0xff] }
 0x1b2   :  { %5335 = vmatprep.subr.bf16.mxu0 %v5334_v22  ;;  %v10390_v61 = vand.u32 4294901760, %v10389_v48  ;;  %v10395_v39 = vld [vmem:[#allocation94_spill] sm:$0xff]  ;;  %v10398_v37 = vand.u32 4294901760, %v10397_v59  ;;  %v10401_v5 = vand.u32 4294901760, %v10400_v32  ;;  %v10405_v48 = vand.u32 4294901760, %v10167_v18 }
 0x1b3   :  { %5717 = vmatpush1.bf16.msra.mxu1 %v5716_v45  ;;  %v10396_v22 = vand.u32 4294901760, %v10395_v39  ;;  %v10399_v45 = vand.u32 4294901760, %v10163_v57  ;;  %v10408_v57 = vand.u32 4294901760, %v10170_v16  ;;  %v10411_v55 = vand.u32 4294901760, %v10173_v27 }
 0x1b4   :  { %v5720_v13 = vpack.c.bf16 %v10390_v61, %v10388_v50  ;;  %5719 = vmatprep.subr.bf16.mxu1 %v5718_v40  ;;  %v10402_v40 = vand.u32 4294901760, %v10165_v23  ;;  %v10406_v61 = vand.u32 4294901760, %v10168_v36  ;;  %v10410_v23 = vand.u32 4294901760, %v10172_v29 }
 0x1b5   :  { %5337 = vmatpush1.bf16.msra.mxu0 %v5336_v54  ;;  %v5340_v41 = vpack.c.bf16 %v10398_v37, %v10396_v22  ;;  %v5342_v6 = vpack.c.bf16 %v10401_v5, %v10399_v45  ;;  %v10403_v54 = vld [vmem:[#allocation98_spill] sm:$0xff]  ;;  %v10413_v36 = vand.u32 4294901760, %v10175_v9  ;;  %v10415_v39 = vand.u32 4294901760, %v10041_v11 }
 0x1b6   :  { %5339 = vmatprep.subr.bf16.mxu0 %v5338_v15  ;;  %v10404_v21 = vand.u32 4294901760, %v10403_v54  ;;  %v5726_v24 = vpack.c.bf16 %v10406_v61, %v10405_v48  ;;  %v10407_v15 = vand.u32 4294901760, %v10169_v26  ;;  %v10414_v26 = vand.u32 4294901760, %v10176_v17  ;;  %v10434_v54 = vld [vmem:[#allocation149_spill] sm:$0xff] }
 0x1b7   :  { %5721 = vmatpush1.bf16.msra.mxu1 %v5720_v13  ;;  %v10409_v13 = vand.u32 4294901760, %v10171_v1  ;;  %v10416_v1 = vand.u32 4294901760, %v10042_v42  ;;  %v10417_v29 = vand.u32 4294901760, %v10098_v44  ;;  %v10418_v27 = vand.u32 4294901760, %v10099_v43 }
 0x1b8   :  { %v5724_v50 = vpack.c.bf16 %v10404_v21, %v10402_v40  ;;  %5723 = vmatprep.subr.bf16.mxu1 %v5722_v14  ;;  %v5344_v31 = vpack.c.bf16 %v10408_v57, %v10407_v15  ;;  %v10412_v14 = vand.u32 4294901760, %v10174_v7  ;;  %v5730_v16 = vpack.c.bf16 %v10414_v26, %v10413_v36  ;;  %v10444_v57 = vld [vmem:[#allocation161_spill] sm:$0xff]  ;;  %v10454_v36 = vld [vmem:[#allocation172_spill] sm:$0xff] }
 0x1b9   :  { %5341 = vmatpush1.bf16.msra.mxu0 %v5340_v41  ;;  %v5346_v30 = vpack.c.bf16 %v10410_v23, %v10409_v13  ;;  %v5348_v22 = vpack.c.bf16 %v10416_v1, %v10415_v39  ;;  %v5350_v59 = vpack.c.bf16 %v10418_v27, %v10417_v29  ;;  %v10419_v7 = vand.u32 4294901760, %v10043_v20  ;;  %v10447_v13 = vld [vmem:[#allocation158_spill] sm:$0xff]  ;;  %v10458_v1 = vld [vmem:[#allocation169_spill] sm:$0xff] }
 0x1ba   :  { %5343 = vmatprep.subr.bf16.mxu0 %v5342_v6  ;;  %v5728_v18 = vpack.c.bf16 %v10412_v14, %v10411_v55  ;;  %v10420_v37 = vand.u32 4294901760, %v10097_v8  ;;  %v10421_v17 = vand.u32 4294901760, %v10100_v56  ;;  %v10422_v11 = vand.u32 4294901760, %v10101_v63  ;;  %v10460_v29 = vld [vmem:[#allocation170_spill] sm:$0xff] }
 0x1bb   :  { %5725 = vmatpush1.bf16.msra.mxu1 %v5724_v50  ;;  %v10423_v41 = vand.u32 4294901760, %v10102_v51  ;;  %v10424_v44 = vand.u32 4294901760, %v10103_v35  ;;  %v10425_v43 = vand.u32 4294901760, %v10106_v3  ;;  %v10426_v20 = vand.u32 4294901760, %v10107_v0 }
 0x1bc   :  { %5727 = vmatprep.subr.bf16.mxu1 %v5726_v24  ;;  %v5732_v9 = vpack.c.bf16 %v10420_v37, %v10419_v7  ;;  %v5734_v42 = vpack.c.bf16 %v10422_v11, %v10421_v17  ;;  %v10427_v8 = vand.u32 4294901760, %v10104_v19  ;;  %v10428_v5 = vand.u32 4294901760, %v10105_v33  ;;  %v10468_v11 = vld [vmem:[#allocation179_spill] sm:$0xff] }
 0x1bd   :  { %5345 = vmatpush1.bf16.msra.mxu0 %v5344_v31  ;;  %v5352_v45 = vpack.c.bf16 %v10424_v44, %v10423_v41  ;;  %v5354_v32 = vpack.c.bf16 %v10426_v20, %v10425_v43  ;;  %v10429_v63 = vand.u32 4294901760, %v10108_v12  ;;  %v10430_v51 = vand.u32 4294901760, %v10109_v25  ;;  %v10470_v44 = vld [vmem:[#allocation184_spill] sm:$0xff]  ;;  %v10472_v43 = vld [vmem:[#allocation185_spill] sm:$0xff] }
 0x1be   :  { %5347 = vmatprep.subr.bf16.mxu0 %v5346_v30  ;;  %v5736_v56 = vpack.c.bf16 %v10428_v5, %v10427_v8  ;;  %v10431_v6 = vand.u32 4294901760, %v10110_v62  ;;  %v10432_v3 = vand.u32 4294901760, %v10111_v34  ;;  %v10433_v0 = vand.u32 4294901760, %v10114_v58  ;;  %v10439_v62 = vld [vmem:[#allocation152_spill] sm:$0xff]  ;;  %v10474_v8 = vld [vmem:[#allocation181_spill] sm:$0xff] }
 0x1bf   :  { %5729 = vmatpush1.bf16.msra.mxu1 %v5728_v18  ;;  %v5738_v35 = vpack.c.bf16 %v10430_v51, %v10429_v63  ;;  %v10435_v19 = vand.u32 4294901760, %v10434_v54  ;;  %v10436_v33 = vand.u32 4294901760, %v10112_v49  ;;  %v10437_v50 = vand.u32 4294901760, %v10113_v10  ;;  %v10482_v54 = vld [vmem:[#allocation190_spill] sm:$0xff] }
 0x1c0   :  { %5731 = vmatprep.subr.bf16.mxu1 %v5730_v16  ;;  %v5356_v40 = vpack.c.bf16 %v10432_v3, %v10431_v6  ;;  %v10438_v25 = vand.u32 4294901760, %v10116_v2  ;;  %v10440_v48 = vand.u32 4294901760, %v10439_v62  ;;  %v10441_v61 = vand.u32 4294901760, %v10189_v60  ;;  %v10450_v60 = vld [vmem:[#allocation164_spill] sm:$0xff]  ;;  %v10456_v16 = vld [vmem:[#allocation173_spill] sm:$0xff] }
 0x1c1   :  { %5349 = vmatpush1.bf16.msra.mxu0 %v5348_v22  ;;  %v5358_v21 = vpack.c.bf16 %v10435_v19, %v10433_v0  ;;  %v5740_v12 = vpack.c.bf16 %v10437_v50, %v10436_v33  ;;  %v10442_v58 = vand.u32 4294901760, %v10119_v38  ;;  %v10443_v15 = vand.u32 4294901760, %v10123_v4  ;;  %v10480_v3 = vld [vmem:[#allocation188_spill] sm:$0xff]  ;;  %v10488_v62 = vld [vmem:[#allocation197_spill] sm:$0xff] }
 0x1c2   :  { %5351 = vmatprep.subr.bf16.mxu0 %v5350_v59  ;;  %v5742_v34 = vpack.c.bf16 %v10440_v48, %v10438_v25  ;;  %v10445_v49 = vand.u32 4294901760, %v10444_v57  ;;  %v10446_v10 = vand.u32 4294901760, %v10193_v47  ;;  %v10448_v23 = vand.u32 4294901760, %v10447_v13  ;;  %v10462_v59 = vld [vmem:[#allocation174_spill] sm:$0xff] }
 0x1c3   :  { %5733 = vmatpush1.bf16.msra.mxu1 %v5732_v9  ;;  %v5360_v24 = vpack.c.bf16 %v10442_v58, %v10441_v61  ;;  %v10449_v30 = vand.u32 4294901760, %v10125_v28  ;;  %v10451_v55 = vand.u32 4294901760, %v10450_v60  ;;  %v10452_v14 = vand.u32 4294901760, %v10196_v46  ;;  %v10464_v46 = vld [vmem:[#allocation176_spill] sm:$0xff]  ;;  %v10466_v9 = vld [vmem:[#allocation178_spill] sm:$0xff]  ;;  %v10490_v61 = vld [vmem:[#allocation193_spill] sm:$0xff] }
 0x1c4   :  { %5735 = vmatprep.subr.bf16.mxu1 %v5734_v42  ;;  %v5362_v31 = vpack.c.bf16 %v10445_v49, %v10443_v15  ;;  %v5744_v2 = vpack.c.bf16 %v10448_v23, %v10446_v10  ;;  %v10453_v4 = vand.u32 4294901760, %v10127_v52  ;;  %v10455_v26 = vand.u32 4294901760, %v10454_v36  ;;  %v10494_v49 = vld [vmem:[#allocation198_spill] sm:$0xff]  ;;  %v10500_v60 = vld [vmem:[#allocation205_spill] sm:$0xff] }
 0x1c5   :  { %5353 = vmatpush1.bf16.msra.mxu0 %v5352_v45  ;;  %v5746_v38 = vpack.c.bf16 %v10451_v55, %v10449_v30  ;;  %v10457_v47 = vand.u32 4294901760, %v10456_v16  ;;  %v10459_v22 = vand.u32 4294901760, %v10458_v1  ;;  %v10461_v27 = vand.u32 4294901760, %v10460_v29  ;;  %v10496_v10 = vld [vmem:[#allocation202_spill] sm:$0xff]  ;;  %v10506_v16 = vld [vmem:[#allocation15_spill] sm:$0xff]  ;;  %v10509_v1 = vld [vmem:[#allocation21_spill] sm:$0xff] }
 0x1c6   :  { %5355 = vmatprep.subr.bf16.mxu0 %v5354_v32  ;;  %v5364_v18 = vpack.c.bf16 %v10453_v4, %v10452_v14  ;;  %v10463_v7 = vand.u32 4294901760, %v10462_v59  ;;  %v10465_v37 = vand.u32 4294901760, %v10464_v46  ;;  %v10467_v17 = vand.u32 4294901760, %v10466_v9  ;;  %v10502_v14 = vld [vmem:[#allocation207_spill] sm:$0xff]  ;;  %v10511_v29 = vld [vmem:[#allocation24_spill] sm:$0xff]  ;;  %v10516_v46 = vld [vmem:[#allocation42_spill] sm:$0xff] }
 0x1c7   :  { %5737 = vmatpush1.bf16.msra.mxu1 %v5736_v56  ;;  %v5366_v39 = vpack.c.bf16 %v10457_v47, %v10455_v26  ;;  %v5748_v28 = vpack.c.bf16 %v10461_v27, %v10459_v22  ;;  %v10469_v42 = vand.u32 4294901760, %v10468_v11  ;;  %v10471_v45 = vand.u32 4294901760, %v10470_v44  ;;  %v10476_v56 = vld [vmem:[#allocation182_spill] sm:$0xff]  ;;  %v10507_v47 = vld [vmem:[#allocation200_spill] sm:$0xff]  ;;  %v10514_v59 = vld [vmem:[#allocation39_spill] sm:$0xff] }
 0x1c8   :  { %5739 = vmatprep.subr.bf16.mxu1 %v5738_v35  ;;  %v5750_v52 = vpack.c.bf16 %v10465_v37, %v10463_v7  ;;  %v10473_v20 = vand.u32 4294901760, %v10472_v43  ;;  %v10475_v5 = vand.u32 4294901760, %v10474_v8  ;;  %v10477_v63 = vand.u32 4294901760, %v10476_v56  ;;  %v10478_v35 = vld [vmem:[#allocation186_spill] sm:$0xff]  ;;  %v10510_v22 = vld [vmem:[#allocation28_spill] sm:$0xff]  ;;  %v10515_v7 = vld [vmem:[#allocation37_spill] sm:$0xff] }
 0x1c9   :  { %5357 = vmatpush1.bf16.msra.mxu0 %v5356_v40  ;;  %v5368_v41 = vpack.c.bf16 %v10469_v42, %v10467_v17  ;;  %v10479_v6 = vand.u32 4294901760, %v10478_v35  ;;  %v10481_v40 = vand.u32 4294901760, %v10480_v3  ;;  %v10483_v19 = vand.u32 4294901760, %v10482_v54  ;;  %v10512_v27 = vld [vmem:[#allocation30_spill] sm:$0xff]  ;;  %v10517_v37 = vld [vmem:[#allocation45_spill] sm:$0xff]  ;;  %v10519_v9 = vld [vmem:[#allocation48_spill] sm:$0xff] }
 0x1ca   :  { %5359 = vmatprep.subr.bf16.mxu0 %v5358_v21  ;;  %v5370_v32 = vpack.c.bf16 %v10473_v20, %v10471_v45  ;;  %v5752_v51 = vpack.c.bf16 %v10477_v63, %v10475_v5  ;;  %v10484_v21 = vld [vmem:[#allocation191_spill] sm:$0xff]  ;;  %v10489_v48 = vand.u32 4294901760, %v10488_v62  ;;  %v10491_v58 = vand.u32 4294901760, %v10490_v61  ;;  %v10520_v17 = vld [vmem:[#allocation54_spill] sm:$0xff]  ;;  %v10523_v42 = vld [vmem:[#allocation60_spill] sm:$0xff] }
 0x1cb   :  { %5741 = vmatpush1.bf16.msra.mxu1 %v5740_v12  ;;  %v5754_v0 = vpack.c.bf16 %v10481_v40, %v10479_v6  ;;  %v10485_v33 = vand.u32 4294901760, %v10484_v21  ;;  %v10486_v12 = vld [vmem:[#allocation196_spill] sm:$0xff]  ;;  %v10497_v13 = vand.u32 4294901760, %v10496_v10  ;;  %v10501_v55 = vand.u32 4294901760, %v10500_v60  ;;  %v10521_v11 = vld [vmem:[#allocation58_spill] sm:$0xff]  ;;  %v10525_v44 = vld [vmem:[#allocation69_spill] sm:$0xff] }
 0x1cc   :  { %5743 = vmatprep.subr.bf16.mxu1 %v5742_v34  ;;  %v10487_v25 = vand.u32 4294901760, %v10486_v12  ;;  %v10503_v4 = vand.u32 4294901760, %v10502_v14  ;;  %v10526_v45 = vld [vmem:[#allocation75_spill] sm:$0xff]  ;;  %v10527_v43 = vld [vmem:[#allocation72_spill] sm:$0xff]  ;;  %v10533_v63 = vld [vmem:[#allocation93_spill] sm:$0xff] }
 0x1cd   :  { %5361 = vmatpush1.bf16.msra.mxu0 %v5360_v24  ;;  %v5372_v50 = vpack.c.bf16 %v10485_v33, %v10483_v19  ;;  %v10492_v24 = vld [vmem:[#allocation194_spill] sm:$0xff]  ;;  %v10528_v20 = vld [vmem:[#allocation79_spill] sm:$0xff]  ;;  %v10531_v5 = vld [vmem:[#allocation84_spill] sm:$0xff] }
 0x1ce   :  { %5363 = vmatprep.subr.bf16.mxu0 %v5362_v31  ;;  %v5374_v34 = vpack.c.bf16 %v10489_v48, %v10487_v25  ;;  %v10493_v15 = vand.u32 4294901760, %v10492_v24  ;;  %v10495_v31 = vand.u32 4294901760, %v10494_v49  ;;  %v10530_v8 = vld [vmem:[#allocation87_spill] sm:$0xff]  ;;  %v10535_v35 = vld [vmem:[#allocation96_spill] sm:$0xff]  ;;  %v10537_v3 = vld [vmem:[#allocation105_spill] sm:$0xff] }
 0x1cf   :  { %5745 = vmatpush1.bf16.msra.mxu1 %v5744_v2  ;;  %v10498_v2 = vld [vmem:[#allocation204_spill] sm:$0xff]  ;;  %v10532_v56 = vld [vmem:[#allocation91_spill] sm:$0xff]  ;;  %v10541_v19 = vld [vmem:[#allocation117_spill] sm:$0xff] }
 0x1d0   :  { %5747 = vmatprep.subr.bf16.mxu1 %v5746_v38  ;;  %v5756_v57 = vpack.c.bf16 %v10493_v15, %v10491_v58  ;;  %v5758_v23 = vpack.c.bf16 %v10497_v13, %v10495_v31  ;;  %v10499_v30 = vand.u32 4294901760, %v10498_v2  ;;  %v10536_v6 = vld [vmem:[#allocation103_spill] sm:$0xff]  ;;  %v10543_v33 = vld [vmem:[#allocation120_spill] sm:$0xff]  ;;  %v10545_v12 = vld [vmem:[#allocation129_spill] sm:$0xff] }
 0x1d1   :  { %5365 = vmatpush1.bf16.msra.mxu0 %v5364_v18  ;;  %v10504_v18 = vld [vmem:[#allocation208_spill] sm:$0xff]  ;;  %v10538_v40 = vld [vmem:[#allocation111_spill] sm:$0xff]  ;;  %v10553_v15 = vld [vmem:[#allocation153_spill] sm:$0xff] }
 0x1d2   :  { %5367 = vmatprep.subr.bf16.mxu0 %v5366_v39  ;;  %v5376_v38 = vpack.c.bf16 %v10501_v55, %v10499_v30  ;;  %v10505_v36 = vand.u32 4294901760, %v10504_v18  ;;  %v10508_v39 = vld [vmem:[#allocation19_spill] sm:$0xff]  ;;  %v10547_v62 = vld [vmem:[#allocation132_spill] sm:$0xff]  ;;  %v10557_v10 = vld [vmem:[#allocation165_spill] sm:$0xff] }
 0x1d3   :  { %5749 = vmatpush1.bf16.msra.mxu1 %v5748_v28  ;;  %v10513_v28 = vld [vmem:[#allocation34_spill] sm:$0xff]  ;;  %v10540_v54 = vld [vmem:[#allocation115_spill] sm:$0xff]  ;;  %v10551_v58 = vld [vmem:[#allocation144_spill] sm:$0xff] }
 0x1d4   :  { %5751 = vmatprep.subr.bf16.mxu1 %v5750_v52  ;;  %v5760_v26 = vpack.c.bf16 %v10505_v36, %v10503_v4  ;;  %v10518_v52 = vld [vmem:[#allocation51_spill] sm:$0xff]  ;;  %v10555_v49 = vld [vmem:[#allocation156_spill] sm:$0xff]  ;;  %v10561_v30 = vld [vmem:[#allocation177_spill] sm:$0xff] }
 0x1d5   :  { %5369 = vmatpush1.bf16.msra.mxu0 %v5368_v41  ;;  %v10524_v41 = vld [vmem:[#allocation67_spill] sm:$0xff]  ;;  %v10563_v55 = vld [vmem:[#allocation180_spill] sm:$0xff]  ;;  %v10565_v14 = vld [vmem:[#allocation189_spill] sm:$0xff] }
 0x1d6   :  { %5371 = vmatprep.subr.bf16.mxu0 %v5370_v32  ;;  %v10529_v32 = vld [vmem:[#allocation81_spill] sm:$0xff]  ;;  %v10542_v21 = vld [vmem:[#allocation123_spill] sm:$0xff]  ;;  %v10567_v18 = vld [vmem:[#allocation192_spill] sm:$0xff] }
 0x1d7   :  { %5753 = vmatpush1.bf16.msra.mxu1 %v5752_v51  ;;  %v10534_v51 = vld [vmem:[#allocation99_spill] sm:$0xff]  ;;  %v10568_v36 = vld [vmem:[#allocation201_spill] sm:$0xff] }
 0x1d8   :  { %5755 = vmatprep.subr.bf16.mxu1 %v5754_v0  ;;  %v10539_v0 = vld [vmem:[#allocation108_spill] sm:$0xff]  ;;  %v10546_v25 = vld [vmem:[#allocation135_spill] sm:$0xff] }
 0x1d9   :  { %5373 = vmatpush1.bf16.msra.mxu0 %v5372_v50  ;;  %v10544_v50 = vld [vmem:[#allocation127_spill] sm:$0xff] }
 0x1da   :  { %5375 = vmatprep.subr.bf16.mxu0 %v5374_v34  ;;  %v10548_v48 = vld [vmem:[#allocation139_spill] sm:$0xff]  ;;  %v10549_v34 = vld [vmem:[#allocation141_spill] sm:$0xff] }
 0x1db   :  { %5757 = vmatpush1.bf16.msra.mxu1 %v5756_v57  ;;  %v10550_v61 = vld [vmem:[#allocation147_spill] sm:$0xff] }
 0x1dc   :  { %5759 = vmatprep.subr.bf16.mxu1 %v5758_v23  ;;  %v10552_v24 = vld [vmem:[#allocation151_spill] sm:$0xff]  ;;  %v10559_v23 = vld [vmem:[#allocation168_spill] sm:$0xff] }
 0x1dd   :  { %5377 = vmatpush1.bf16.msra.mxu0 %v5376_v38  ;;  %v10554_v57 = vld [vmem:[#allocation159_spill] sm:$0xff] }
 0x1de   :  { %5379 = vmatprep.subr.bf16.mxu0 %v10506_v16  ;;  %v10556_v31 = vld [vmem:[#allocation163_spill] sm:$0xff]  ;;  %v10570_v16 = vld [vmem:[#allocation206_spill] sm:$0xff] }
 0x1df   :  { %5761 = vmatpush1.bf16.msra.mxu1 %v5760_v26  ;;  %v10558_v13 = vld [vmem:[#allocation171_spill] sm:$0xff] }
 0x1e0   :  { %1350 = vmatmul.mubr.f32.vlgmr.msra.gmra.mrb[0].mxu0 %v10507_v47  ;;  %5763 = vmatprep.subr.bf16.mxu1 %v10508_v39  ;;  %v10560_v2 = vld [vmem:[#allocation175_spill] sm:$0xff] }
 0x1e1   :  { %5381 = vmatpush1.bf16.msra.mxu0 %v10509_v1  ;;  %1485 = vmatprep.mubr.f32.mxu0 %v10322_v53  ;;  %v10562_v60 = vld [vmem:[#allocation183_spill] sm:$0xff] }
 0x1e2   :  { %5383 = vmatprep.subr.bf16.mxu0 %v10510_v22  ;;  %2634 = vmatmul.mubr.f32.vlgmr.msra.gmra.mrb[0].mxu1 %v10507_v47  ;;  %v10564_v38 = vld [vmem:[#allocation187_spill] sm:$0xff] }
 0x1e3   :  { %5765 = vmatpush1.bf16.msra.mxu1 %v10511_v29  ;;  %2769 = vmatprep.mubr.f32.mxu1 %v10322_v53  ;;  %v10522_v53 = vld [vmem:[#allocation63_spill] sm:$0xff] }
 0x1e4   :  { %5767 = vmatprep.subr.bf16.mxu1 %v10512_v27  ;;  %v10566_v4 = vld [vmem:[#allocation195_spill] sm:$0xff] }
 0x1e5   :  { %5385 = vmatpush1.bf16.msra.mxu0 %v10513_v28  ;;  %v10569_v26 = vld [vmem:[#allocation203_spill] sm:$0xff] }
 0x1e6   :  { %5387 = vmatprep.subr.bf16.mxu0 %v10514_v59  ;;  %v8065_v39 = vld [vmem:[#allocation7 + $0x80] sm:$0xff]  ;;  %v8067_v1 = vld [vmem:[#allocation7 + $0x88] sm:$0xff] }
 0x1e7   :  { %5769 = vmatpush1.bf16.msra.mxu1 %v10515_v7  ;;  %v2900_v22 = vand.u32 4294901760, %v8065_v39  ;;  %v2903_v29 = vand.u32 4294901760, %v8067_v1  ;;  %v8071_v27 = vld [vmem:[#allocation7] sm:$0xff]  ;;  %v8073_v28 = vld [vmem:[#allocation7 + $0x8] sm:$0xff] }
 0x1e8   :  { %5771 = vmatprep.subr.bf16.mxu1 %v10516_v46  ;;  %v2852_v59 = vand.u32 4294901760, %v8071_v27  ;;  %v2855_v7 = vand.u32 4294901760, %v8073_v28 }
 0x1e9   :  { %5389 = vmatpush1.bf16.msra.mxu0 %v10517_v37  ;;  %v8085_v46 = vsub.f32 %v8067_v1, %v2903_v29 }
 0x1ea   :  { %5391 = vmatprep.subr.bf16.mxu0 %v10518_v52  ;;  %v8090_v37 = vsub.f32 %v8071_v27, %v2852_v59  ;;  %v8095_v52 = vsub.f32 %v8073_v28, %v2855_v7 }
 0x1eb   :  { %5773 = vmatpush1.bf16.msra.mxu1 %v10519_v9  ;;  %10571 = vst [vmem:[#allocation118_spill] sm:$0xff] %v8085_v46  ;;  %v8097_v9 = vld [vmem:[#allocation7 + $0x90] sm:$0xff] }
 0x1ec   :  { %5775 = vmatprep.subr.bf16.mxu1 %v10520_v17  ;;  %v8099_v17 = vld [vmem:[#allocation7 + $0x98] sm:$0xff] }
 0x1ed   :  { %5393 = vmatpush1.bf16.msra.mxu0 %v10521_v11 }
 0x1ee   :  { %5395 = vmatprep.subr.bf16.mxu0 %v10522_v53  ;;  %v9744_v53 = vand.u32 4294901760, %v8085_v46 }
 0x1ef   :  { %5777 = vmatpush1.bf16.msra.mxu1 %v10523_v42  ;;  %v2906_v42 = vand.u32 4294901760, %v8097_v9 }
 0x1f0   :  { %5779 = vmatprep.subr.bf16.mxu1 %v10524_v41  ;;  %v2909_v41 = vand.u32 4294901760, %v8099_v17 }
 0x1f1   :  { %5397 = vmatpush1.bf16.msra.mxu0 %v10525_v44  ;;  %v8105_v44 = vld [vmem:[#allocation7 + $0x10] sm:$0xff] }
 0x1f2   :  { %5399 = vmatprep.subr.bf16.mxu0 %v10526_v45  ;;  %v8107_v45 = vld [vmem:[#allocation7 + $0x18] sm:$0xff]  ;;  %v8242_v27 = vpack.c.bf16 %v2909_v41, %v2906_v42 }
 0x1f3   :  { %5781 = vmatpush1.bf16.msra.mxu1 %v10527_v43  ;;  %v9743_v43 = vand.u32 4294901760, %v8090_v37 }
 0x1f4   :  { %5783 = vmatprep.subr.bf16.mxu1 %v10528_v20  ;;  %v9741_v20 = vand.u32 4294901760, %v8095_v52 }
 0x1f5   :  { %5401 = vmatpush1.bf16.msra.mxu0 %v10529_v32  ;;  %v2858_v32 = vand.u32 4294901760, %v8105_v44 }
 0x1f6   :  { %5403 = vmatprep.subr.bf16.mxu0 %v10530_v8  ;;  %v2861_v8 = vand.u32 4294901760, %v8107_v45 }
 0x1f7   :  { %5785 = vmatpush1.bf16.msra.mxu1 %v10531_v5 }
 0x1f8   :  { %5787 = vmatprep.subr.bf16.mxu1 %v10532_v56  ;;  %v3086_v56 = vsub.f32 %v8085_v46, %v9744_v53 }
 0x1f9   :  { %5405 = vmatpush1.bf16.msra.mxu0 %v10533_v63  ;;  %v8122_v63 = vsub.f32 %v8097_v9, %v2906_v42 }
 0x1fa   :  { %5407 = vmatprep.subr.bf16.mxu0 %v10534_v51  ;;  %v8127_v51 = vsub.f32 %v8099_v17, %v2909_v41  ;;  %v8264_v41 = vld [vmem:[#allocation7 + $0x40] sm:$0xff] }
 0x1fb   :  { %5789 = vmatpush1.bf16.msra.mxu1 %v10535_v35  ;;  %v2967_v35 = vsub.f32 %v8090_v37, %v9743_v43 }
 0x1fc   :  { %5791 = vmatprep.subr.bf16.mxu1 %v10536_v6  ;;  %v2974_v6 = vsub.f32 %v8095_v52, %v9741_v20 }
 0x1fd   :  { %5409 = vmatpush1.bf16.msra.mxu0 %v10537_v3  ;;  %v8138_v3 = vsub.f32 %v8105_v44, %v2858_v32 }
 0x1fe   :  { %5411 = vmatprep.subr.bf16.mxu0 %v10538_v40  ;;  %v8143_v40 = vsub.f32 %v8107_v45, %v2861_v8 }
 0x1ff   :  { %5793 = vmatpush1.bf16.msra.mxu1 %v10539_v0  ;;  %v8145_v0 = vld [vmem:[#allocation7 + $0xa0] sm:$0xff] }
 0x200   :  { %5795 = vmatprep.subr.bf16.mxu1 %v10540_v54 }
 0x201   :  { %5413 = vmatpush1.bf16.msra.mxu0 %v10541_v19  ;;  %v3087_v19 = vand.u32 4294901760, %v3086_v56 }
 0x202   :  { %5415 = vmatprep.subr.bf16.mxu0 %v10542_v21  ;;  %v9739_v21 = vand.u32 4294901760, %v8122_v63 }
 0x203   :  { %5797 = vmatpush1.bf16.msra.mxu1 %v10543_v33  ;;  %v9738_v33 = vand.u32 4294901760, %v8127_v51 }
 0x204   :  { %5799 = vmatprep.subr.bf16.mxu1 %v10544_v50  ;;  %v8149_v50 = vld [vmem:[#allocation7 + $0xa8] sm:$0xff] }
 0x205   :  { %5417 = vmatpush1.bf16.msra.mxu0 %v10545_v12  ;;  %v2968_v12 = vand.u32 4294901760, %v2967_v35 }
 0x206   :  { %5419 = vmatprep.subr.bf16.mxu0 %v10546_v25  ;;  %v2975_v25 = vand.u32 4294901760, %v2974_v6  ;;  %v8190_v6 = vld [vmem:[#allocation7 + $0x38] sm:$0xff] }
 0x207   :  { %5801 = vmatpush1.bf16.msra.mxu1 %v10547_v62  ;;  %v9737_v62 = vand.u32 4294901760, %v8138_v3 }
 0x208   :  { %5803 = vmatprep.subr.bf16.mxu1 %v10548_v48  ;;  %v9735_v48 = vand.u32 4294901760, %v8143_v40 }
 0x209   :  { %5421 = vmatpush1.bf16.msra.mxu0 %v10549_v34  ;;  %v8153_v34 = vld [vmem:[#allocation7 + $0x20] sm:$0xff] }
 0x20a   :  { %5423 = vmatprep.subr.bf16.mxu0 %v10550_v61 }
 0x20b   :  { %5805 = vmatpush1.bf16.msra.mxu1 %v10551_v58  ;;  %v3093_v58 = vsub.f32 %v8122_v63, %v9739_v21 }
 0x20c   :  { %5807 = vmatprep.subr.bf16.mxu1 %v10552_v24  ;;  %v3100_v24 = vsub.f32 %v8127_v51, %v9738_v33  ;;  %v2842_v33 = vld [vmem:[#allocation7 + $0xf0] sm:$0xff] }
 0x20d   :  { %5425 = vmatpush1.bf16.msra.mxu0 %v10553_v15  ;;  %v2912_v15 = vand.u32 4294901760, %v8145_v0  ;;  %v2942_v20 = vand.u32 4294901760, %v2842_v33 }
 0x20e   :  { %5427 = vmatprep.subr.bf16.mxu0 %v10554_v57  ;;  %v8162_v57 = vld [vmem:[#allocation7 + $0x28] sm:$0xff] }
 0x20f   :  { %5809 = vmatpush1.bf16.msra.mxu1 %v10555_v49  ;;  %v5860_v49 = vpack.c.bf16 %v2975_v25, %v2968_v12 }
 0x210   :  { %5811 = vmatprep.subr.bf16.mxu1 %v10556_v31  ;;  %v2981_v31 = vsub.f32 %v8138_v3, %v9737_v62 }
 0x211   :  { %5429 = vmatpush1.bf16.msra.mxu0 %v10557_v10  ;;  %v2988_v10 = vsub.f32 %v8143_v40, %v9735_v48 }
 0x212   :  { %5431 = vmatprep.subr.bf16.mxu0 %v10558_v13  ;;  %v2915_v13 = vand.u32 4294901760, %v8149_v50 }
 0x213   :  { %5813 = vmatpush1.bf16.msra.mxu1 %v10559_v23  ;;  %v8171_v23 = vld [vmem:[#allocation7 + $0xb0] sm:$0xff] }
 0x214   :  { %5815 = vmatprep.subr.bf16.mxu1 %v10560_v2  ;;  %v3094_v2 = vand.u32 4294901760, %v3093_v58  ;;  %v2918_v35 = vand.u32 4294901760, %v8171_v23 }
 0x215   :  { %5433 = vmatpush1.bf16.msra.mxu0 %v10561_v30  ;;  %v3101_v30 = vand.u32 4294901760, %v3100_v24 }
 0x216   :  { %5435 = vmatprep.subr.bf16.mxu0 %v10562_v60  ;;  %v8174_v60 = vsub.f32 %v8145_v0, %v2912_v15 }
 0x217   :  { %5817 = vmatpush1.bf16.msra.mxu1 %v10563_v55  ;;  %v2864_v55 = vand.u32 4294901760, %v8153_v34 }
 0x218   :  { %5819 = vmatprep.subr.bf16.mxu1 %v10564_v38  ;;  %v8177_v38 = vld [vmem:[#allocation7 + $0xb8] sm:$0xff] }
 0x219   :  { %5437 = vmatpush1.bf16.msra.mxu0 %v10565_v14  ;;  %v2982_v14 = vand.u32 4294901760, %v2981_v31  ;;  %v8187_v56 = vsub.f32 %v8153_v34, %v2864_v55  ;;  %v8204_v34 = vsub.f32 %v8171_v23, %v2918_v35  ;;  %v8219_v31 = vpack.c.bf16 %v2903_v29, %v2900_v22 }
 0x21a   :  { %5439 = vmatprep.subr.bf16.mxu0 %v10566_v4  ;;  %v2989_v4 = vand.u32 4294901760, %v2988_v10 }
 0x21b   :  { %5821 = vmatpush1.bf16.msra.mxu1 %v10567_v18  ;;  %v8180_v18 = vsub.f32 %v8149_v50, %v2915_v13  ;;  %v2921_v50 = vand.u32 4294901760, %v8177_v38  ;;  %v9730_v25 = vand.u32 4294901760, %v8187_v56 }
 0x21c   :  { %5823 = vmatprep.subr.bf16.mxu1 %v10568_v36  ;;  %v2867_v36 = vand.u32 4294901760, %v8162_v57  ;;  %v5864_v0 = vpack.c.bf16 %v2989_v4, %v2982_v14 }
 0x21d   :  { %5441 = vmatpush1.bf16.msra.mxu0 %v10569_v26  ;;  %v8183_v26 = vld [vmem:[#allocation7 + $0x30] sm:$0xff] }
 0x21e   :  { %5827 = vmatprep.subr.bf16.mxu0 %v8219_v31 }
 0x21f   :  { %5825 = vmatpush1.bf16.msra.mxu1 %v10570_v16  ;;  %v5862_v16 = vpack.c.bf16 %v3101_v30, %v3094_v2  ;;  %v2995_v2 = vsub.f32 %v8187_v56, %v9730_v25  ;;  %v9726_v30 = vand.u32 4294901760, %v8204_v34 }
 0x220   :  { %1487 = vmatmul.mubr.f32.vlgmr.msra.gmra.mrb[0].mxu0 %v10507_v47 }
 0x221   :  { %v2996_v29 = vand.u32 4294901760, %v2995_v2  ;;  %v3121_v28 = vsub.f32 %v8204_v34, %v9726_v30 }
 0x222   :  { %2771 = vmatmul.mubr.f32.vlgmr.msra.gmra.mrb[0].mxu1 %v10507_v47  ;;  %v8080_v47 = vsub.f32 %v8065_v39, %v2900_v22  ;;  %v8235_v22 = vld [vmem:[#allocation7 + $0xc0] sm:$0xff] }
 0x223   :  { %v3122_v44 = vand.u32 4294901760, %v3121_v28 }
 0x224   :  { %v9745_v11 = vand.u32 4294901760, %v8080_v47 }
 0x226   :  { %v3079_v5 = vsub.f32 %v8080_v47, %v9745_v11 }
 0x228   :  { %v3080_v54 = vand.u32 4294901760, %v3079_v5  ;;  %v9734_v5 = vand.u32 4294901760, %v8174_v60 }
 0x22a   :  { %v5858_v61 = vpack.c.bf16 %v3087_v19, %v3080_v54  ;;  %v9732_v54 = vand.u32 4294901760, %v8180_v18  ;;  %v8194_v19 = vsub.f32 %v8162_v57, %v2867_v36  ;;  %v3107_v12 = vsub.f32 %v8174_v60, %v9734_v5 }
 0x22b   :  { %v8212_v57 = vsub.f32 %v8177_v38, %v2921_v50  ;;  %v8229_v38 = vpack.c.bf16 %v2855_v7, %v2852_v59  ;;  %v8251_v59 = vpack.c.bf16 %v2861_v8, %v2858_v32  ;;  %v8253_v7 = vld [vmem:[#allocation7 + $0xc8] sm:$0xff]  ;;  %v8272_v32 = vpack.c.bf16 %v2915_v13, %v2912_v15  ;;  %v8286_v13 = vld [vmem:[#allocation7 + $0xd0] sm:$0xff] }
 0x22c   :  { %5859 = vmatprep.subr.bf16.mxu1 %v5858_v61  ;;  %v2870_v61 = vand.u32 4294901760, %v8183_v26  ;;  %v3114_v58 = vsub.f32 %v8180_v18, %v9732_v54  ;;  %v9728_v24 = vand.u32 4294901760, %v8194_v19  ;;  %v3108_v10 = vand.u32 4294901760, %v3107_v12 }
 0x22d   :  { %5861 = vmatpush3.bf16.msra.mxu1 %v5860_v49  ;;  %v2873_v49 = vand.u32 4294901760, %v8190_v6  ;;  %v9724_v1 = vand.u32 4294901760, %v8212_v57  ;;  %5829 = vmatpush3.bf16.msra.mxu0 %v8229_v38  ;;  %v2924_v8 = vand.u32 4294901760, %v8235_v22  ;;  %v2876_v15 = vand.u32 4294901760, %v8264_v41 }
 0x22e   :  { %5863 = vmatprep.subr.bf16.mxu1 %v5862_v16  ;;  %v3115_v14 = vand.u32 4294901760, %v3114_v58  ;;  %v3002_v39 = vsub.f32 %v8194_v19, %v9728_v24  ;;  %v8262_v42 = vsub.f32 %v8183_v26, %v2870_v61  ;;  %5831 = vmatprep.subr.bf16.mxu0 %v8242_v27  ;;  %v8275_v16 = vld [vmem:[#allocation7 + $0x48] sm:$0xff] }
 0x22f   :  { %v3128_v17 = vsub.f32 %v8212_v57, %v9724_v1  ;;  %v8270_v45 = vsub.f32 %v8190_v6, %v2873_v49 }
 0x230   :  { %v5866_v4 = vpack.c.bf16 %v3115_v14, %v3108_v10  ;;  %v3003_v9 = vand.u32 4294901760, %v3002_v39  ;;  %v9723_v58 = vand.u32 4294901760, %v8262_v42  ;;  %v2927_v10 = vand.u32 4294901760, %v8253_v7 }
 0x231   :  { %5865 = vmatpush3.bf16.msra.mxu1 %v5864_v0  ;;  %v3129_v12 = vand.u32 4294901760, %v3128_v17  ;;  %v9722_v2 = vand.u32 4294901760, %v8270_v45  ;;  %v8281_v14 = vsub.f32 %v8235_v22, %v2924_v8  ;;  %v8283_v39 = vpack.c.bf16 %v2867_v36, %v2864_v55  ;;  %5833 = vmatpush3.bf16.msra.mxu0 %v8251_v59 }
 0x232   :  { %5867 = vmatprep.subr.bf16.mxu1 %v5866_v4  ;;  %v5868_v0 = vpack.c.bf16 %v3003_v9, %v2996_v29  ;;  %v3009_v29 = vsub.f32 %v8262_v42, %v9723_v58  ;;  %v8293_v4 = vsub.f32 %v8253_v7, %v2927_v10  ;;  %v2879_v22 = vand.u32 4294901760, %v8275_v16  ;;  %v8296_v9 = vld [vmem:[#allocation7 + $0xd8] sm:$0xff]  ;;  %5835 = vmatprep.subr.bf16.mxu0 %v8272_v32 }
 0x233   :  { %v5870_v28 = vpack.c.bf16 %v3129_v12, %v3122_v44  ;;  %v3016_v55 = vsub.f32 %v8270_v45, %v9722_v2  ;;  %v9725_v36 = vand.u32 4294901760, %v8281_v14  ;;  %v8304_v17 = vsub.f32 %v8264_v41, %v2876_v15 }
 0x234   :  { %v8308_v44 = vpack.c.bf16 %v2921_v50, %v2918_v35  ;;  %v3010_v7 = vand.u32 4294901760, %v3009_v29  ;;  %v8312_v12 = vsub.f32 %v8275_v16, %v2879_v22  ;;  %v2930_v2 = vand.u32 4294901760, %v8286_v13  ;;  %v8320_v35 = vld [vmem:[#allocation7 + $0x50] sm:$0xff] }
 0x235   :  { %5869 = vmatpush3.bf16.msra.mxu1 %v5868_v0  ;;  %v9727_v0 = vand.u32 4294901760, %v8293_v4  ;;  %v3017_v58 = vand.u32 4294901760, %v3016_v55  ;;  %v3135_v1 = vsub.f32 %v8281_v14, %v9725_v36  ;;  %v9729_v41 = vand.u32 4294901760, %v8304_v17  ;;  %5837 = vmatpush3.bf16.msra.mxu0 %v8283_v39  ;;  %v8336_v55 = vld [vmem:[#allocation7 + $0x58] sm:$0xff] }
 0x236   :  { %5871 = vmatprep.subr.bf16.mxu1 %v5870_v28  ;;  %v2933_v23 = vand.u32 4294901760, %v8296_v9  ;;  %v9731_v16 = vand.u32 4294901760, %v8312_v12  ;;  %v8328_v28 = vsub.f32 %v8286_v13, %v2930_v2  ;;  %v8334_v29 = vpack.c.bf16 %v2873_v49, %v2870_v61  ;;  %5839 = vmatprep.subr.bf16.mxu0 %v8308_v44  ;;  %v8350_v49 = vld [vmem:[#allocation7 + $0xe0] sm:$0xff] }
 0x237   :  { %v3142_v50 = vsub.f32 %v8293_v4, %v9727_v0  ;;  %v5872_v36 = vpack.c.bf16 %v3017_v58, %v3010_v7  ;;  %v3136_v30 = vand.u32 4294901760, %v3135_v1  ;;  %v3023_v0 = vsub.f32 %v8304_v17, %v9729_v41  ;;  %v8352_v1 = vld [vmem:[#allocation7 + $0xe8] sm:$0xff] }
 0x238   :  { %v8343_v24 = vsub.f32 %v8296_v9, %v2933_v23  ;;  %v3030_v26 = vsub.f32 %v8312_v12, %v9731_v16  ;;  %v9733_v6 = vand.u32 4294901760, %v8328_v28  ;;  %v2882_v61 = vand.u32 4294901760, %v8320_v35 }
 0x239   :  { %v3143_v13 = vand.u32 4294901760, %v3142_v50  ;;  %5873 = vmatpush3.bf16.msra.mxu1 %v5872_v36  ;;  %v3024_v58 = vand.u32 4294901760, %v3023_v0  ;;  %v2885_v9 = vand.u32 4294901760, %v8336_v55  ;;  %v8356_v41 = vpack.c.bf16 %v2927_v10, %v2924_v8  ;;  %5841 = vmatpush3.bf16.msra.mxu0 %v8334_v29  ;;  %v2824_v10 = vld [vmem:[#allocation7 + $0x60] sm:$0xff] }
 0x23a   :  { %v9736_v7 = vand.u32 4294901760, %v8343_v24  ;;  %v3031_v25 = vand.u32 4294901760, %v3030_v26  ;;  %v3149_v16 = vsub.f32 %v8328_v28, %v9733_v6  ;;  %v8363_v54 = vsub.f32 %v8320_v35, %v2882_v61 }
 0x23b   :  { %v5874_v50 = vpack.c.bf16 %v3143_v13, %v3136_v30  ;;  %v8369_v0 = vsub.f32 %v8336_v55, %v2885_v9  ;;  %5843 = vmatprep.subr.bf16.mxu0 %v8356_v41  ;;  %v2936_v30 = vand.u32 4294901760, %v8350_v49  ;;  %v2939_v8 = vand.u32 4294901760, %v8352_v1  ;;  %v2825_v13 = vld [vmem:[#allocation7 + $0x68] sm:$0xff] }
 0x23c   :  { %v3156_v36 = vsub.f32 %v8343_v24, %v9736_v7  ;;  %v5876_v26 = vpack.c.bf16 %v3031_v25, %v3024_v58  ;;  %v3150_v6 = vand.u32 4294901760, %v3149_v16  ;;  %v9740_v35 = vand.u32 4294901760, %v8363_v54  ;;  %v2843_v58 = vld [vmem:[#allocation7 + $0xf8] sm:$0xff] }
 0x23d   :  { %5875 = vmatprep.subr.bf16.mxu1 %v5874_v50  ;;  %v8375_v5 = vpack.c.bf16 %v2879_v22, %v2876_v15  ;;  %v9742_v7 = vand.u32 4294901760, %v8369_v0  ;;  %v8379_v55 = vsub.f32 %v8350_v49, %v2936_v30  ;;  %v8382_v62 = vsub.f32 %v8352_v1, %v2939_v8 }
 0x23e   :  { %v3157_v48 = vand.u32 4294901760, %v3156_v36  ;;  %5877 = vmatpush3.bf16.msra.mxu1 %v5876_v26  ;;  %v3037_v25 = vsub.f32 %v8363_v54, %v9740_v35  ;;  %v2888_v16 = vand.u32 4294901760, %v2824_v10  ;;  %v2891_v15 = vand.u32 4294901760, %v2825_v13 }
 0x23f   :  { %10572 = vst [vmem:[#allocation119_spill] sm:$0xff] %v8375_v5  ;;  %5845 = vmatpush3.bf16.msra.mxu0 %v8375_v5  ;;  %v8388_v22 = vpack.c.bf16 %v2933_v23, %v2930_v2  ;;  %v3044_v49 = vsub.f32 %v8369_v0, %v9742_v7  ;;  %v9749_v1 = vand.u32 4294901760, %v8379_v55  ;;  %v9748_v36 = vand.u32 4294901760, %v8382_v62  ;;  %v2826_v7 = vld [vmem:[#allocation7 + $0x70] sm:$0xff] }
 0x240   :  { %v5878_v50 = vpack.c.bf16 %v3157_v48, %v3150_v6  ;;  %v3038_v26 = vand.u32 4294901760, %v3037_v25  ;;  %v8395_v21 = vsub.f32 %v2824_v10, %v2888_v16  ;;  %v8397_v35 = vsub.f32 %v2825_v13, %v2891_v15 }
 0x241   :  { %10573 = vst [vmem:[#allocation121_spill] sm:$0xff] %v8388_v22  ;;  %5847 = vmatprep.subr.bf16.mxu0 %v8388_v22  ;;  %v3045_v2 = vand.u32 4294901760, %v3044_v49  ;;  %v3163_v48 = vsub.f32 %v8379_v55, %v9749_v1  ;;  %v3170_v23 = vsub.f32 %v8382_v62, %v9748_v36  ;;  %v2945_v6 = vand.u32 4294901760, %v2843_v58 }
 0x242   :  { %5879 = vmatprep.subr.bf16.mxu1 %v5878_v50  ;;  %v9752_v10 = vand.u32 4294901760, %v8395_v21  ;;  %v9753_v13 = vand.u32 4294901760, %v8397_v35  ;;  %v8408_v25 = vsub.f32 %v2842_v33, %v2942_v20  ;;  %v8410_v43 = vpack.c.bf16 %v2885_v9, %v2882_v61  ;;  %v2827_v50 = vld [vmem:[#allocation7 + $0x78] sm:$0xff] }
 0x243   :  { %v5880_v49 = vpack.c.bf16 %v3045_v2, %v3038_v26  ;;  %v3164_v53 = vand.u32 4294901760, %v3163_v48  ;;  %v3171_v11 = vand.u32 4294901760, %v3170_v23  ;;  %v8412_v22 = vsub.f32 %v2843_v58, %v2945_v6 }
 0x244   :  { %v3051_v36 = vsub.f32 %v8395_v21, %v9752_v10  ;;  %v3058_v1 = vsub.f32 %v8397_v35, %v9753_v13  ;;  %v9755_v5 = vand.u32 4294901760, %v8408_v25  ;;  %5849 = vmatpush3.bf16.msra.mxu0 %v8410_v43  ;;  %v2894_v33 = vand.u32 4294901760, %v2826_v7 }
 0x245   :  { %5881 = vmatpush3.bf16.msra.mxu1 %v5880_v49  ;;  %v5882_v61 = vpack.c.bf16 %v3171_v11, %v3164_v53  ;;  %v9754_v9 = vand.u32 4294901760, %v8412_v22  ;;  %v2897_v26 = vand.u32 4294901760, %v2827_v50  ;;  %v8423_v58 = vpack.c.bf16 %v2939_v8, %v2936_v30 }
 0x246   :  { %v3052_v2 = vand.u32 4294901760, %v3051_v36  ;;  %v3059_v48 = vand.u32 4294901760, %v3058_v1  ;;  %v3177_v23 = vsub.f32 %v8408_v25, %v9755_v5  ;;  %v8428_v10 = vsub.f32 %v2826_v7, %v2894_v33 }
 0x247   :  { %5883 = vmatprep.subr.bf16.mxu1 %v5882_v61  ;;  %v3184_v13 = vsub.f32 %v8412_v22, %v9754_v9  ;;  %v8433_v49 = vsub.f32 %v2827_v50, %v2897_v26  ;;  %5851 = vmatprep.subr.bf16.mxu0 %v8423_v58  ;;  %v8436_v11 = vpack.c.bf16 %v2891_v15, %v2888_v16 }
 0x248   :  { %10574 = vst [vmem:[#allocation122_spill] sm:$0xff] %v8428_v10  ;;  %v5884_v53 = vpack.c.bf16 %v3059_v48, %v3052_v2  ;;  %v3178_v30 = vand.u32 4294901760, %v3177_v23  ;;  %v3064_v8 = vand.u32 4294901760, %v8428_v10  ;;  %v8439_v1 = vpack.c.bf16 %v2945_v6, %v2942_v20 }
 0x249   :  { %10575 = vst [vmem:[#allocation124_spill] sm:$0xff] %v8433_v49  ;;  %v3185_v36 = vand.u32 4294901760, %v3184_v13  ;;  %v3071_v7 = vand.u32 4294901760, %v8433_v49  ;;  %5853 = vmatpush3.bf16.msra.mxu0 %v8436_v11  ;;  %v8443_v61 = vpack.c.bf16 %v2897_v26, %v2894_v33  ;;  %v5890_v20 = vpack.c.bf16 %v8085_v46, %v8080_v47  ;;  %v10577_v46 = vld [vmem:[#allocation199_spill] sm:$0xff] }
 0x24a   :  { %5885 = vmatpush3.bf16.msra.mxu1 %v5884_v53  ;;  %v3065_v50 = vsub.f32 %v8428_v10, %v3064_v8  ;;  %5855 = vmatprep.subr.bf16.mxu0 %v8439_v1 }
 0x24b   :  { %v5886_v16 = vpack.c.bf16 %v3185_v36, %v3178_v30  ;;  %v3072_v15 = vsub.f32 %v8433_v49, %v3071_v7  ;;  %v8482_v5 = vpack.c.bf16 %v3071_v7, %v3064_v8 }
 0x24c   :  { %v3066_v2 = vand.u32 4294901760, %v3065_v50 }
 0x24d   :  { %5887 = vmatprep.subr.bf16.mxu1 %v5886_v16  ;;  %v3073_v6 = vand.u32 4294901760, %v3072_v15  ;;  %5857 = vmatpush3.bf16.msra.mxu0 %v8443_v61  ;;  %10576 = vst [vmem:[#allocation125_spill] sm:$0xff] %v8482_v5 }
 0x24e   :  { %5891 = vmatprep.subr.bf16.mxu0 %v5890_v20 }
 0x24f   :  { %v5888_v33 = vpack.c.bf16 %v3073_v6, %v3066_v2 }
 0x251   :  { %5889 = vmatpush3.bf16.msra.mxu1 %v5888_v33 }
 0x252   :  { %5923 = vmatprep.subr.bf16.mxu1 %v8219_v31 }
 0x2f3   :  { %v1488_v16 = vpop.f32.mrb[0].mxu0 }
 0x2f4   :  { %v1490_v50 = vpop.f32.mrb[1].mxu0  ;;  %v2777_v15 = vmul.f32 %v1488_v16, %v1488_v16 }
 0x2f5   :  { %v2772_v36 = vpop.f32.mrb[0].mxu1  ;;  %v2778_v30 = vmul.f32 %v1490_v50, %v1490_v50 }
 0x2f6   :  { %v2779_v2 = vmul.f32 %v2772_v36, %v2772_v36  ;;  %v2774_v53 = vpop.f32.mrb[1].mxu1 }
 0x2f7   :  { %v2780_v23 = vmul.f32 %v2774_v53, %v2774_v53 }
 0x2f8   :  { %v2781_v20 = vadd.f32 %v2779_v2, %v2777_v15 }
 0x2f9   :  { %v2782_v48 = vadd.f32 %v2780_v23, %v2778_v30 }
 0x2fa   :  { %6240 = vrsqrt.f32 %v2781_v20  ;;  %vm2785_vm0 = vcmp.eq.f32.partialorder %v2781_v20, inf  ;;  %v2788_v13 = vand.u32 2147483648, %v2781_v20  ;;  %vm2787_vm2 = vcmp.eq.f32.partialorder %v2781_v20, 0.0 }
 0x2fb   :  { %6242 = vrsqrt.f32 %v2782_v48  ;;  %vm2792_vm1 = vcmp.eq.f32.partialorder %v2782_v48, inf  ;;  %v2795_v8 = vand.u32 2147483648, %v2782_v48  ;;  %vm2794_vm3 = vcmp.eq.f32.partialorder %v2782_v48, 0.0 }
 0x304   :  { %v6241_v6 = vpop.eup %6240 }
 0x305   :  { %v6243_v26 = vpop.eup %6242  ;;  %v2784_v33 = vmul.f32 %v6241_v6, %v2781_v20 }
 0x306   :  { %v2791_v9 = vmul.f32 %v6243_v26, %v2782_v48  ;;  %v6248_v26 = vld [vmem:[#allocation2] sm:$0xff] }
 0x307   :  { %v2786_v7 = vsel %vm2785_vm0, %v2781_v20, %v2784_v33 }
 0x308   :  { %v2793_v16 = vsel %vm2792_vm1, %v2782_v48, %v2791_v9  ;;  %v2789_v50 = vsel %vm2787_vm2, %v2788_v13, %v2786_v7 }
 0x309   :  { %v2796_v36 = vsel %vm2794_vm3, %v2795_v8, %v2793_v16  ;;  %v2797_v5 = vadd.f32 1.0, %v2789_v50  ;;  %v10579_v50 = vpack.c.bf16 %v8127_v51, %v8122_v63 }
 0x30a   :  { %v2798_v53 = vadd.f32 1.0, %v2796_v36  ;;  %v10580_v36 = vpack.c.bf16 %v8143_v40, %v8138_v3 }
 0x30b   :  { %6244 = vlog2.f32 %v2797_v5 }
 0x30c   :  { %6246 = vlog2.f32 %v2798_v53  ;;  %v10581_v53 = vpack.c.bf16 %v8180_v18, %v8174_v60 }
 0x315   :  { %v6245_v23 = vpop.eup %6244 }
 0x316   :  { %v6247_v30 = vpop.eup %6246  ;;  %v2800_v15 = vmul.f32 0.6931472, %v6245_v23  ;;  %v10582_v23 = vpack.c.bf16 %v8194_v19, %v8187_v56 }
 0x317   :  { %v2802_v2 = vmul.f32 0.6931472, %v6247_v30  ;;  %v10583_v30 = vld [vmem:[#allocation119_spill] sm:$0xff] }
 0x318   :  { %v2805_v6 = vrot.slane %v2800_v15, 4  ;;  %v10584_v15 = vpack.c.bf16 %v8212_v57, %v8204_v34 }
 0x319   :  { %v2806_v10 = vrot.slane %v2802_v2, 4  ;;  %v10585_v2 = vld [vmem:[#allocation121_spill] sm:$0xff] }
 0x31a   :  { %v2810_v49 = vsel %vm2809_vm4, %v6248_v26, %v2805_v6  ;;  %v10586_v6 = vpack.c.bf16 %v8270_v45, %v8262_v42  ;;  %v10587_v26 = vpack.c.bf16 %v8293_v4, %v8281_v14 }
 0x31b   :  { %v2811_v33 = vsel %vm2809_vm4, %v10577_v46, %v2806_v10  ;;  %v8485_v20 = vand.u32 4294901760, %v2810_v49 }
 0x31c   :  { %v2947_v9 = vand.u32 4294901760, %v2811_v33 }
 0x31d   :  { %v2954_v13 = vsub.f32 %v2810_v49, %v8485_v20  ;;  %v10578_v49 = vpack.c.bf16 %v8095_v52, %v8090_v37 }
 0x31e   :  { %3188 = vmatprep.mubr.f32.mxu1 %v2947_v9  ;;  %v2948_v48 = vsub.f32 %v2811_v33, %v2947_v9  ;;  %v10588_v33 = vpack.c.bf16 %v8312_v12, %v8304_v17 }
 0x31f   :  { %3190 = vmatmul.mubr.f32.vlgmr.msra.gmra.mrb[2].mxu1 %v8485_v20  ;;  %v2955_v5 = vand.u32 4294901760, %v2954_v13 }
 0x320   :  { %5925 = vmatpush3.bf16.msra.mxu1 %v8229_v38  ;;  %v2949_v8 = vand.u32 4294901760, %v2948_v48 }
 0x321   :  { %5927 = vmatprep.subr.bf16.mxu1 %v8242_v27  ;;  %v2956_v7 = vsub.f32 %v2954_v13, %v2955_v5 }
 0x322   :  { %3432 = vmatprep.mubr.f32.mxu1 %v2949_v8  ;;  %v2950_v16 = vsub.f32 %v2948_v48, %v2949_v8  ;;  %v10590_v8 = vpack.c.bf16 %v8369_v0, %v8363_v54 }
 0x323   :  { %v2957_v10 = vand.u32 4294901760, %v2956_v7  ;;  %v10591_v7 = vpack.c.bf16 %v8382_v62, %v8379_v55 }
 0x324   :  { %5929 = vmatpush3.bf16.msra.mxu1 %v8251_v59  ;;  %v2951_v46 = vand.u32 4294901760, %v2950_v16  ;;  %v10592_v16 = vpack.c.bf16 %v8397_v35, %v8395_v21 }
 0x325   :  { %5931 = vmatprep.subr.bf16.mxu1 %v8272_v32 }
 0x326   :  { %2952 = vmatprep.mubr.f32.mxu0 %v2951_v46  ;;  %v10593_v46 = vpack.c.bf16 %v8412_v22, %v8408_v25 }
 0x327   :  { %2958 = vmatmul.mubr.f32.vlgmr.msra.gmra.mrb[2].mxu0 %v2957_v10  ;;  %v10594_v10 = vand.u32 4294901760, %v8080_v47  ;;  %v10602_v47 = vand.u32 4294901760, %v8122_v63  ;;  %v10608_v63 = vand.u32 4294901760, %v8187_v56  ;;  %v10614_v56 = vand.u32 4294901760, %v8281_v14 }
 0x328   :  { %5893 = vmatpush3.bf16.msra.mxu0 %v10578_v49  ;;  %5933 = vmatpush3.bf16.msra.mxu1 %v8283_v39  ;;  %v10595_v49 = vld [vmem:[#allocation118_spill] sm:$0xff]  ;;  %v10620_v14 = vand.u32 4294901760, %v8363_v54  ;;  %v10626_v54 = vand.u32 4294901760, %v8408_v25  ;;  %v8628_v25 = vld [vmem:[#allocation8 + $0x90] sm:$0xff] }
 0x329   :  { %3325 = vmatprep.mubr.f32.mxu0 %v2948_v48  ;;  %5895 = vmatprep.subr.bf16.mxu0 %v10579_v50  ;;  %v10589_v48 = vpack.c.bf16 %v8343_v24, %v8328_v28  ;;  %v10596_v50 = vand.u32 4294901760, %v10595_v49  ;;  %v8640_v49 = vld [vmem:[#allocation8 + $0x18] sm:$0xff] }
 0x32a   :  { %5935 = vmatprep.subr.bf16.mxu1 %v8308_v44 }
 0x32c   :  { %5897 = vmatpush3.bf16.msra.mxu0 %v10580_v36  ;;  %5937 = vmatpush3.bf16.msra.mxu1 %v8334_v29  ;;  %v5954_v36 = vpack.c.bf16 %v10596_v50, %v10594_v10 }
 0x32d   :  { %5899 = vmatprep.subr.bf16.mxu0 %v10581_v53  ;;  %5939 = vmatprep.subr.bf16.mxu1 %v8356_v41 }
 0x330   :  { %5901 = vmatpush3.bf16.msra.mxu0 %v10582_v23  ;;  %5941 = vmatpush3.bf16.msra.mxu1 %v10583_v30  ;;  %v10601_v23 = vand.u32 4294901760, %v8095_v52  ;;  %v10607_v52 = vand.u32 4294901760, %v8180_v18  ;;  %v10613_v18 = vand.u32 4294901760, %v8270_v45  ;;  %v10619_v45 = vand.u32 4294901760, %v8343_v24 }
 0x331   :  { %5903 = vmatprep.subr.bf16.mxu0 %v10584_v15  ;;  %5943 = vmatprep.subr.bf16.mxu1 %v10585_v2  ;;  %v10624_v24 = vand.u32 4294901760, %v8395_v21  ;;  %v3733_v21 = vld [vmem:[#allocation8 + $0x80] sm:$0xff] }
 0x334   :  { %5905 = vmatpush3.bf16.msra.mxu0 %v10586_v6  ;;  %5945 = vmatpush3.bf16.msra.mxu1 %v8410_v43  ;;  %v10603_v6 = vand.u32 4294901760, %v8127_v51  ;;  %v10609_v51 = vand.u32 4294901760, %v8194_v19  ;;  %v10615_v19 = vand.u32 4294901760, %v8293_v4  ;;  %v10621_v4 = vand.u32 4294901760, %v8369_v0 }
 0x335   :  { %5907 = vmatprep.subr.bf16.mxu0 %v10587_v26  ;;  %5947 = vmatprep.subr.bf16.mxu1 %v8423_v58  ;;  %v10627_v0 = vand.u32 4294901760, %v8412_v22  ;;  %v8630_v22 = vld [vmem:[#allocation8 + $0x98] sm:$0xff] }
 0x336   :  { %v5958_v26 = vpack.c.bf16 %v10603_v6, %v10602_v47  ;;  %v3814_v10 = vand.u32 4294901760, %v8630_v22 }
 0x338   :  { %5909 = vmatpush3.bf16.msra.mxu0 %v10588_v33  ;;  %5949 = vmatpush3.bf16.msra.mxu1 %v8436_v11 }
 0x339   :  { %5911 = vmatprep.subr.bf16.mxu0 %v10589_v48  ;;  %5951 = vmatprep.subr.bf16.mxu1 %v8439_v1 }
 0x33c   :  { %5913 = vmatpush3.bf16.msra.mxu0 %v10590_v8  ;;  %5953 = vmatpush3.bf16.msra.mxu1 %v8443_v61 }
 0x33d   :  { %5915 = vmatprep.subr.bf16.mxu0 %v10591_v7  ;;  %5987 = vmatprep.subr.bf16.mxu1 %v8219_v31  ;;  %v10597_v31 = vld [vmem:[#allocation124_spill] sm:$0xff] }
 0x33e   :  { %v8632_v7 = vld [vmem:[#allocation8 + $0x10] sm:$0xff] }
 0x33f   :  { %3436 = vmatmul.mubr.f32.vlgmr.msra.gmra.mrb[4].mxu1 %v2955_v5  ;;  %v10598_v5 = vld [vmem:[#allocation122_spill] sm:$0xff] }
 0x340   :  { %5917 = vmatpush3.bf16.msra.mxu0 %v10592_v16  ;;  %5989 = vmatpush3.bf16.msra.mxu1 %v8229_v38  ;;  %v10599_v53 = vpack.c.bf16 %v10597_v31, %v10598_v5  ;;  %v10600_v38 = vand.u32 4294901760, %v8090_v37  ;;  %v10606_v37 = vand.u32 4294901760, %v8174_v60  ;;  %v10612_v60 = vand.u32 4294901760, %v8262_v42 }
 0x341   :  { %3706 = vmatprep.mubr.f32.mxu1 %v2947_v9  ;;  %5919 = vmatprep.subr.bf16.mxu0 %v10593_v46  ;;  %v10618_v42 = vand.u32 4294901760, %v8328_v28  ;;  %v10625_v28 = vand.u32 4294901760, %v8397_v35  ;;  %v3805_v35 = vand.u32 4294901760, %v3733_v21  ;;  %v3763_v31 = vand.u32 4294901760, %v8632_v7 }
 0x342   :  { %5991 = vmatprep.subr.bf16.mxu1 %v8242_v27  ;;  %v5956_v15 = vpack.c.bf16 %v10601_v23, %v10600_v38  ;;  %v10604_v27 = vand.u32 4294901760, %v8138_v3  ;;  %v10610_v3 = vand.u32 4294901760, %v8204_v34  ;;  %v10616_v34 = vand.u32 4294901760, %v8304_v17 }
 0x343   :  { %v10622_v17 = vand.u32 4294901760, %v8379_v55  ;;  %v3734_v55 = vld [vmem:[#allocation8 + $0x88] sm:$0xff]  ;;  %v8634_v16 = vsub.f32 %v3733_v21, %v3805_v35  ;;  %v3766_v5 = vand.u32 4294901760, %v8640_v49 }
 0x344   :  { %5921 = vmatpush3.bf16.msra.mxu0 %v10599_v53  ;;  %5993 = vmatpush3.bf16.msra.mxu1 %v8251_v59  ;;  %v10605_v59 = vand.u32 4294901760, %v8143_v40  ;;  %v10611_v40 = vand.u32 4294901760, %v8212_v57  ;;  %v10617_v57 = vand.u32 4294901760, %v8312_v12 }
 0x345   :  { %5955 = vmatprep.subr.bf16.mxu0 %v5954_v36  ;;  %5995 = vmatprep.subr.bf16.mxu1 %v8272_v32  ;;  %v5962_v32 = vpack.c.bf16 %v10607_v52, %v10606_v37  ;;  %10629 = vst [vmem:[#allocation126_spill] sm:$0xff] %v8634_v16  ;;  %v9780_v53 = vand.u32 4294901760, %v8634_v16 }
 0x346   :  { %v5960_v33 = vpack.c.bf16 %v10605_v59, %v10604_v27  ;;  %v8670_v27 = vsub.f32 %v8640_v49, %v3766_v5  ;;  %v8837_v49 = vld [vmem:[#allocation8 + $0x50] sm:$0xff] }
 0x347   :  { %3328 = vmatmul.mubr.f32.vlgmr.msra.gmra.mrb[4].mxu0 %v2954_v13  ;;  %v5974_v13 = vpack.c.bf16 %v10619_v45, %v10618_v42  ;;  %v3984_v59 = vsub.f32 %v8634_v16, %v9780_v53 }
 0x348   :  { %5957 = vmatpush3.bf16.msra.mxu0 %v5956_v15  ;;  %3602 = vmatprep.mubr.f32.mxu0 %v2947_v9  ;;  %v5964_v9 = vpack.c.bf16 %v10609_v51, %v10608_v63  ;;  %v8658_v15 = vsub.f32 %v8630_v22, %v3814_v10 }
 0x349   :  { %5997 = vmatpush3.bf16.msra.mxu1 %v8283_v39  ;;  %5959 = vmatprep.subr.bf16.mxu0 %v5958_v26  ;;  %v5966_v39 = vpack.c.bf16 %v10611_v40, %v10610_v3  ;;  %v8665_v26 = vsub.f32 %v8632_v7, %v3763_v31  ;;  %v3985_v3 = vand.u32 4294901760, %v3984_v59 }
 0x34a   :  { %5999 = vmatprep.subr.bf16.mxu1 %v8308_v44  ;;  %v5968_v44 = vpack.c.bf16 %v10613_v18, %v10612_v60  ;;  %v9766_v52 = vand.u32 4294901760, %v8658_v15  ;;  %v8694_v18 = vld [vmem:[#allocation8 + $0xa0] sm:$0xff] }
 0x34b   :  { %v9763_v51 = vand.u32 4294901760, %v8665_v26 }
 0x34c   :  { %5961 = vmatpush3.bf16.msra.mxu0 %v5960_v33  ;;  %v4005_v60 = vsub.f32 %v8658_v15, %v9766_v52 }
 0x34d   :  { %6001 = vmatpush3.bf16.msra.mxu1 %v8334_v29  ;;  %5963 = vmatprep.subr.bf16.mxu0 %v5962_v32  ;;  %v5970_v29 = vpack.c.bf16 %v10615_v19, %v10614_v56  ;;  %v3886_v19 = vsub.f32 %v8665_v26, %v9763_v51 }
 0x34e   :  { %6003 = vmatprep.subr.bf16.mxu1 %v8356_v41  ;;  %v5972_v41 = vpack.c.bf16 %v10617_v57, %v10616_v34  ;;  %v8702_v34 = vld [vmem:[#allocation8 + $0xa8] sm:$0xff]  ;;  %v8704_v57 = vld [vmem:[#allocation8 + $0x20] sm:$0xff]  ;;  %v4006_v45 = vand.u32 4294901760, %v4005_v60 }
 0x350   :  { %5965 = vmatpush3.bf16.msra.mxu0 %v5964_v9  ;;  %v9762_v9 = vand.u32 4294901760, %v8670_v27 }
 0x351   :  { %6005 = vmatpush3.bf16.msra.mxu1 %v10583_v30  ;;  %5967 = vmatprep.subr.bf16.mxu0 %v5966_v39  ;;  %v5976_v30 = vpack.c.bf16 %v10621_v4, %v10620_v14  ;;  %v8708_v14 = vld [vmem:[#allocation8 + $0x28] sm:$0xff] }
 0x352   :  { %6007 = vmatprep.subr.bf16.mxu1 %v10585_v2  ;;  %v3717_v2 = vld [vmem:[#allocation8] sm:$0xff] }
 0x353   :  { %v3757_v48 = vand.u32 4294901760, %v3717_v2 }
 0x354   :  { %5969 = vmatpush3.bf16.msra.mxu0 %v5968_v44 }
 0x355   :  { %6009 = vmatpush3.bf16.msra.mxu1 %v8410_v43  ;;  %5971 = vmatprep.subr.bf16.mxu0 %v5970_v29  ;;  %v10623_v43 = vand.u32 4294901760, %v8382_v62  ;;  %v10628_v62 = vld [vmem:[#allocation125_spill] sm:$0xff]  ;;  %v8642_v50 = vsub.f32 %v3717_v2, %v3757_v48  ;;  %v3893_v29 = vsub.f32 %v8670_v27, %v9762_v9  ;;  %v8799_v9 = vld [vmem:[#allocation8 + $0xc8] sm:$0xff] }
 0x356   :  { %6011 = vmatprep.subr.bf16.mxu1 %v8423_v58  ;;  %v5980_v58 = vpack.c.bf16 %v10625_v28, %v10624_v24  ;;  %v8713_v24 = vld [vmem:[#allocation8 + $0xb8] sm:$0xff] }
 0x357   :  { %v5978_v12 = vpack.c.bf16 %v10623_v43, %v10622_v17  ;;  %v9774_v47 = vand.u32 4294901760, %v8642_v50  ;;  %v3894_v17 = vand.u32 4294901760, %v3893_v29  ;;  %v3817_v43 = vand.u32 4294901760, %v8694_v18 }
 0x358   :  { %5973 = vmatpush3.bf16.msra.mxu0 %v5972_v41 }
 0x359   :  { %6013 = vmatpush3.bf16.msra.mxu1 %v8436_v11  ;;  %5975 = vmatprep.subr.bf16.mxu0 %v5974_v13  ;;  %v5982_v11 = vpack.c.bf16 %v10627_v0, %v10626_v54  ;;  %v3872_v32 = vsub.f32 %v8642_v50, %v9774_v47  ;;  %v3769_v0 = vand.u32 4294901760, %v8704_v57 }
 0x35a   :  { %6015 = vmatprep.subr.bf16.mxu1 %v8439_v1  ;;  %v3808_v1 = vand.u32 4294901760, %v3734_v55 }
 0x35b   :  { %v3873_v44 = vand.u32 4294901760, %v3872_v32 }
 0x35c   :  { %5977 = vmatpush3.bf16.msra.mxu0 %v5976_v30  ;;  %v8636_v46 = vsub.f32 %v3734_v55, %v3808_v1  ;;  %v8706_v13 = vpack.c.bf16 %v3808_v1, %v3805_v35  ;;  %v3887_v30 = vand.u32 4294901760, %v3886_v19  ;;  %v8727_v55 = vsub.f32 %v8694_v18, %v3817_v43 }
 0x35d   :  { %6017 = vmatpush3.bf16.msra.mxu1 %v8443_v61  ;;  %5979 = vmatprep.subr.bf16.mxu0 %v5978_v12  ;;  %v3718_v61 = vld [vmem:[#allocation8 + $0x8] sm:$0xff]  ;;  %v8711_v12 = vld [vmem:[#allocation8 + $0xb0] sm:$0xff]  ;;  %v3772_v35 = vand.u32 4294901760, %v8708_v14 }
 0x35e   :  { %v3760_v8 = vand.u32 4294901760, %v3718_v61  ;;  %10630 = vst [vmem:[#allocation128_spill] sm:$0xff] %v8636_v46  ;;  %v9777_v38 = vand.u32 4294901760, %v8636_v46  ;;  %v6056_v21 = vpack.c.bf16 %v3894_v17, %v3887_v30  ;;  %v3823_v1 = vand.u32 4294901760, %v8711_v12 }
 0x35f   :  { %v9760_v59 = vand.u32 4294901760, %v8727_v55  ;;  %v8849_v18 = vpack.c.bf16 %v3772_v35, %v3769_v0 }
 0x360   :  { %3708 = vmatmul.mubr.f32.vlgmr.msra.gmra.mrb[6].mxu1 %v8485_v20  ;;  %5981 = vmatpush3.bf16.msra.mxu0 %v5980_v58  ;;  %v8644_v36 = vsub.f32 %v3718_v61, %v3760_v8  ;;  %v3991_v33 = vsub.f32 %v8636_v46, %v9777_v38  ;;  %v3820_v58 = vand.u32 4294901760, %v8702_v34  ;;  %v8717_v54 = vpack.c.bf16 %v3760_v8, %v3757_v48 }
 0x361   :  { %5983 = vmatprep.subr.bf16.mxu0 %v5982_v11  ;;  %v8720_v11 = vld [vmem:[#allocation8 + $0x30] sm:$0xff]  ;;  %v8738_v61 = vsub.f32 %v8704_v57, %v3769_v0  ;;  %v3826_v48 = vand.u32 4294901760, %v8713_v24  ;;  %v8751_v32 = vsub.f32 %v8711_v12, %v3823_v1 }
 0x362   :  { %v9770_v6 = vand.u32 4294901760, %v8644_v36  ;;  %v3992_v40 = vand.u32 4294901760, %v3991_v33  ;;  %v8732_v2 = vsub.f32 %v8702_v34, %v3820_v58  ;;  %v3775_v8 = vand.u32 4294901760, %v8720_v11 }
 0x363   :  { %v8746_v33 = vsub.f32 %v8708_v14, %v3772_v35  ;;  %v9765_v19 = vand.u32 4294901760, %v8751_v32  ;;  %v9782_v35 = vand.u32 4294901760, %v8837_v49 }
 0x364   :  { %5985 = vmatpush3.bf16.msra.mxu0 %v10628_v62  ;;  %v3879_v63 = vsub.f32 %v8644_v36, %v9770_v6  ;;  %v6050_v41 = vpack.c.bf16 %v3992_v40, %v3985_v3  ;;  %v8722_v62 = vld [vmem:[#allocation8 + $0x38] sm:$0xff]  ;;  %v9759_v3 = vand.u32 4294901760, %v8732_v2  ;;  %v9761_v40 = vand.u32 4294901760, %v8738_v61  ;;  %v8813_v6 = vld [vmem:[#allocation8 + $0x48] sm:$0xff] }
 0x365   :  { %6019 = vmatprep.subr.bf16.mxu0 %v8706_v13  ;;  %v8764_v60 = vsub.f32 %v8720_v11, %v3775_v8 }
 0x366   :  { %v3880_v56 = vand.u32 4294901760, %v3879_v63  ;;  %6051 = vmatprep.subr.bf16.mxu1 %v6050_v41  ;;  %v3778_v63 = vand.u32 4294901760, %v8722_v62  ;;  %v4019_v34 = vsub.f32 %v8732_v2, %v9759_v3  ;;  %v3900_v41 = vsub.f32 %v8738_v61, %v9761_v40 }
 0x367   :  { %3604 = vmatmul.mubr.f32.vlgmr.msra.gmra.mrb[6].mxu0 %v8485_v20  ;;  %v3811_v20 = vand.u32 4294901760, %v8628_v25 }
 0x368   :  { %v6052_v4 = vpack.c.bf16 %v3880_v56, %v3873_v44  ;;  %6021 = vmatpush3.bf16.msra.mxu0 %v8717_v54  ;;  %v4012_v44 = vsub.f32 %v8727_v55, %v9760_v59  ;;  %v9764_v56 = vand.u32 4294901760, %v8746_v33  ;;  %v8774_v29 = vsub.f32 %v8722_v62, %v3778_v63 }
 0x369   :  { %v8653_v23 = vsub.f32 %v8628_v25, %v3811_v20  ;;  %v4020_v3 = vand.u32 4294901760, %v4019_v34  ;;  %v3901_v59 = vand.u32 4294901760, %v3900_v41  ;;  %v8805_v34 = vld [vmem:[#allocation8 + $0x40] sm:$0xff]  ;;  %v8824_v25 = vld [vmem:[#allocation8 + $0xd8] sm:$0xff]  ;;  %v8914_v12 = vpack.c.bf16 %v3778_v63, %v3775_v8 }
 0x36a   :  { %6053 = vmatpush3.bf16.msra.mxu1 %v6052_v4  ;;  %v8784_v4 = vld [vmem:[#allocation8 + $0xc0] sm:$0xff]  ;;  %v4013_v30 = vand.u32 4294901760, %v4012_v44  ;;  %v3907_v17 = vsub.f32 %v8746_v33, %v9764_v56  ;;  %v3838_v57 = vand.u32 4294901760, %v8824_v25 }
 0x36b   :  { %v9769_v37 = vand.u32 4294901760, %v8653_v23  ;;  %v3829_v52 = vand.u32 4294901760, %v8784_v4  ;;  %v8927_v8 = vld [vmem:[#allocation8 + $0x60] sm:$0xff] }
 0x36c   :  { %v3908_v51 = vand.u32 4294901760, %v3907_v17  ;;  %v6058_v41 = vpack.c.bf16 %v4020_v3, %v4013_v30  ;;  %v3832_v3 = vand.u32 4294901760, %v8799_v9  ;;  %v8822_v30 = vld [vmem:[#allocation8 + $0xd0] sm:$0xff] }
 0x36d   :  { %v3998_v39 = vsub.f32 %v8653_v23, %v9769_v37  ;;  %v8834_v7 = vsub.f32 %v8784_v4, %v3829_v52  ;;  %v3748_v4 = vld [vmem:[#allocation8 + $0xf8] sm:$0xff] }
 0x36e   :  { %v6060_v17 = vpack.c.bf16 %v3908_v51, %v3901_v59  ;;  %v8843_v51 = vsub.f32 %v8799_v9, %v3832_v3  ;;  %v9783_v9 = vand.u32 4294901760, %v8822_v30 }
 0x36f   :  { %v3999_v42 = vand.u32 4294901760, %v3998_v39  ;;  %v8759_v39 = vsub.f32 %v8713_v24, %v3826_v48 }
 0x370   :  { %v9772_v14 = vand.u32 4294901760, %v8843_v51 }
 0x371   :  { %v6054_v28 = vpack.c.bf16 %v4006_v45, %v3999_v42  ;;  %v9767_v42 = vand.u32 4294901760, %v8759_v39  ;;  %v9768_v45 = vand.u32 4294901760, %v8764_v60 }
 0x373   :  { %6055 = vmatprep.subr.bf16.mxu1 %v6054_v28  ;;  %v4026_v28 = vsub.f32 %v8751_v32, %v9765_v19  ;;  %v4033_v40 = vsub.f32 %v8759_v39, %v9767_v42  ;;  %v3914_v44 = vsub.f32 %v8764_v60, %v9768_v45  ;;  %v8811_v42 = vpack.c.bf16 %v3814_v10, %v3811_v20 }
 0x374   :  { %6057 = vmatpush3.bf16.msra.mxu1 %v6056_v21  ;;  %v9771_v21 = vand.u32 4294901760, %v8774_v29  ;;  %v8829_v20 = vpack.c.bf16 %v3820_v58, %v3817_v43  ;;  %v3781_v10 = vand.u32 4294901760, %v8805_v34  ;;  %v3784_v43 = vand.u32 4294901760, %v8813_v6 }
 0x375   :  { %v4027_v56 = vand.u32 4294901760, %v4026_v28  ;;  %v4034_v45 = vand.u32 4294901760, %v4033_v40  ;;  %v3915_v37 = vand.u32 4294901760, %v3914_v44  ;;  %v8819_v28 = vpack.c.bf16 %v3766_v5, %v3763_v31  ;;  %6059 = vmatprep.subr.bf16.mxu1 %v6058_v41  ;;  %6023 = vmatprep.subr.bf16.mxu0 %v8811_v42  ;;  %v8839_v31 = vld [vmem:[#allocation8 + $0x58] sm:$0xff] }
 0x376   :  { %v3921_v19 = vsub.f32 %v8774_v29, %v9771_v21  ;;  %v9773_v58 = vand.u32 4294901760, %v8834_v7  ;;  %v8863_v0 = vsub.f32 %v8813_v6, %v3784_v43  ;;  %v9781_v59 = vand.u32 4294901760, %v8839_v31 }
 0x377   :  { %v6062_v22 = vpack.c.bf16 %v4034_v45, %v4027_v56  ;;  %6025 = vmatpush3.bf16.msra.mxu0 %v8819_v28  ;;  %v8877_v45 = vsub.f32 %v8824_v25, %v3838_v57  ;;  %v4047_v6 = vsub.f32 %v8843_v51, %v9772_v14  ;;  %v8887_v44 = vsub.f32 %v8837_v49, %v9782_v35  ;;  %v8904_v14 = vld [vmem:[#allocation8 + $0xe0] sm:$0xff] }
 0x378   :  { %v3922_v21 = vand.u32 4294901760, %v3921_v19  ;;  %6061 = vmatpush3.bf16.msra.mxu1 %v6060_v17  ;;  %6027 = vmatprep.subr.bf16.mxu0 %v8829_v20  ;;  %v4040_v40 = vsub.f32 %v8834_v7, %v9773_v58  ;;  %v8874_v19 = vsub.f32 %v8822_v30, %v9783_v9  ;;  %v8892_v41 = vsub.f32 %v8839_v31, %v9781_v59 }
 0x379   :  { %6063 = vmatprep.subr.bf16.mxu1 %v6062_v22  ;;  %v8901_v22 = vpack.c.bf16 %v3826_v48, %v3823_v1  ;;  %v4048_v58 = vand.u32 4294901760, %v4047_v6  ;;  %v9786_v48 = vand.u32 4294901760, %v8887_v44  ;;  %v3841_v62 = vand.u32 4294901760, %v8904_v14 }
 0x37a   :  { %v6064_v5 = vpack.c.bf16 %v3922_v21, %v3915_v37  ;;  %v8857_v37 = vsub.f32 %v8805_v34, %v3781_v10  ;;  %v9775_v21 = vand.u32 4294901760, %v8863_v0  ;;  %v4041_v17 = vand.u32 4294901760, %v4040_v40 }
 0x37b   :  { %6029 = vmatpush3.bf16.msra.mxu0 %v8849_v18  ;;  %v9778_v40 = vand.u32 4294901760, %v8877_v45  ;;  %v9784_v6 = vand.u32 4294901760, %v8892_v41  ;;  %v8940_v59 = vsub.f32 %v8904_v14, %v3841_v62  ;;  %v10633_v34 = vand.u32 4294901760, %v8822_v30 }
 0x37c   :  { %v9776_v56 = vand.u32 4294901760, %v8857_v37  ;;  %6065 = vmatpush3.bf16.msra.mxu1 %v6064_v5  ;;  %v9779_v5 = vand.u32 4294901760, %v8874_v19  ;;  %v3935_v47 = vsub.f32 %v8863_v0, %v9775_v21  ;;  %6031 = vmatprep.subr.bf16.mxu0 %v8901_v22  ;;  %v3746_v21 = vld [vmem:[#allocation8 + $0xe8] sm:$0xff]  ;;  %v10636_v30 = vand.u32 4294901760, %v8837_v49 }
 0x37d   :  { %v4061_v11 = vsub.f32 %v8877_v45, %v9778_v40  ;;  %v3844_v53 = vand.u32 4294901760, %v3746_v21 }
 0x37e   :  { %v3928_v25 = vsub.f32 %v8857_v37, %v9776_v56  ;;  %v4054_v1 = vsub.f32 %v8874_v19, %v9779_v5  ;;  %v6066_v56 = vpack.c.bf16 %v4048_v58, %v4041_v17  ;;  %v3936_v38 = vand.u32 4294901760, %v3935_v47  ;;  %v3730_v17 = vld [vmem:[#allocation8 + $0x68] sm:$0xff] }
 0x37f   :  { %6033 = vmatpush3.bf16.msra.mxu0 %v8914_v12  ;;  %v3949_v58 = vsub.f32 %v8892_v41, %v9784_v6  ;;  %v8937_v47 = vpack.c.bf16 %v3832_v3, %v3829_v52  ;;  %v4062_v5 = vand.u32 4294901760, %v4061_v11  ;;  %v8945_v6 = vpack.c.bf16 %v3784_v43, %v3781_v10 }
 0x380   :  { %v3929_v24 = vand.u32 4294901760, %v3928_v25  ;;  %v4055_v63 = vand.u32 4294901760, %v4054_v1  ;;  %v3942_v25 = vsub.f32 %v8887_v44, %v9786_v48  ;;  %6067 = vmatprep.subr.bf16.mxu1 %v6066_v56  ;;  %v3747_v1 = vld [vmem:[#allocation8 + $0xf0] sm:$0xff]  ;;  %v3793_v52 = vand.u32 4294901760, %v8927_v8 }
 0x381   :  { %10631 = vst [vmem:[#allocation130_spill] sm:$0xff] %v8937_v47  ;;  %v3950_v9 = vand.u32 4294901760, %v3949_v58  ;;  %6035 = vmatprep.subr.bf16.mxu0 %v8937_v47  ;;  %10632 = vst [vmem:[#allocation131_spill] sm:$0xff] %v8945_v6  ;;  %v8949_v56 = vsub.f32 %v3746_v21, %v3844_v53  ;;  %v3796_v14 = vand.u32 4294901760, %v3730_v17  ;;  %v8957_v10 = vpack.c.bf16 %v3838_v57, %v10633_v34 }
 0x382   :  { %v6068_v40 = vpack.c.bf16 %v3936_v38, %v3929_v24  ;;  %v3943_v35 = vand.u32 4294901760, %v3942_v25  ;;  %v6070_v3 = vpack.c.bf16 %v4062_v5, %v4055_v63  ;;  %v9785_v38 = vand.u32 4294901760, %v8940_v59  ;;  %v3731_v24 = vld [vmem:[#allocation8 + $0x70] sm:$0xff] }
 0x383   :  { %6037 = vmatpush3.bf16.msra.mxu0 %v8945_v6  ;;  %v8953_v25 = vsub.f32 %v8927_v8, %v3793_v52  ;;  %10634 = vst [vmem:[#allocation133_spill] sm:$0xff] %v8957_v10  ;;  %v3847_v43 = vand.u32 4294901760, %v3747_v1  ;;  %v9787_v21 = vand.u32 4294901760, %v8949_v56  ;;  %v10637_v57 = vand.u32 4294901760, %v8839_v31 }
 0x384   :  { %6069 = vmatpush3.bf16.msra.mxu1 %v6068_v40  ;;  %v6072_v11 = vpack.c.bf16 %v3950_v9, %v3943_v35  ;;  %v4068_v5 = vsub.f32 %v8940_v59, %v9785_v38  ;;  %v8963_v40 = vsub.f32 %v3730_v17, %v3796_v14  ;;  %v3850_v9 = vand.u32 4294901760, %v3748_v4  ;;  %v3732_v35 = vld [vmem:[#allocation8 + $0x78] sm:$0xff]  ;;  %6039 = vmatprep.subr.bf16.mxu0 %v8957_v10 }
 0x385   :  { %6071 = vmatprep.subr.bf16.mxu1 %v6070_v3  ;;  %v9788_v63 = vand.u32 4294901760, %v8953_v25  ;;  %v8967_v8 = vsub.f32 %v3747_v1, %v3847_v43  ;;  %v8973_v58 = vpack.c.bf16 %v10637_v57, %v10636_v30  ;;  %v3799_v3 = vand.u32 4294901760, %v3731_v24 }
 0x386   :  { %v4069_v34 = vand.u32 4294901760, %v4068_v5  ;;  %v4075_v17 = vsub.f32 %v8949_v56, %v9787_v21  ;;  %v9795_v38 = vand.u32 4294901760, %v8963_v40  ;;  %v8979_v48 = vsub.f32 %v3748_v4, %v3850_v9 }
 0x387   :  { %10635 = vst [vmem:[#allocation134_spill] sm:$0xff] %v8967_v8  ;;  %10638 = vst [vmem:[#allocation136_spill] sm:$0xff] %v8973_v58  ;;  %v3956_v1 = vsub.f32 %v8953_v25, %v9788_v63  ;;  %v9796_v49 = vand.u32 4294901760, %v8967_v8  ;;  %6041 = vmatpush3.bf16.msra.mxu0 %v8973_v58  ;;  %v3802_v31 = vand.u32 4294901760, %v3732_v35  ;;  %v8986_v30 = vsub.f32 %v3731_v24, %v3799_v3 }
 0x388   :  { %6073 = vmatpush3.bf16.msra.mxu1 %v6072_v11  ;;  %v4076_v11 = vand.u32 4294901760, %v4075_v17  ;;  %v3963_v5 = vsub.f32 %v8963_v40, %v9795_v38  ;;  %v9799_v57 = vand.u32 4294901760, %v8979_v48  ;;  %v8992_v4 = vpack.c.bf16 %v3844_v53, %v3841_v62 }
 0x389   :  { %10639 = vst [vmem:[#allocation137_spill] sm:$0xff] %v8986_v30  ;;  %v3957_v21 = vand.u32 4294901760, %v3956_v1  ;;  %v4082_v63 = vsub.f32 %v8967_v8, %v9796_v49  ;;  %v3969_v10 = vand.u32 4294901760, %v8986_v30  ;;  %v8998_v58 = vsub.f32 %v3732_v35, %v3802_v31 }
 0x38a   :  { %v6074_v24 = vpack.c.bf16 %v4076_v11, %v4069_v34  ;;  %v3964_v6 = vand.u32 4294901760, %v3963_v5  ;;  %v4089_v17 = vsub.f32 %v8979_v48, %v9799_v57  ;;  %6043 = vmatprep.subr.bf16.mxu0 %v8992_v4  ;;  %v9004_v38 = vpack.c.bf16 %v3796_v14, %v3793_v52 }
 0x38b   :  { %10640 = vst [vmem:[#allocation138_spill] sm:$0xff] %v8998_v58  ;;  %v4083_v53 = vand.u32 4294901760, %v4082_v63  ;;  %v3970_v62 = vsub.f32 %v8986_v30, %v3969_v10  ;;  %v3976_v1 = vand.u32 4294901760, %v8998_v58  ;;  %v9008_v49 = vpack.c.bf16 %v3850_v9, %v3847_v43 }
 0x38c   :  { %6075 = vmatprep.subr.bf16.mxu1 %v6074_v24  ;;  %v6076_v35 = vpack.c.bf16 %v3964_v6, %v3957_v21  ;;  %v4090_v47 = vand.u32 4294901760, %v4089_v17  ;;  %6045 = vmatpush3.bf16.msra.mxu0 %v9004_v38  ;;  %v9011_v34 = vpack.c.bf16 %v3802_v31, %v3799_v3  ;;  %v6082_v63 = vpack.c.bf16 %v8636_v46, %v8634_v16 }
 0x38d   :  { %v3971_v11 = vand.u32 4294901760, %v3970_v62  ;;  %v3977_v5 = vsub.f32 %v8998_v58, %v3976_v1  ;;  %6047 = vmatprep.subr.bf16.mxu0 %v9008_v49  ;;  %v9052_v31 = vpack.c.bf16 %v3976_v1, %v3969_v10 }
 0x38e   :  { %6077 = vmatpush3.bf16.msra.mxu1 %v6076_v35  ;;  %v6078_v52 = vpack.c.bf16 %v4090_v47, %v4083_v53  ;;  %v4636_v35 = vld [vmem:[%s9215_s3] ss:$0 sm:$0xff] }
 0x38f   :  { %v3978_v14 = vand.u32 4294901760, %v3977_v5 }
 0x390   :  { %6079 = vmatprep.subr.bf16.mxu1 %v6078_v52  ;;  %6049 = vmatpush3.bf16.msra.mxu0 %v9011_v34 }
 0x391   :  { %v6080_v43 = vpack.c.bf16 %v3978_v14, %v3971_v11  ;;  %6083 = vmatprep.subr.bf16.mxu0 %v6082_v63 }
 0x393   :  { %6081 = vmatpush3.bf16.msra.mxu1 %v6080_v43 }
 0x394   :  { %6115 = vmatprep.subr.bf16.mxu1 %v8706_v13 }
 0x3f2   :  { %v4705_v63 = vpop.f32.mrb[2].mxu1 }
 0x3f3   :  { %v4706_v43 = vpop.f32.mrb[3].mxu1 }
 0x3f4   :  { %v4707_v57 = vadd.f32 %v4706_v43, %v4705_v63 }
 0x3fa   :  { %v4670_v53 = vpop.f32.mrb[2].mxu0 }
 0x3fb   :  { %v4671_v62 = vpop.f32.mrb[3].mxu0 }
 0x3fc   :  { %v4672_v17 = vadd.f32 %v4671_v62, %v4670_v53 }
 0x3fe   :  { %v2960_v11 = vadd.f32 %v4672_v17, %v4636_v35  ;;  %v10645_v35 = vld [vmem:[#allocation130_spill] sm:$0xff] }
 0x400   :  { %v3192_v24 = vadd.f32 %v4707_v57, %v2960_v11  ;;  %v10646_v11 = vpack.c.bf16 %v8746_v33, %v8738_v61 }
 0x412   :  { %v4775_v5 = vpop.f32.mrb[4].mxu1 }
 0x413   :  { %v4776_v3 = vpop.f32.mrb[5].mxu1 }
 0x414   :  { %v4777_v52 = vadd.f32 %v4776_v3, %v4775_v5  ;;  %v10647_v5 = vld [vmem:[#allocation131_spill] sm:$0xff] }
 0x41a   :  { %v4740_v9 = vpop.f32.mrb[4].mxu0 }
 0x41b   :  { %v4741_v47 = vpop.f32.mrb[5].mxu0 }
 0x41c   :  { %v4742_v14 = vadd.f32 %v4741_v47, %v4740_v9  ;;  %v10643_v9 = vpack.c.bf16 %v8670_v27, %v8665_v26 }
 0x41e   :  { %v3330_v21 = vadd.f32 %v4742_v14, %v3192_v24  ;;  %v10644_v24 = vpack.c.bf16 %v8732_v2, %v8727_v55  ;;  %v10649_v14 = vld [vmem:[#allocation133_spill] sm:$0xff] }
 0x420   :  { %v3438_v6 = vadd.f32 %v4777_v52, %v3330_v21  ;;  %v10648_v52 = vpack.c.bf16 %v8759_v39, %v8751_v32 }
 0x433   :  { %v4845_v63 = vpop.f32.mrb[6].mxu1 }
 0x434   :  { %v4846_v43 = vpop.f32.mrb[7].mxu1 }
 0x435   :  { %v4847_v30 = vadd.f32 %v4846_v43, %v4845_v63  ;;  %v10650_v63 = vpack.c.bf16 %v8774_v29, %v8764_v60  ;;  %v10651_v43 = vld [vmem:[#allocation136_spill] sm:$0xff] }
 0x43a   :  { %v4810_v58 = vpop.f32.mrb[6].mxu0 }
 0x43b   :  { %v4811_v46 = vpop.f32.mrb[7].mxu0 }
 0x43c   :  { %v4812_v16 = vadd.f32 %v4811_v46, %v4810_v58 }
 0x43e   :  { %v3606_v8 = vadd.f32 %v4812_v16, %v3438_v6  ;;  %v10642_v6 = vpack.c.bf16 %v8658_v15, %v8653_v23 }
 0x440   :  { %v3710_v53 = vadd.f32 %v4847_v30, %v3606_v8  ;;  %v10641_v30 = vpack.c.bf16 %v8644_v36, %v8642_v50 }
 0x442   :  { %v3713_v17 = vmax.f32 %v3710_v53, 0.0  ;;  %v10652_v53 = vpack.c.bf16 %v8843_v51, %v8834_v7 }
 0x444   :  { %v3715_v57 = vrot.slane %v3713_v17, 4  ;;  %v9054_v10 = vand.u32 4294901760, %v3713_v17 }
 0x446   :  { %v3852_v1 = vand.u32 4294901760, %v3715_v57  ;;  %v3859_v3 = vsub.f32 %v3713_v17, %v9054_v10  ;;  %v10653_v17 = vpack.c.bf16 %v8863_v0, %v8857_v37 }
 0x448   :  { %4093 = vmatprep.mubr.f32.mxu1 %v3852_v1  ;;  %v3853_v62 = vsub.f32 %v3715_v57, %v3852_v1  ;;  %v3860_v47 = vand.u32 4294901760, %v3859_v3  ;;  %v10654_v57 = vpack.c.bf16 %v8877_v45, %v8874_v19 }
 0x449   :  { %4095 = vmatmul.mubr.f32.vlgmr.msra.gmra.mrb[8].mxu1 %v9054_v10 }
 0x44a   :  { %6117 = vmatpush3.bf16.msra.mxu1 %v8717_v54  ;;  %v3854_v21 = vand.u32 4294901760, %v3853_v62  ;;  %v3861_v46 = vsub.f32 %v3859_v3, %v3860_v47 }
 0x44b   :  { %6119 = vmatprep.subr.bf16.mxu1 %v8811_v42 }
 0x44c   :  { %4337 = vmatprep.mubr.f32.mxu1 %v3854_v21  ;;  %v3855_v16 = vsub.f32 %v3853_v62, %v3854_v21  ;;  %v3862_v58 = vand.u32 4294901760, %v3861_v46  ;;  %v10656_v21 = vpack.c.bf16 %v8949_v56, %v8940_v59  ;;  %v10657_v46 = vpack.c.bf16 %v8963_v40, %v8953_v25 }
 0x44e   :  { %6121 = vmatpush3.bf16.msra.mxu1 %v8819_v28  ;;  %v3856_v8 = vand.u32 4294901760, %v3855_v16  ;;  %v10658_v16 = vld [vmem:[#allocation134_spill] sm:$0xff] }
 0x44f   :  { %6123 = vmatprep.subr.bf16.mxu1 %v8829_v20 }
 0x450   :  { %3857 = vmatprep.mubr.f32.mxu0 %v3856_v8  ;;  %v10659_v8 = vpack.c.bf16 %v8979_v48, %v10658_v16 }
 0x451   :  { %3863 = vmatmul.mubr.f32.vlgmr.msra.gmra.mrb[8].mxu0 %v3862_v58  ;;  %v10660_v58 = vld [vmem:[#allocation126_spill] sm:$0xff] }
 0x452   :  { %6085 = vmatpush3.bf16.msra.mxu0 %v10641_v30  ;;  %6125 = vmatpush3.bf16.msra.mxu1 %v8849_v18  ;;  %v10661_v30 = vand.u32 4294901760, %v10660_v58 }
 0x453   :  { %4230 = vmatprep.mubr.f32.mxu0 %v3853_v62  ;;  %6087 = vmatprep.subr.bf16.mxu0 %v10642_v6  ;;  %v10655_v62 = vpack.c.bf16 %v8892_v41, %v8887_v44  ;;  %v10662_v6 = vld [vmem:[#allocation128_spill] sm:$0xff] }
 0x454   :  { %6127 = vmatprep.subr.bf16.mxu1 %v8901_v22 }
 0x456   :  { %6089 = vmatpush3.bf16.msra.mxu0 %v10643_v9  ;;  %6129 = vmatpush3.bf16.msra.mxu1 %v8914_v12  ;;  %v10663_v9 = vand.u32 4294901760, %v10662_v6 }
 0x457   :  { %6091 = vmatprep.subr.bf16.mxu0 %v10644_v24  ;;  %6131 = vmatprep.subr.bf16.mxu1 %v10645_v35 }
 0x458   :  { %v6146_v24 = vpack.c.bf16 %v10663_v9, %v10661_v30 }
 0x45a   :  { %6093 = vmatpush3.bf16.msra.mxu0 %v10646_v11  ;;  %6133 = vmatpush3.bf16.msra.mxu1 %v10647_v5 }
 0x45b   :  { %6095 = vmatprep.subr.bf16.mxu0 %v10648_v52  ;;  %6135 = vmatprep.subr.bf16.mxu1 %v10649_v14  ;;  %v10668_v52 = vand.u32 4294901760, %v8644_v36  ;;  %v10674_v36 = vand.u32 4294901760, %v8732_v2  ;;  %v10680_v2 = vand.u32 4294901760, %v8774_v29  ;;  %v10686_v29 = vand.u32 4294901760, %v8877_v45 }
 0x45c   :  { %v10692_v45 = vand.u32 4294901760, %v8963_v40 }
 0x45e   :  { %6097 = vmatpush3.bf16.msra.mxu0 %v10650_v63  ;;  %6137 = vmatpush3.bf16.msra.mxu1 %v10651_v43 }
 0x45f   :  { %6099 = vmatprep.subr.bf16.mxu0 %v10652_v53  ;;  %6139 = vmatprep.subr.bf16.mxu1 %v8992_v4  ;;  %v10669_v53 = vand.u32 4294901760, %v8653_v23  ;;  %v10675_v23 = vand.u32 4294901760, %v8738_v61  ;;  %v10681_v61 = vand.u32 4294901760, %v8834_v7  ;;  %v10687_v7 = vand.u32 4294901760, %v8887_v44 }
 0x460   :  { %v10693_v44 = vand.u32 4294901760, %v10658_v16 }
 0x462   :  { %6101 = vmatpush3.bf16.msra.mxu0 %v10653_v17  ;;  %6141 = vmatpush3.bf16.msra.mxu1 %v9004_v38  ;;  %v10670_v17 = vand.u32 4294901760, %v8658_v15  ;;  %v10676_v15 = vand.u32 4294901760, %v8746_v33  ;;  %v10682_v33 = vand.u32 4294901760, %v8843_v51  ;;  %v10688_v51 = vand.u32 4294901760, %v8892_v41 }
 0x463   :  { %6103 = vmatprep.subr.bf16.mxu0 %v10654_v57  ;;  %6143 = vmatprep.subr.bf16.mxu1 %v9008_v49  ;;  %v10694_v41 = vand.u32 4294901760, %v8979_v48 }
 0x464   :  { %v6150_v57 = vpack.c.bf16 %v10670_v17, %v10669_v53 }
 0x466   :  { %6105 = vmatpush3.bf16.msra.mxu0 %v10655_v62  ;;  %6145 = vmatpush3.bf16.msra.mxu1 %v9011_v34 }
 0x467   :  { %6107 = vmatprep.subr.bf16.mxu0 %v10656_v21  ;;  %6179 = vmatprep.subr.bf16.mxu1 %v8706_v13  ;;  %v10664_v13 = vld [vmem:[#allocation138_spill] sm:$0xff] }
 0x469   :  { %4341 = vmatmul.mubr.f32.vlgmr.msra.gmra.mrb[10].mxu1 %v3860_v47  ;;  %v10665_v47 = vld [vmem:[#allocation137_spill] sm:$0xff] }
 0x46a   :  { %6109 = vmatpush3.bf16.msra.mxu0 %v10657_v46  ;;  %6181 = vmatpush3.bf16.msra.mxu1 %v8717_v54  ;;  %v10666_v11 = vpack.c.bf16 %v10664_v13, %v10665_v47  ;;  %v10667_v54 = vand.u32 4294901760, %v8642_v50  ;;  %v10673_v50 = vand.u32 4294901760, %v8727_v55  ;;  %v10679_v55 = vand.u32 4294901760, %v8764_v60 }
 0x46b   :  { %4611 = vmatprep.mubr.f32.mxu1 %v3852_v1  ;;  %6111 = vmatprep.subr.bf16.mxu0 %v10659_v8  ;;  %v10685_v60 = vand.u32 4294901760, %v8874_v19  ;;  %v10691_v19 = vand.u32 4294901760, %v8953_v25 }
 0x46c   :  { %6183 = vmatprep.subr.bf16.mxu1 %v8811_v42  ;;  %v6148_v63 = vpack.c.bf16 %v10668_v52, %v10667_v54  ;;  %v10671_v42 = vand.u32 4294901760, %v8665_v26  ;;  %v10677_v26 = vand.u32 4294901760, %v8751_v32  ;;  %v10683_v32 = vand.u32 4294901760, %v8857_v37 }
 0x46d   :  { %v10689_v37 = vand.u32 4294901760, %v8940_v59 }
 0x46e   :  { %6113 = vmatpush3.bf16.msra.mxu0 %v10666_v11  ;;  %6185 = vmatpush3.bf16.msra.mxu1 %v8819_v28  ;;  %v10672_v28 = vand.u32 4294901760, %v8670_v27  ;;  %v10678_v27 = vand.u32 4294901760, %v8759_v39  ;;  %v10684_v39 = vand.u32 4294901760, %v8863_v0  ;;  %v10690_v0 = vand.u32 4294901760, %v8949_v56 }
 0x46f   :  { %6147 = vmatprep.subr.bf16.mxu0 %v6146_v24  ;;  %6187 = vmatprep.subr.bf16.mxu1 %v8829_v20  ;;  %v6154_v20 = vpack.c.bf16 %v10674_v36, %v10673_v50 }
 0x470   :  { %v6152_v62 = vpack.c.bf16 %v10672_v28, %v10671_v42 }
 0x471   :  { %4233 = vmatmul.mubr.f32.vlgmr.msra.gmra.mrb[10].mxu0 %v3859_v3  ;;  %v6164_v3 = vpack.c.bf16 %v10684_v39, %v10683_v32 }
 0x472   :  { %6149 = vmatpush3.bf16.msra.mxu0 %v6148_v63  ;;  %4507 = vmatprep.mubr.f32.mxu0 %v3852_v1  ;;  %v6156_v1 = vpack.c.bf16 %v10676_v15, %v10675_v23 }
 0x473   :  { %6189 = vmatpush3.bf16.msra.mxu1 %v8849_v18  ;;  %6151 = vmatprep.subr.bf16.mxu0 %v6150_v57  ;;  %v6158_v18 = vpack.c.bf16 %v10678_v27, %v10677_v26 }
 0x474   :  { %6191 = vmatprep.subr.bf16.mxu1 %v8901_v22  ;;  %v6160_v22 = vpack.c.bf16 %v10680_v2, %v10679_v55 }
 0x476   :  { %6153 = vmatpush3.bf16.msra.mxu0 %v6152_v62 }
 0x477   :  { %6193 = vmatpush3.bf16.msra.mxu1 %v8914_v12  ;;  %6155 = vmatprep.subr.bf16.mxu0 %v6154_v20  ;;  %v6162_v12 = vpack.c.bf16 %v10682_v33, %v10681_v61 }
 0x478   :  { %6195 = vmatprep.subr.bf16.mxu1 %v10645_v35  ;;  %v6166_v35 = vpack.c.bf16 %v10686_v29, %v10685_v60 }
 0x47a   :  { %6157 = vmatpush3.bf16.msra.mxu0 %v6156_v1 }
 0x47b   :  { %6197 = vmatpush3.bf16.msra.mxu1 %v10647_v5  ;;  %6159 = vmatprep.subr.bf16.mxu0 %v6158_v18  ;;  %v6168_v5 = vpack.c.bf16 %v10688_v51, %v10687_v7 }
 0x47c   :  { %6199 = vmatprep.subr.bf16.mxu1 %v10649_v14  ;;  %v6170_v14 = vpack.c.bf16 %v10690_v0, %v10689_v37 }
 0x47e   :  { %6161 = vmatpush3.bf16.msra.mxu0 %v6160_v22 }
 0x47f   :  { %6201 = vmatpush3.bf16.msra.mxu1 %v10651_v43  ;;  %6163 = vmatprep.subr.bf16.mxu0 %v6162_v12 }
 0x480   :  { %6203 = vmatprep.subr.bf16.mxu1 %v8992_v4  ;;  %v6172_v4 = vpack.c.bf16 %v10692_v45, %v10691_v19 }
 0x482   :  { %6165 = vmatpush3.bf16.msra.mxu0 %v6164_v3 }
 0x483   :  { %6205 = vmatpush3.bf16.msra.mxu1 %v9004_v38  ;;  %6167 = vmatprep.subr.bf16.mxu0 %v6166_v35  ;;  %v6174_v38 = vpack.c.bf16 %v10694_v41, %v10693_v44 }
 0x484   :  { %6207 = vmatprep.subr.bf16.mxu1 %v9008_v49  ;;  %v4637_v49 = vld [vmem:[%s9217_s5] ss:$0 sm:$0xff]  ;;  %s4625_s5 = sshll.u32 %s6375_s23, 4  ;;  %s4626_s5 = int_to_ptr.vmem [resolvable:$true] %s4625_s5 }
 0x485   :  { %s6337_s24 = scalar_lea.vmem %s4626_s5, 64  ;;  %p6342_p5 = scmp.lt.s32.totalorder %s4626_s5, %s4626_s5 }
 0x486   :  { %6169 = vmatpush3.bf16.msra.mxu0 %v6168_v5  ;;  %p6338_p4 = scmp.ne.s32.totalorder %s4626_s5, %s6337_s24  ;;  %p6343_p6 = scmp.lt.s32.totalorder %s6337_s24, %s6337_s24 }
 0x487   :  { %6209 = vmatpush3.bf16.msra.mxu1 %v9011_v34  ;;  %6171 = vmatprep.subr.bf16.mxu0 %v6170_v14 }
 0x488   :  { %p6344_p7 = por %p6343_p6, %p6342_p5 }
 0x48a   :  { %4613 = vmatmul.mubr.f32.vlgmr.msra.gmra.mrb[12].mxu1 %v9054_v10  ;;  %6173 = vmatpush3.bf16.msra.mxu0 %v6172_v4  ;;  %p6345_p8 = pnand %p6344_p7, %p6338_p4 }
 0x48b   :  { %6175 = vmatprep.subr.bf16.mxu0 %v6174_v38 }
 0x48e   :  { %6177 = vmatpush3.bf16.msra.mxu0 %v9052_v31 }
 0x491   :  { %4509 = vmatmul.mubr.f32.vlgmr.msra.gmra.mrb[12].mxu0 %v9054_v10 }
 0x51c   :  { %v4915_v59 = vpop.f32.mrb[8].mxu1 }
 0x51d   :  { %v4916_v56 = vpop.f32.mrb[9].mxu1 }
 0x51e   :  { %v4917_v25 = vadd.f32 %v4916_v56, %v4915_v59 }
 0x524   :  { %v4880_v40 = vpop.f32.mrb[8].mxu0 }
 0x525   :  { %v4881_v34 = vpop.f32.mrb[9].mxu0 }
 0x526   :  { %v4882_v43 = vadd.f32 %v4881_v34, %v4880_v40 }
 0x528   :  { %v3865_v48 = vadd.f32 %v4882_v43, %v4637_v49 }
 0x52a   :  { %v4097_v21 = vadd.f32 %v4917_v25, %v3865_v48 }
 0x53c   :  { %v4985_v46 = vpop.f32.mrb[10].mxu1 }
 0x53d   :  { %v4986_v16 = vpop.f32.mrb[11].mxu1 }
 0x53e   :  { %v4987_v8 = vadd.f32 %v4986_v16, %v4985_v46 }
 0x544   :  { %v4950_v58 = vpop.f32.mrb[10].mxu0 }
 0x545   :  { %v4951_v30 = vpop.f32.mrb[11].mxu0 }
 0x546   :  { %v4952_v31 = vadd.f32 %v4951_v30, %v4950_v58 }
 0x548   :  { %v4235_v6 = vadd.f32 %v4952_v31, %v4097_v21 }
 0x54a   :  { %v4343_v10 = vadd.f32 %v4987_v8, %v4235_v6 }
 0x55d   :  { %v5055_v9 = vpop.f32.mrb[12].mxu1 }
 0x55e   :  { %v5056_v24 = vpop.f32.mrb[13].mxu1 }
 0x55f   :  { %v5057_v13 = vadd.f32 %v5056_v24, %v5055_v9 }
 0x564   :  { %v5020_v47 = vpop.f32.mrb[12].mxu0 }
 0x565   :  { %v5021_v11 = vpop.f32.mrb[13].mxu0 }
 0x566   :  { %v5022_v54 = vadd.f32 %v5021_v11, %v5020_v47 }
 0x568   :  { %v4511_v52 = vadd.f32 %v5022_v54, %v4343_v10 }
 0x56a   :  { %v4615_v63 = vadd.f32 %v5057_v13, %v4511_v52 }
 0x56c   :  { %4618 = vst [vmem:[#allocation10] sm:$0xf] %v4615_v63 }
 0x56d   :  { %6348 = shalt.err (!%p6345_p8)
}
 0x56e   :  { %s6349_s27 = scalar_lea.hbm %s9218_s6, 64 }
 0x56f   :  { %p6350_p9 = scmp.ne.s32.totalorder %s9218_s6, %s6349_s27  ;;  %p6353_p10 = scmp.lt.u32.totalorder %s6349_s27, %s9218_s6 }
 0x571   :  { %p6355_p11 = pnand %p6353_p10, %p6350_p9 }
 0x573   :  { %6358 = shalt.err (!%p6355_p11)
}
 0x574   :  { %4628 = dma.vmem_to_hbm [thread:$0]  %s4626_s5, 64, %s9218_s6, [#allocation4]  }
 0x575   :  { %6365 = dma.done.wait [#allocation4], 64  }
 0x576   :  { %6366 = vsyncadd [#allocation4], 4294967232 }
 0x577   :  { %4632 = vsyncpa [#allocation3], 1 }
 0x578   :  { %4633 = vsyncpa [#allocation6], 1 }
 0x579   :  { %4634 = vsyncpa [#allocation9], 1 }
 0x57a   :  { %4635 = vsyncpa [#allocation4], 1 }

</bundles_post_ra>
